<compile_context>
chip_gen: v5e
topology: v5e:2x2
jax: 0.10.0
libtpu: 0.0.40
codegen_flags: <defaults>
</compile_context>

<pallas_src>
import jax
import jax.numpy as jnp
from jax.experimental import pallas as pl
from jax.experimental.pallas import tpu as pltpu

LANE = 128      # TPU vreg lane width
SUBLANE = 8     # TPU vreg sublane height


def _round_up(x, m):
    return ((x + m - 1) // m) * m


# ---------------------------------------------------------------------------
# Fused kernel: char gather+proj -> LSTM (unrolled) -> tld gather+fc1 -> head
# ---------------------------------------------------------------------------
def _fused_kernel(idx_ref, tld_ref, num_ref,
                  char_proj_ref, w_hh_ref, b_ref,
                  w1h_ref, w1n_ref, b1_ref,
                  tld_proj_ref, w2_ref, b2_ref,
                  out_ref):
    f32 = jnp.float32
    BP = num_ref.shape[0]            # padded batch (multiple of 8)
    TB = idx_ref.shape[0]            # T * BP (time-major flattened indices)
    T = TB // BP
    V = char_proj_ref.shape[0]       # char vocab
    NT = tld_proj_ref.shape[0]       # tld vocab
    GP = w_hh_ref.shape[0]           # lane-padded per-gate / hidden width

    # --- char gather fused with input projection for ALL steps in ONE matmul:
    #     one-hot (TB, V) @ (V, 4*GP), bias folded in ---
    char_iota = jax.lax.broadcasted_iota(jnp.int32, (TB, V), 1)
    char_oh = (char_iota == idx_ref[...]).astype(f32)
    xproj = jnp.dot(char_oh, char_proj_ref[...],
                    preferred_element_type=f32) + b_ref[...]

    w_hh = w_hh_ref[...]             # (GP, 4*GP), resident for the whole loop

    # --- LSTM recurrence, fully unrolled; one MXU matmul per step.
    #     Gate slabs are 128-lane aligned; h/c padded lanes stay exactly 0. ---
    h = jnp.zeros((BP, GP), f32)
    c = jnp.zeros((BP, GP), f32)
    for t in range(T):
        g_pre = xproj[t * BP:(t + 1) * BP, :] + jnp.dot(
            h, w_hh, preferred_element_type=f32)            # (BP, 4*GP)
        i_g = jax.nn.sigmoid(g_pre[:, 0 * GP:1 * GP])
        f_g = jax.nn.sigmoid(g_pre[:, 1 * GP:2 * GP])
        g_g = jnp.tanh(g_pre[:, 2 * GP:3 * GP])
        o_g = jax.nn.sigmoid(g_pre[:, 3 * GP:4 * GP])
        c = f_g * c + i_g * g_g
        h = o_g * jnp.tanh(c)

    # --- tld gather fused with its fc1 slice: one-hot (BP, NT) @ (NT, CP) ---
    tld_iota = jax.lax.broadcasted_iota(jnp.int32, (BP, NT), 1)
    tld_oh = (tld_iota == tld_ref[...]).astype(f32)

    # --- fc1 as split matmuls (replaces concat) + relu; dropout = identity ---
    z1 = (jnp.dot(h, w1h_ref[...], preferred_element_type=f32)
          + jnp.dot(num_ref[...], w1n_ref[...], preferred_element_type=f32)
          + jnp.dot(tld_oh, tld_proj_ref[...], preferred_element_type=f32)
          + b1_ref[...])
    a1 = jnp.maximum(z1, 0.0)

    # --- fc2 (out_features=1): VPU multiply + lane reduction, then sigmoid ---
    logit = jnp.sum(a1 * w2_ref[...], axis=-1, keepdims=True) + b2_ref[...]
    out_ref[...] = jax.nn.sigmoid(logit)


# ---------------------------------------------------------------------------
# Forward wrapper (single pallas_call; only tiny integer glue outside)
# ---------------------------------------------------------------------------
def url_classifier_forward(kp, url_indices, numerical_features, tld_indices):
    B, T = url_indices.shape
    Nn = numerical_features.shape[1]
    BP = _round_up(max(B, SUBLANE), SUBLANE)

    # Tiny glue: pad batch to sublane height, lay char indices out time-major
    # as a (T*BP, 1) column so the in-kernel gather is a lane-broadcast compare
    # (no in-kernel reshape / transpose).
    url_p = jnp.zeros((BP, T), jnp.int32).at[:B].set(url_indices)
    idx_col = jnp.transpose(url_p).reshape(T * BP, 1)
    num_p = jnp.zeros((BP, Nn), jnp.float32).at[:B].set(numerical_features)
    tld_p = jnp.zeros((BP, 1), jnp.int32).at[:B, 0].set(tld_indices)

    vmem = pl.BlockSpec(memory_space=pltpu.MemorySpace.VMEM)
    out = pl.pallas_call(
        _fused_kernel,
        out_shape=jax.ShapeDtypeStruct((BP, 1), jnp.float32),
        in_specs=[vmem] * 12,
        out_specs=vmem,
    )(idx_col, tld_p, num_p,
      kp["char_proj"], kp["w_hh_p"], kp["b_p"],
      kp["w1h_p"], kp["w1n_p"], kp["b1_p"],
      kp["tld_proj"], kp["w2_p"], kp["b2_p"])
    return out[:B]


# ---------------------------------------------------------------------------
# Parameters: logical (PyTorch-convention) init + one-time pack to the
# lane-aligned, matmul-prefused kernel layout.
# ---------------------------------------------------------------------------
def init_params(key, vocab_size, char_embedding_dim, lstm_hidden_dim,
                num_tld_classes, tld_embedding_dim, num_numerical_features,
                combined_features_dim):
    E, H, C = char_embedding_dim, lstm_hidden_dim, combined_features_dim
    Dt, Nn = tld_embedding_dim, num_numerical_features
    ks = jax.random.split(key, 10)
    nrm = lambda k, s: 0.1 * jax.random.normal(k, s, jnp.float32)
    char_emb = nrm(ks[0], (vocab_size, E)).at[0].set(0.0)   # padding_idx=0
    tld_emb = nrm(ks[1], (num_tld_classes, Dt))
    w_ih = nrm(ks[2], (4 * H, E))        # PyTorch gate order i, f, g, o
    w_hh = nrm(ks[3], (4 * H, H))
    b_ih = nrm(ks[4], (4 * H,))
    b_hh = nrm(ks[5], (4 * H,))
    w1 = nrm(ks[6], (C, H + Nn + Dt))    # nn.Linear weight: (out, in)
    b1 = nrm(ks[7], (C,))
    w2 = nrm(ks[8], (1, C))
    b2 = nrm(ks[9], (1,))
    return dict(char_emb=char_emb, tld_emb=tld_emb, w_ih=w_ih, w_hh=w_hh,
                b_ih=b_ih, b_hh=b_hh, w1=w1, b1=b1, w2=w2, b2=b2)


def pack_params(p):
    """One-time repack into the lane-aligned, prefused layout the kernel uses."""
    H = p["w_hh"].shape[1]
    C = p["w1"].shape[0]
    Dt = p["tld_emb"].shape[1]
    Nn = p["w1"].shape[1] - H - Dt
    GP = _round_up(H, LANE)              # per-gate slab width (lane aligned)
    CP = _round_up(C, LANE)              # fc1 width padded to full lanes

    def pad_gate_cols(w_t, rows):
        # (in_dim, 4H) -> (rows, 4*GP); gate g occupies cols [g*GP, g*GP + H)
        out = jnp.zeros((rows, 4 * GP), jnp.float32)
        for g in range(4):
            out = out.at[:w_t.shape[0], g * GP:g * GP + H].set(
                w_t[:, g * H:(g + 1) * H])
        return out

    # Prefuse char embedding table with the LSTM input projection:
    # one_hot @ char_emb @ W_ih^T  ==  one_hot @ (char_emb @ W_ih^T)
    w_ih_p = pad_gate_cols(p["w_ih"].T, p["w_ih"].shape[1])   # (E, 4*GP)
    char_proj = p["char_emb"] @ w_ih_p                        # (V, 4*GP)

    w_hh_p = pad_gate_cols(p["w_hh"].T, GP)                   # (GP, 4*GP)
    b_p = pad_gate_cols((p["b_ih"] + p["b_hh"])[None, :], 1)  # (1, 4*GP)

    w1_h = p["w1"][:, :H].T                                   # (H,  C)
    w1_n = p["w1"][:, H:H + Nn].T                             # (Nn, C)
    w1_t = p["w1"][:, H + Nn:].T                              # (Dt, C)
    w1t_p = jnp.zeros((Dt, CP), jnp.float32).at[:, :C].set(w1_t)
    # Prefuse tld embedding table with its fc1 slice.
    tld_proj = p["tld_emb"] @ w1t_p                           # (NT, CP)

    return dict(
        char_proj=char_proj,
        w_hh_p=w_hh_p,
        b_p=b_p,
        w1h_p=jnp.zeros((GP, CP), jnp.float32).at[:H, :C].set(w1_h),
        w1n_p=jnp.zeros((Nn, CP), jnp.float32).at[:, :C].set(w1_n),
        b1_p=jnp.zeros((1, CP), jnp.float32).at[0, :C].set(p["b1"]),
        tld_proj=tld_proj,
        w2_p=jnp.zeros((1, CP), jnp.float32).at[0, :C].set(p["w2"][0]),
        b2_p=p["b2"].reshape(1, 1),
    )


# ---------------------------------------------------------------------------
# Pure-JAX reference of the PyTorch forward (eval mode) for validation
# ---------------------------------------------------------------------------
def reference_forward(p, url_indices, numerical_features, tld_indices):
    emb = p["char_emb"][url_indices]                      # (B, T, E)
    B, T, _ = emb.shape
    H = p["w_hh"].shape[1]
    w_ih_t, w_hh_t = p["w_ih"].T, p["w_hh"].T
    bias = p["b_ih"] + p["b_hh"]
    h = jnp.zeros((B, H), jnp.float32)
    c = jnp.zeros((B, H), jnp.float32)
    for t in range(T):
        g = emb[:, t, :] @ w_ih_t + h @ w_hh_t + bias
        i = jax.nn.sigmoid(g[:, :H])
        f = jax.nn.sigmoid(g[:, H:2 * H])
        gg = jnp.tanh(g[:, 2 * H:3 * H])
        o = jax.nn.sigmoid(g[:, 3 * H:])
        c = f * c + i * gg
        h = o * jnp.tanh(c)
    tld_e = p["tld_emb"][tld_indices]
    comb = jnp.concatenate([h, numerical_features, tld_e], axis=1)
    x = jnp.maximum(comb @ p["w1"].T + p["b1"], 0.0)      # dropout = identity
    return jax.nn.sigmoid(x @ p["w2"].T + p["b2"])


if __name__ == "__main__":
    vocab_size = 64
    char_embedding_dim = 16
    lstm_hidden_dim = 32
    num_tld_classes = 10
    tld_embedding_dim = 8
    num_numerical_features = 4
    combined_features_dim = 32
    B, T = 2, 8

    key = jax.random.PRNGKey(0)
    k_params, k_url, k_num, k_tld = jax.random.split(key, 4)

    logical = init_params(k_params, vocab_size, char_embedding_dim,
                          lstm_hidden_dim, num_tld_classes, tld_embedding_dim,
                          num_numerical_features, combined_features_dim)
    packed = pack_params(logical)

    url_indices = jax.random.randint(k_url, (B, T), 0, vocab_size, jnp.int32)
    numerical_features = jax.random.normal(
        k_num, (B, num_numerical_features), jnp.float32)
    tld_indices = jax.random.randint(k_tld, (B,), 0, num_tld_classes, jnp.int32)

    fwd = jax.jit(url_classifier_forward)
    out = jax.block_until_ready(
        fwd(packed, url_indices, numerical_features, tld_indices))

    assert out.shape == (B, 1)
    assert bool(jnp.all((out >= 0.0) & (out <= 1.0)))

    ref = reference_forward(logical, url_indices, numerical_features,
                            tld_indices)
    assert bool(jnp.allclose(out, ref, atol=1e-2, rtol=1e-2))

    print("KERNEL_OK")
</pallas_src>

<mosaic_0001>
module attributes {stable_mosaic.version = 11 : i64} {
  func.func @_fused_kernel(%arg0: memref<64x1xi32, #tpu.memory_space<vmem>>, %arg1: memref<8x1xi32, #tpu.memory_space<vmem>>, %arg2: memref<8x4xf32, #tpu.memory_space<vmem>>, %arg3: memref<64x512xf32, #tpu.memory_space<vmem>>, %arg4: memref<128x512xf32, #tpu.memory_space<vmem>>, %arg5: memref<1x512xf32, #tpu.memory_space<vmem>>, %arg6: memref<128x128xf32, #tpu.memory_space<vmem>>, %arg7: memref<4x128xf32, #tpu.memory_space<vmem>>, %arg8: memref<1x128xf32, #tpu.memory_space<vmem>>, %arg9: memref<10x128xf32, #tpu.memory_space<vmem>>, %arg10: memref<1x128xf32, #tpu.memory_space<vmem>>, %arg11: memref<1x1xf32, #tpu.memory_space<vmem>>, %arg12: memref<8x1xf32, #tpu.memory_space<vmem>>) attributes {dimension_semantics = [], scalar_prefetch = 0 : i64, scratch_operands = 0 : i64, tpu.core_type = #tpu.core_type<tc>} {
    %0 = tpu.iota {dimensions = array<i32: 1>} : vector<64x64xi32>
    %c0 = arith.constant 0 : index
    %c0_0 = arith.constant 0 : index
    %1 = vector.load %arg0[%c0, %c0_0] : memref<64x1xi32, #tpu.memory_space<vmem>>, vector<64x1xi32>
    %2 = vector.broadcast %1 : vector<64x1xi32> to vector<64x64xi32>
    %3 = arith.cmpi eq, %0, %2 : vector<64x64xi32>
    %4 = arith.extui %3 : vector<64x64xi1> to vector<64x64xi32>
    %5 = arith.sitofp %4 : vector<64x64xi32> to vector<64x64xf32>
    %c0_1 = arith.constant 0 : index
    %c0_2 = arith.constant 0 : index
    %6 = vector.load %arg3[%c0_1, %c0_2] : memref<64x512xf32, #tpu.memory_space<vmem>>, vector<64x512xf32>
    %cst = arith.constant dense<0.000000e+00> : vector<64x512xf32>
    %7 = tpu.matmul %5, %6, %cst {dimension_numbers = #tpu.dot_dimension_numbers<[1], [0], [0], [1], [0, 0, 1, 1], [], []>} : vector<64x64xf32>, vector<64x512xf32>, vector<64x512xf32> -> vector<64x512xf32>
    %c0_3 = arith.constant 0 : index
    %c0_4 = arith.constant 0 : index
    %8 = vector.load %arg5[%c0_3, %c0_4] : memref<1x512xf32, #tpu.memory_space<vmem>>, vector<1x512xf32>
    %9 = vector.broadcast %8 : vector<1x512xf32> to vector<64x512xf32>
    %10 = arith.addf %7, %9 : vector<64x512xf32>
    %c0_5 = arith.constant 0 : index
    %c0_6 = arith.constant 0 : index
    %11 = vector.load %arg4[%c0_5, %c0_6] : memref<128x512xf32, #tpu.memory_space<vmem>>, vector<128x512xf32>
    %cst_7 = arith.constant 0.000000e+00 : f32
    %12 = vector.broadcast %cst_7 : f32 to vector<8x128xf32>
    %cst_8 = arith.constant 0.000000e+00 : f32
    %13 = vector.broadcast %cst_8 : f32 to vector<8x128xf32>
    %14 = vector.extract_strided_slice %10 {offsets = [0, 0], sizes = [8, 512], strides = [1, 1]} : vector<64x512xf32> to vector<8x512xf32>
    %cst_9 = arith.constant dense<0.000000e+00> : vector<8x512xf32>
    %15 = tpu.matmul %12, %11, %cst_9 {dimension_numbers = #tpu.dot_dimension_numbers<[1], [0], [0], [1], [0, 0, 1, 1], [], []>} : vector<8x128xf32>, vector<128x512xf32>, vector<8x512xf32> -> vector<8x512xf32>
    %16 = arith.addf %14, %15 : vector<8x512xf32>
    %17 = vector.extract_strided_slice %16 {offsets = [0, 0], sizes = [8, 128], strides = [1, 1]} : vector<8x512xf32> to vector<8x128xf32>
    %18 = arith.negf %17 : vector<8x128xf32>
    %19 = math.exp %18 : vector<8x128xf32>
    %cst_10 = arith.constant 1.000000e+00 : f32
    %20 = vector.broadcast %cst_10 : f32 to vector<8x128xf32>
    %21 = arith.addf %20, %19 : vector<8x128xf32>
    %22 = arith.divf %20, %21 : vector<8x128xf32>
    %23 = vector.extract_strided_slice %16 {offsets = [0, 128], sizes = [8, 128], strides = [1, 1]} : vector<8x512xf32> to vector<8x128xf32>
    %24 = arith.negf %23 : vector<8x128xf32>
    %25 = math.exp %24 : vector<8x128xf32>
    %cst_11 = arith.constant 1.000000e+00 : f32
    %26 = vector.broadcast %cst_11 : f32 to vector<8x128xf32>
    %27 = arith.addf %26, %25 : vector<8x128xf32>
    %28 = arith.divf %26, %27 : vector<8x128xf32>
    %29 = vector.extract_strided_slice %16 {offsets = [0, 256], sizes = [8, 128], strides = [1, 1]} : vector<8x512xf32> to vector<8x128xf32>
    %30 = math.tanh %29 : vector<8x128xf32>
    %31 = vector.extract_strided_slice %16 {offsets = [0, 384], sizes = [8, 128], strides = [1, 1]} : vector<8x512xf32> to vector<8x128xf32>
    %32 = arith.negf %31 : vector<8x128xf32>
    %33 = math.exp %32 : vector<8x128xf32>
    %cst_12 = arith.constant 1.000000e+00 : f32
    %34 = vector.broadcast %cst_12 : f32 to vector<8x128xf32>
    %35 = arith.addf %34, %33 : vector<8x128xf32>
    %36 = arith.divf %34, %35 : vector<8x128xf32>
    %37 = arith.mulf %28, %13 : vector<8x128xf32>
    %38 = arith.mulf %22, %30 : vector<8x128xf32>
    %39 = arith.addf %37, %38 : vector<8x128xf32>
    %40 = math.tanh %39 : vector<8x128xf32>
    %41 = arith.mulf %36, %40 : vector<8x128xf32>
    %42 = vector.extract_strided_slice %10 {offsets = [8, 0], sizes = [8, 512], strides = [1, 1]} : vector<64x512xf32> to vector<8x512xf32>
    %cst_13 = arith.constant dense<0.000000e+00> : vector<8x512xf32>
    %43 = tpu.matmul %41, %11, %cst_13 {dimension_numbers = #tpu.dot_dimension_numbers<[1], [0], [0], [1], [0, 0, 1, 1], [], []>} : vector<8x128xf32>, vector<128x512xf32>, vector<8x512xf32> -> vector<8x512xf32>
    %44 = arith.addf %42, %43 : vector<8x512xf32>
    %45 = vector.extract_strided_slice %44 {offsets = [0, 0], sizes = [8, 128], strides = [1, 1]} : vector<8x512xf32> to vector<8x128xf32>
    %46 = arith.negf %45 : vector<8x128xf32>
    %47 = math.exp %46 : vector<8x128xf32>
    %cst_14 = arith.constant 1.000000e+00 : f32
    %48 = vector.broadcast %cst_14 : f32 to vector<8x128xf32>
    %49 = arith.addf %48, %47 : vector<8x128xf32>
    %50 = arith.divf %48, %49 : vector<8x128xf32>
    %51 = vector.extract_strided_slice %44 {offsets = [0, 128], sizes = [8, 128], strides = [1, 1]} : vector<8x512xf32> to vector<8x128xf32>
    %52 = arith.negf %51 : vector<8x128xf32>
    %53 = math.exp %52 : vector<8x128xf32>
    %cst_15 = arith.constant 1.000000e+00 : f32
    %54 = vector.broadcast %cst_15 : f32 to vector<8x128xf32>
    %55 = arith.addf %54, %53 : vector<8x128xf32>
    %56 = arith.divf %54, %55 : vector<8x128xf32>
    %57 = vector.extract_strided_slice %44 {offsets = [0, 256], sizes = [8, 128], strides = [1, 1]} : vector<8x512xf32> to vector<8x128xf32>
    %58 = math.tanh %57 : vector<8x128xf32>
    %59 = vector.extract_strided_slice %44 {offsets = [0, 384], sizes = [8, 128], strides = [1, 1]} : vector<8x512xf32> to vector<8x128xf32>
    %60 = arith.negf %59 : vector<8x128xf32>
    %61 = math.exp %60 : vector<8x128xf32>
    %cst_16 = arith.constant 1.000000e+00 : f32
    %62 = vector.broadcast %cst_16 : f32 to vector<8x128xf32>
    %63 = arith.addf %62, %61 : vector<8x128xf32>
    %64 = arith.divf %62, %63 : vector<8x128xf32>
    %65 = arith.mulf %56, %39 : vector<8x128xf32>
    %66 = arith.mulf %50, %58 : vector<8x128xf32>
    %67 = arith.addf %65, %66 : vector<8x128xf32>
    %68 = math.tanh %67 : vector<8x128xf32>
    %69 = arith.mulf %64, %68 : vector<8x128xf32>
    %70 = vector.extract_strided_slice %10 {offsets = [16, 0], sizes = [8, 512], strides = [1, 1]} : vector<64x512xf32> to vector<8x512xf32>
    %cst_17 = arith.constant dense<0.000000e+00> : vector<8x512xf32>
    %71 = tpu.matmul %69, %11, %cst_17 {dimension_numbers = #tpu.dot_dimension_numbers<[1], [0], [0], [1], [0, 0, 1, 1], [], []>} : vector<8x128xf32>, vector<128x512xf32>, vector<8x512xf32> -> vector<8x512xf32>
    %72 = arith.addf %70, %71 : vector<8x512xf32>
    %73 = vector.extract_strided_slice %72 {offsets = [0, 0], sizes = [8, 128], strides = [1, 1]} : vector<8x512xf32> to vector<8x128xf32>
    %74 = arith.negf %73 : vector<8x128xf32>
    %75 = math.exp %74 : vector<8x128xf32>
    %cst_18 = arith.constant 1.000000e+00 : f32
    %76 = vector.broadcast %cst_18 : f32 to vector<8x128xf32>
    %77 = arith.addf %76, %75 : vector<8x128xf32>
    %78 = arith.divf %76, %77 : vector<8x128xf32>
    %79 = vector.extract_strided_slice %72 {offsets = [0, 128], sizes = [8, 128], strides = [1, 1]} : vector<8x512xf32> to vector<8x128xf32>
    %80 = arith.negf %79 : vector<8x128xf32>
    %81 = math.exp %80 : vector<8x128xf32>
    %cst_19 = arith.constant 1.000000e+00 : f32
    %82 = vector.broadcast %cst_19 : f32 to vector<8x128xf32>
    %83 = arith.addf %82, %81 : vector<8x128xf32>
    %84 = arith.divf %82, %83 : vector<8x128xf32>
    %85 = vector.extract_strided_slice %72 {offsets = [0, 256], sizes = [8, 128], strides = [1, 1]} : vector<8x512xf32> to vector<8x128xf32>
    %86 = math.tanh %85 : vector<8x128xf32>
    %87 = vector.extract_strided_slice %72 {offsets = [0, 384], sizes = [8, 128], strides = [1, 1]} : vector<8x512xf32> to vector<8x128xf32>
    %88 = arith.negf %87 : vector<8x128xf32>
    %89 = math.exp %88 : vector<8x128xf32>
    %cst_20 = arith.constant 1.000000e+00 : f32
    %90 = vector.broadcast %cst_20 : f32 to vector<8x128xf32>
    %91 = arith.addf %90, %89 : vector<8x128xf32>
    %92 = arith.divf %90, %91 : vector<8x128xf32>
    %93 = arith.mulf %84, %67 : vector<8x128xf32>
    %94 = arith.mulf %78, %86 : vector<8x128xf32>
    %95 = arith.addf %93, %94 : vector<8x128xf32>
    %96 = math.tanh %95 : vector<8x128xf32>
    %97 = arith.mulf %92, %96 : vector<8x128xf32>
    %98 = vector.extract_strided_slice %10 {offsets = [24, 0], sizes = [8, 512], strides = [1, 1]} : vector<64x512xf32> to vector<8x512xf32>
    %cst_21 = arith.constant dense<0.000000e+00> : vector<8x512xf32>
    %99 = tpu.matmul %97, %11, %cst_21 {dimension_numbers = #tpu.dot_dimension_numbers<[1], [0], [0], [1], [0, 0, 1, 1], [], []>} : vector<8x128xf32>, vector<128x512xf32>, vector<8x512xf32> -> vector<8x512xf32>
    %100 = arith.addf %98, %99 : vector<8x512xf32>
    %101 = vector.extract_strided_slice %100 {offsets = [0, 0], sizes = [8, 128], strides = [1, 1]} : vector<8x512xf32> to vector<8x128xf32>
    %102 = arith.negf %101 : vector<8x128xf32>
    %103 = math.exp %102 : vector<8x128xf32>
    %cst_22 = arith.constant 1.000000e+00 : f32
    %104 = vector.broadcast %cst_22 : f32 to vector<8x128xf32>
    %105 = arith.addf %104, %103 : vector<8x128xf32>
    %106 = arith.divf %104, %105 : vector<8x128xf32>
    %107 = vector.extract_strided_slice %100 {offsets = [0, 128], sizes = [8, 128], strides = [1, 1]} : vector<8x512xf32> to vector<8x128xf32>
    %108 = arith.negf %107 : vector<8x128xf32>
    %109 = math.exp %108 : vector<8x128xf32>
    %cst_23 = arith.constant 1.000000e+00 : f32
    %110 = vector.broadcast %cst_23 : f32 to vector<8x128xf32>
    %111 = arith.addf %110, %109 : vector<8x128xf32>
    %112 = arith.divf %110, %111 : vector<8x128xf32>
    %113 = vector.extract_strided_slice %100 {offsets = [0, 256], sizes = [8, 128], strides = [1, 1]} : vector<8x512xf32> to vector<8x128xf32>
    %114 = math.tanh %113 : vector<8x128xf32>
    %115 = vector.extract_strided_slice %100 {offsets = [0, 384], sizes = [8, 128], strides = [1, 1]} : vector<8x512xf32> to vector<8x128xf32>
    %116 = arith.negf %115 : vector<8x128xf32>
    %117 = math.exp %116 : vector<8x128xf32>
    %cst_24 = arith.constant 1.000000e+00 : f32
    %118 = vector.broadcast %cst_24 : f32 to vector<8x128xf32>
    %119 = arith.addf %118, %117 : vector<8x128xf32>
    %120 = arith.divf %118, %119 : vector<8x128xf32>
    %121 = arith.mulf %112, %95 : vector<8x128xf32>
    %122 = arith.mulf %106, %114 : vector<8x128xf32>
    %123 = arith.addf %121, %122 : vector<8x128xf32>
    %124 = math.tanh %123 : vector<8x128xf32>
    %125 = arith.mulf %120, %124 : vector<8x128xf32>
    %126 = vector.extract_strided_slice %10 {offsets = [32, 0], sizes = [8, 512], strides = [1, 1]} : vector<64x512xf32> to vector<8x512xf32>
    %cst_25 = arith.constant dense<0.000000e+00> : vector<8x512xf32>
    %127 = tpu.matmul %125, %11, %cst_25 {dimension_numbers = #tpu.dot_dimension_numbers<[1], [0], [0], [1], [0, 0, 1, 1], [], []>} : vector<8x128xf32>, vector<128x512xf32>, vector<8x512xf32> -> vector<8x512xf32>
    %128 = arith.addf %126, %127 : vector<8x512xf32>
    %129 = vector.extract_strided_slice %128 {offsets = [0, 0], sizes = [8, 128], strides = [1, 1]} : vector<8x512xf32> to vector<8x128xf32>
    %130 = arith.negf %129 : vector<8x128xf32>
    %131 = math.exp %130 : vector<8x128xf32>
    %cst_26 = arith.constant 1.000000e+00 : f32
    %132 = vector.broadcast %cst_26 : f32 to vector<8x128xf32>
    %133 = arith.addf %132, %131 : vector<8x128xf32>
    %134 = arith.divf %132, %133 : vector<8x128xf32>
    %135 = vector.extract_strided_slice %128 {offsets = [0, 128], sizes = [8, 128], strides = [1, 1]} : vector<8x512xf32> to vector<8x128xf32>
    %136 = arith.negf %135 : vector<8x128xf32>
    %137 = math.exp %136 : vector<8x128xf32>
    %cst_27 = arith.constant 1.000000e+00 : f32
    %138 = vector.broadcast %cst_27 : f32 to vector<8x128xf32>
    %139 = arith.addf %138, %137 : vector<8x128xf32>
    %140 = arith.divf %138, %139 : vector<8x128xf32>
    %141 = vector.extract_strided_slice %128 {offsets = [0, 256], sizes = [8, 128], strides = [1, 1]} : vector<8x512xf32> to vector<8x128xf32>
    %142 = math.tanh %141 : vector<8x128xf32>
    %143 = vector.extract_strided_slice %128 {offsets = [0, 384], sizes = [8, 128], strides = [1, 1]} : vector<8x512xf32> to vector<8x128xf32>
    %144 = arith.negf %143 : vector<8x128xf32>
    %145 = math.exp %144 : vector<8x128xf32>
    %cst_28 = arith.constant 1.000000e+00 : f32
    %146 = vector.broadcast %cst_28 : f32 to vector<8x128xf32>
    %147 = arith.addf %146, %145 : vector<8x128xf32>
    %148 = arith.divf %146, %147 : vector<8x128xf32>
    %149 = arith.mulf %140, %123 : vector<8x128xf32>
    %150 = arith.mulf %134, %142 : vector<8x128xf32>
    %151 = arith.addf %149, %150 : vector<8x128xf32>
    %152 = math.tanh %151 : vector<8x128xf32>
    %153 = arith.mulf %148, %152 : vector<8x128xf32>
    %154 = vector.extract_strided_slice %10 {offsets = [40, 0], sizes = [8, 512], strides = [1, 1]} : vector<64x512xf32> to vector<8x512xf32>
    %cst_29 = arith.constant dense<0.000000e+00> : vector<8x512xf32>
    %155 = tpu.matmul %153, %11, %cst_29 {dimension_numbers = #tpu.dot_dimension_numbers<[1], [0], [0], [1], [0, 0, 1, 1], [], []>} : vector<8x128xf32>, vector<128x512xf32>, vector<8x512xf32> -> vector<8x512xf32>
    %156 = arith.addf %154, %155 : vector<8x512xf32>
    %157 = vector.extract_strided_slice %156 {offsets = [0, 0], sizes = [8, 128], strides = [1, 1]} : vector<8x512xf32> to vector<8x128xf32>
    %158 = arith.negf %157 : vector<8x128xf32>
    %159 = math.exp %158 : vector<8x128xf32>
    %cst_30 = arith.constant 1.000000e+00 : f32
    %160 = vector.broadcast %cst_30 : f32 to vector<8x128xf32>
    %161 = arith.addf %160, %159 : vector<8x128xf32>
    %162 = arith.divf %160, %161 : vector<8x128xf32>
    %163 = vector.extract_strided_slice %156 {offsets = [0, 128], sizes = [8, 128], strides = [1, 1]} : vector<8x512xf32> to vector<8x128xf32>
    %164 = arith.negf %163 : vector<8x128xf32>
    %165 = math.exp %164 : vector<8x128xf32>
    %cst_31 = arith.constant 1.000000e+00 : f32
    %166 = vector.broadcast %cst_31 : f32 to vector<8x128xf32>
    %167 = arith.addf %166, %165 : vector<8x128xf32>
    %168 = arith.divf %166, %167 : vector<8x128xf32>
    %169 = vector.extract_strided_slice %156 {offsets = [0, 256], sizes = [8, 128], strides = [1, 1]} : vector<8x512xf32> to vector<8x128xf32>
    %170 = math.tanh %169 : vector<8x128xf32>
    %171 = vector.extract_strided_slice %156 {offsets = [0, 384], sizes = [8, 128], strides = [1, 1]} : vector<8x512xf32> to vector<8x128xf32>
    %172 = arith.negf %171 : vector<8x128xf32>
    %173 = math.exp %172 : vector<8x128xf32>
    %cst_32 = arith.constant 1.000000e+00 : f32
    %174 = vector.broadcast %cst_32 : f32 to vector<8x128xf32>
    %175 = arith.addf %174, %173 : vector<8x128xf32>
    %176 = arith.divf %174, %175 : vector<8x128xf32>
    %177 = arith.mulf %168, %151 : vector<8x128xf32>
    %178 = arith.mulf %162, %170 : vector<8x128xf32>
    %179 = arith.addf %177, %178 : vector<8x128xf32>
    %180 = math.tanh %179 : vector<8x128xf32>
    %181 = arith.mulf %176, %180 : vector<8x128xf32>
    %182 = vector.extract_strided_slice %10 {offsets = [48, 0], sizes = [8, 512], strides = [1, 1]} : vector<64x512xf32> to vector<8x512xf32>
    %cst_33 = arith.constant dense<0.000000e+00> : vector<8x512xf32>
    %183 = tpu.matmul %181, %11, %cst_33 {dimension_numbers = #tpu.dot_dimension_numbers<[1], [0], [0], [1], [0, 0, 1, 1], [], []>} : vector<8x128xf32>, vector<128x512xf32>, vector<8x512xf32> -> vector<8x512xf32>
    %184 = arith.addf %182, %183 : vector<8x512xf32>
    %185 = vector.extract_strided_slice %184 {offsets = [0, 0], sizes = [8, 128], strides = [1, 1]} : vector<8x512xf32> to vector<8x128xf32>
    %186 = arith.negf %185 : vector<8x128xf32>
    %187 = math.exp %186 : vector<8x128xf32>
    %cst_34 = arith.constant 1.000000e+00 : f32
    %188 = vector.broadcast %cst_34 : f32 to vector<8x128xf32>
    %189 = arith.addf %188, %187 : vector<8x128xf32>
    %190 = arith.divf %188, %189 : vector<8x128xf32>
    %191 = vector.extract_strided_slice %184 {offsets = [0, 128], sizes = [8, 128], strides = [1, 1]} : vector<8x512xf32> to vector<8x128xf32>
    %192 = arith.negf %191 : vector<8x128xf32>
    %193 = math.exp %192 : vector<8x128xf32>
    %cst_35 = arith.constant 1.000000e+00 : f32
    %194 = vector.broadcast %cst_35 : f32 to vector<8x128xf32>
    %195 = arith.addf %194, %193 : vector<8x128xf32>
    %196 = arith.divf %194, %195 : vector<8x128xf32>
    %197 = vector.extract_strided_slice %184 {offsets = [0, 256], sizes = [8, 128], strides = [1, 1]} : vector<8x512xf32> to vector<8x128xf32>
    %198 = math.tanh %197 : vector<8x128xf32>
    %199 = vector.extract_strided_slice %184 {offsets = [0, 384], sizes = [8, 128], strides = [1, 1]} : vector<8x512xf32> to vector<8x128xf32>
    %200 = arith.negf %199 : vector<8x128xf32>
    %201 = math.exp %200 : vector<8x128xf32>
    %cst_36 = arith.constant 1.000000e+00 : f32
    %202 = vector.broadcast %cst_36 : f32 to vector<8x128xf32>
    %203 = arith.addf %202, %201 : vector<8x128xf32>
    %204 = arith.divf %202, %203 : vector<8x128xf32>
    %205 = arith.mulf %196, %179 : vector<8x128xf32>
    %206 = arith.mulf %190, %198 : vector<8x128xf32>
    %207 = arith.addf %205, %206 : vector<8x128xf32>
    %208 = math.tanh %207 : vector<8x128xf32>
    %209 = arith.mulf %204, %208 : vector<8x128xf32>
    %210 = vector.extract_strided_slice %10 {offsets = [56, 0], sizes = [8, 512], strides = [1, 1]} : vector<64x512xf32> to vector<8x512xf32>
    %cst_37 = arith.constant dense<0.000000e+00> : vector<8x512xf32>
    %211 = tpu.matmul %209, %11, %cst_37 {dimension_numbers = #tpu.dot_dimension_numbers<[1], [0], [0], [1], [0, 0, 1, 1], [], []>} : vector<8x128xf32>, vector<128x512xf32>, vector<8x512xf32> -> vector<8x512xf32>
    %212 = arith.addf %210, %211 : vector<8x512xf32>
    %213 = vector.extract_strided_slice %212 {offsets = [0, 0], sizes = [8, 128], strides = [1, 1]} : vector<8x512xf32> to vector<8x128xf32>
    %214 = arith.negf %213 : vector<8x128xf32>
    %215 = math.exp %214 : vector<8x128xf32>
    %cst_38 = arith.constant 1.000000e+00 : f32
    %216 = vector.broadcast %cst_38 : f32 to vector<8x128xf32>
    %217 = arith.addf %216, %215 : vector<8x128xf32>
    %218 = arith.divf %216, %217 : vector<8x128xf32>
    %219 = vector.extract_strided_slice %212 {offsets = [0, 128], sizes = [8, 128], strides = [1, 1]} : vector<8x512xf32> to vector<8x128xf32>
    %220 = arith.negf %219 : vector<8x128xf32>
    %221 = math.exp %220 : vector<8x128xf32>
    %cst_39 = arith.constant 1.000000e+00 : f32
    %222 = vector.broadcast %cst_39 : f32 to vector<8x128xf32>
    %223 = arith.addf %222, %221 : vector<8x128xf32>
    %224 = arith.divf %222, %223 : vector<8x128xf32>
    %225 = vector.extract_strided_slice %212 {offsets = [0, 256], sizes = [8, 128], strides = [1, 1]} : vector<8x512xf32> to vector<8x128xf32>
    %226 = math.tanh %225 : vector<8x128xf32>
    %227 = vector.extract_strided_slice %212 {offsets = [0, 384], sizes = [8, 128], strides = [1, 1]} : vector<8x512xf32> to vector<8x128xf32>
    %228 = arith.negf %227 : vector<8x128xf32>
    %229 = math.exp %228 : vector<8x128xf32>
    %cst_40 = arith.constant 1.000000e+00 : f32
    %230 = vector.broadcast %cst_40 : f32 to vector<8x128xf32>
    %231 = arith.addf %230, %229 : vector<8x128xf32>
    %232 = arith.divf %230, %231 : vector<8x128xf32>
    %233 = arith.mulf %224, %207 : vector<8x128xf32>
    %234 = arith.mulf %218, %226 : vector<8x128xf32>
    %235 = arith.addf %233, %234 : vector<8x128xf32>
    %236 = math.tanh %235 : vector<8x128xf32>
    %237 = arith.mulf %232, %236 : vector<8x128xf32>
    %238 = tpu.iota {dimensions = array<i32: 1>} : vector<8x10xi32>
    %c0_41 = arith.constant 0 : index
    %c0_42 = arith.constant 0 : index
    %239 = vector.load %arg1[%c0_41, %c0_42] : memref<8x1xi32, #tpu.memory_space<vmem>>, vector<8x1xi32>
    %240 = vector.broadcast %239 : vector<8x1xi32> to vector<8x10xi32>
    %241 = arith.cmpi eq, %238, %240 : vector<8x10xi32>
    %242 = arith.extui %241 : vector<8x10xi1> to vector<8x10xi32>
    %243 = arith.sitofp %242 : vector<8x10xi32> to vector<8x10xf32>
    %c0_43 = arith.constant 0 : index
    %c0_44 = arith.constant 0 : index
    %244 = vector.load %arg6[%c0_43, %c0_44] : memref<128x128xf32, #tpu.memory_space<vmem>>, vector<128x128xf32>
    %cst_45 = arith.constant dense<0.000000e+00> : vector<8x128xf32>
    %245 = tpu.matmul %237, %244, %cst_45 {dimension_numbers = #tpu.dot_dimension_numbers<[1], [0], [0], [1], [0, 0, 1, 1], [], []>} : vector<8x128xf32>, vector<128x128xf32>, vector<8x128xf32> -> vector<8x128xf32>
    %c0_46 = arith.constant 0 : index
    %c0_47 = arith.constant 0 : index
    %246 = vector.load %arg2[%c0_46, %c0_47] : memref<8x4xf32, #tpu.memory_space<vmem>>, vector<8x4xf32>
    %c0_48 = arith.constant 0 : index
    %c0_49 = arith.constant 0 : index
    %247 = vector.load %arg7[%c0_48, %c0_49] : memref<4x128xf32, #tpu.memory_space<vmem>>, vector<4x128xf32>
    %cst_50 = arith.constant dense<0.000000e+00> : vector<8x128xf32>
    %248 = tpu.matmul %246, %247, %cst_50 {dimension_numbers = #tpu.dot_dimension_numbers<[1], [0], [0], [1], [0, 0, 1, 1], [], []>} : vector<8x4xf32>, vector<4x128xf32>, vector<8x128xf32> -> vector<8x128xf32>
    %249 = arith.addf %245, %248 : vector<8x128xf32>
    %c0_51 = arith.constant 0 : index
    %c0_52 = arith.constant 0 : index
    %250 = vector.load %arg9[%c0_51, %c0_52] : memref<10x128xf32, #tpu.memory_space<vmem>>, vector<10x128xf32>
    %cst_53 = arith.constant dense<0.000000e+00> : vector<8x128xf32>
    %251 = tpu.matmul %243, %250, %cst_53 {dimension_numbers = #tpu.dot_dimension_numbers<[1], [0], [0], [1], [0, 0, 1, 1], [], []>} : vector<8x10xf32>, vector<10x128xf32>, vector<8x128xf32> -> vector<8x128xf32>
    %252 = arith.addf %249, %251 : vector<8x128xf32>
    %c0_54 = arith.constant 0 : index
    %c0_55 = arith.constant 0 : index
    %253 = vector.load %arg8[%c0_54, %c0_55] : memref<1x128xf32, #tpu.memory_space<vmem>>, vector<1x128xf32>
    %254 = vector.broadcast %253 : vector<1x128xf32> to vector<8x128xf32>
    %255 = arith.addf %252, %254 : vector<8x128xf32>
    %cst_56 = arith.constant 0.000000e+00 : f32
    %256 = vector.broadcast %cst_56 : f32 to vector<8x128xf32>
    %257 = arith.maximumf %255, %256 : vector<8x128xf32>
    %c0_57 = arith.constant 0 : index
    %c0_58 = arith.constant 0 : index
    %258 = vector.load %arg10[%c0_57, %c0_58] : memref<1x128xf32, #tpu.memory_space<vmem>>, vector<1x128xf32>
    %259 = vector.broadcast %258 : vector<1x128xf32> to vector<8x128xf32>
    %260 = arith.mulf %257, %259 : vector<8x128xf32>
    %cst_59 = arith.constant dense<0.000000e+00> : vector<8xf32>
    %261 = vector.multi_reduction <add>, %260, %cst_59 [1] : vector<8x128xf32> to vector<8xf32>
    %262 = vector.shape_cast %261 : vector<8xf32> to vector<8x1xf32>
    %c0_60 = arith.constant 0 : index
    %c0_61 = arith.constant 0 : index
    %263 = vector.load %arg11[%c0_60, %c0_61] : memref<1x1xf32, #tpu.memory_space<vmem>>, vector<1x1xf32>
    %264 = vector.broadcast %263 : vector<1x1xf32> to vector<8x1xf32>
    %265 = arith.addf %262, %264 : vector<8x1xf32>
    %266 = arith.negf %265 : vector<8x1xf32>
    %267 = math.exp %266 : vector<8x1xf32>
    %cst_62 = arith.constant 1.000000e+00 : f32
    %268 = vector.broadcast %cst_62 : f32 to vector<8x1xf32>
    %269 = arith.addf %268, %267 : vector<8x1xf32>
    %270 = arith.divf %268, %269 : vector<8x1xf32>
    %c0_63 = arith.constant 0 : index
    %c0_64 = arith.constant 0 : index
    %271 = vector.load %arg12[%c0_63, %c0_64] : memref<8x1xf32, #tpu.memory_space<vmem>>, vector<8x1xf32>
    tpu.vector_store %arg12[%c0_63, %c0_64], %270 {strides = array<i32>} : memref<8x1xf32, #tpu.memory_space<vmem>>, vector<8x1xf32>,
    return
  }
}

</mosaic_0001>

<bundles_post_ra>
// kernel: url_classifier_forward.1
= control target key start
LH: loop header
LB: loop body
LE: loop exit
PB: predicated region body
PF: predicated region fallthrough
CT: control target
= control target key end

     0   :  { %s3258_s0 = inlined_call_operand.vmem [shape: s32[64,1], index: 0, kind: input, shape index: {}]   ;;  %s3259_s1 = inlined_call_operand.vmem [shape: s32[8,1], index: 1, kind: input, shape index: {}]   ;;  %s3260_s2 = inlined_call_operand.vmem [shape: f32[8,4], index: 2, kind: input, shape index: {}]   ;;  %s3261_s3 = inlined_call_operand.hbm [shape: f32[64,512], index: 3, kind: input, shape index: {}]   ;;  %s3262_s4 = inlined_call_operand.hbm [shape: f32[128,512], index: 4, kind: input, shape index: {}]   ;;  %s3263_s5 = inlined_call_operand.vmem [shape: f32[1,512], index: 5, kind: input, shape index: {}]   ;;  %s3264_s6 = inlined_call_operand.hbm [shape: f32[128,128], index: 6, kind: input, shape index: {}]   ;;  %s3265_s7 = inlined_call_operand.vmem [shape: f32[4,128], index: 7, kind: input, shape index: {}]   ;;  %s3266_s8 = inlined_call_operand.vmem [shape: f32[1,128], index: 8, kind: input, shape index: {}]   ;;  %s3267_s9 = inlined_call_operand.vmem [shape: f32[10,128], index: 9, kind: input, shape index: {}]   ;;  %s3268_s10 = inlined_call_operand.vmem [shape: f32[1,128], index: 10, kind: input, shape index: {}]   ;;  %s3269_s11 = inlined_call_operand.<no memory space> [shape: f32[1,1], index: 11, kind: input, shape index: {}]   ;;  %s3270_s12 = inlined_call_operand.vmem [shape: f32[8,1], index: 12, kind: output, shape index: {}]  }
   0x1   :  { %v17_v0 = vstv %s3269_s11 }
   0x2   :  { %18 = vst [vmem:[#allocation2] sm:$0x1] %v17_v0 }
   0x3   :  { %19 = vsyncpa [#allocation4], 0 }
   0x4   :  { %20 = vsyncpa [#allocation6], 0  ;;  %s44_s25 = sshll.u32 %s3262_s4, 4  ;;  %s2133_s26 = smov [#allocation5]   ;;  %s45_s25 = int_to_ptr.hbm [resolvable:$true] %s44_s25 }
   0x5   :  { %s46_s27 = sshll.u32 %s2133_s26, 4  ;;  %s31_s30 = sshll.u32 %s3261_s3, 4  ;;  %s47_s27 = int_to_ptr.vmem [resolvable:$true] %s46_s27  ;;  %s32_s30 = int_to_ptr.hbm [resolvable:$true] %s31_s30 }
   0x6   :  { %s2134_s13 = smov 512   ;;  %s2135_s14 = smov 32  }
   0x7   :  { %52 = dma.hbm_to_vmem [thread:$0]  %s45_s25, 8192, %s47_s27, [#allocation6], %s2134_s13, %s2134_s13, %s2135_s14  }
   0x8   :  { %s2136_s11 = smov [#allocation3]   ;;  %s59_s18 = sshll.u32 %s3264_s6, 4  ;;  %s60_s18 = int_to_ptr.hbm [resolvable:$true] %s59_s18 }
   0x9   :  { %s33_s15 = sshll.u32 %s2136_s11, 4  ;;  %s2137_s4 = smov [#allocation7]   ;;  %s34_s15 = int_to_ptr.vmem [resolvable:$true] %s33_s15 }
   0xa   :  { %39 = dma.hbm_to_vmem [thread:$0]  %s32_s30, 4096, %s34_s15, [#allocation4], %s2134_s13, %s2134_s13, %s2135_s14  }
   0xb   :  { %s61_s19 = sshll.u32 %s2137_s4, 4  ;;  %s2138_s20 = smov 128   ;;  %s62_s19 = int_to_ptr.vmem [resolvable:$true] %s61_s19 }
   0xc   :  { %s2139_s21 = smov 8  }
   0xd   :  { %67 = dma.hbm_to_vmem [thread:$0]  %s60_s18, 2048, %s62_s19, [#allocation6], %s2138_s20, %s2138_s20, %s2139_s21  }
   0xe   :  { %2129 = dma.done.wait [#allocation4], 4096  }
   0xf   :  { %2130 = vsyncadd [#allocation4], 4294963200 }
  0x10   :  { %2131 = dma.done.wait [#allocation6], 10240  }
  0x11   :  { %2132 = vsyncadd [#allocation6], 4294957056  ;;  %v2140_v1 = vmov 0   ;;  %v98_v2 = vld [vmem:[%s3258_s0 + $0x30] sm:$0xff]  ;;  %v92_v3 = vld [vmem:[%s3258_s0] sm:$0xff]  ;;  %v90_v51 = vlaneseq  ;;  %vm190_vm0 = vcmask 523264  }
  0x12   :  { %1856 = vset.pattern.permute.xlu1 %v2140_v1  ;;  %1855 = vset.pattern.permute.xlu0 %v2140_v1  ;;  %v94_v4 = vld [vmem:[%s3258_s0 + $0x10] sm:$0xff]  ;;  %v176_v5 = vld [vmem:[#allocation3 + $0xe0] sm:$0xff]  ;;  %v99_v13 = vld [vmem:[%s3258_s0 + $0x38] sm:$0xff]  ;;  %v3277_v62 = vmov 0.0  }
  0x13   :  { %1857 = vset.pattern.permute.xlu2 %v2140_v1  ;;  %119 = vperm.xlu0 %1855, %v98_v2   ;;  %v177_v6 = vld [vmem:[#allocation3 + $0xe8] sm:$0xff]  ;;  %v178_v7 = vld [vmem:[#allocation3 + $0xf0] sm:$0xff]  ;;  %v172_v8 = vld [vmem:[#allocation3 + $0xc0] sm:$0xff]  ;;  %v2276_v55 = vand.u32 127, %v90_v51 }
  0x14   :  { %101 = vperm.xlu1 %1856, %v92_v3   ;;  %107 = vperm.xlu2 %1857, %v94_v4   ;;  %v173_v9 = vld [vmem:[#allocation3 + $0xc8] sm:$0xff]  ;;  %v174_v10 = vld [vmem:[#allocation3 + $0xd0] sm:$0xff]  ;;  %v168_v11 = vld [vmem:[#allocation3 + $0xa0] sm:$0xff] }
  0x15   :  { %223 = vmatpush.msra.mxu0 %v176_v5  ;;  %264 = vmatpush.msra.mxu1 %v177_v6  ;;  %v169_v12 = vld [vmem:[#allocation3 + $0xa8] sm:$0xff]  ;;  %v170_v15 = vld [vmem:[#allocation3 + $0xb0] sm:$0xff]  ;;  %v164_v17 = vld [vmem:[#allocation3 + $0x80] sm:$0xff]  ;;  %3375 = vst [vmem:[#allocation14_spill] sm:$0xff] %v2276_v55 }
  0x16   :  { %1838 = vmatpush.msra.mxu3 %v177_v6  ;;  %305 = vmatpush.msra.mxu2 %v178_v7  ;;  %v93_v14 = vld [vmem:[%s3258_s0 + $0x8] sm:$0xff]  ;;  %v95_v16 = vld [vmem:[%s3258_s0 + $0x18] sm:$0xff]  ;;  %v96_v25 = vld [vmem:[%s3258_s0 + $0x20] sm:$0xff] }
  0x17   :  { %224 = vmatpush.msra.mxu0 %v172_v8  ;;  %265 = vmatpush.msra.mxu1 %v173_v9  ;;  %v165_v18 = vld [vmem:[#allocation3 + $0x88] sm:$0xff]  ;;  %v166_v19 = vld [vmem:[#allocation3 + $0x90] sm:$0xff]  ;;  %v160_v20 = vld [vmem:[#allocation3 + $0x60] sm:$0xff] }
  0x18   :  { %1839 = vmatpush.msra.mxu3 %v173_v9  ;;  %306 = vmatpush.msra.mxu2 %v174_v10  ;;  %v161_v21 = vld [vmem:[#allocation3 + $0x68] sm:$0xff]  ;;  %v162_v22 = vld [vmem:[#allocation3 + $0x70] sm:$0xff]  ;;  %v156_v23 = vld [vmem:[#allocation3 + $0x40] sm:$0xff] }
  0x19   :  { %225 = vmatpush.msra.mxu0 %v168_v11  ;;  %266 = vmatpush.msra.mxu1 %v169_v12  ;;  %v157_v24 = vld [vmem:[#allocation3 + $0x48] sm:$0xff]  ;;  %v158_v27 = vld [vmem:[#allocation3 + $0x50] sm:$0xff]  ;;  %v152_v28 = vld [vmem:[#allocation3 + $0x20] sm:$0xff] }
  0x1a   :  { %1840 = vmatpush.msra.mxu3 %v169_v12  ;;  %307 = vmatpush.msra.mxu2 %v170_v15  ;;  %v97_v26 = vld [vmem:[%s3258_s0 + $0x28] sm:$0xff]  ;;  %v1619_v29 = vld [vmem:[%s3259_s1] sm:$0xff]  ;;  %v154_v31 = vld [vmem:[#allocation3 + $0x30] sm:$0xff] }
  0x1b   :  { %122 = vperm.xlu0 %1855, %v99_v13   ;;  %226 = vmatpush.msra.mxu0 %v164_v17  ;;  %v153_v30 = vld [vmem:[#allocation3 + $0x28] sm:$0xff]  ;;  %v148_v32 = vld [vmem:[#allocation3] sm:$0xff]  ;;  %v150_v34 = vld [vmem:[#allocation3 + $0x10] sm:$0xff] }
  0x1c   :  { %104 = vperm.xlu1 %1856, %v93_v14   ;;  %110 = vperm.xlu2 %1857, %v95_v16   ;;  %v149_v33 = vld [vmem:[#allocation3 + $0x8] sm:$0xff]  ;;  %v179_v35 = vld [vmem:[#allocation3 + $0xf8] sm:$0xff]  ;;  %v2246_v41 = vld [vmem:[#allocation5 + $0x1e0] sm:$0xff] }
  0x1d   :  { %267 = vmatpush.msra.mxu1 %v165_v18  ;;  %1841 = vmatpush.msra.mxu3 %v165_v18  ;;  %v175_v36 = vld [vmem:[#allocation3 + $0xd8] sm:$0xff]  ;;  %v2249_v44 = vld [vmem:[#allocation5 + $0x1c0] sm:$0xff]  ;;  %v2252_v45 = vld [vmem:[#allocation5 + $0x1e8] sm:$0xff] }
  0x1e   :  { %308 = vmatpush.msra.mxu2 %v166_v19  ;;  %227 = vmatpush.msra.mxu0 %v160_v20  ;;  %v171_v37 = vld [vmem:[#allocation3 + $0xb8] sm:$0xff]  ;;  %3371 = vst [vmem:[#allocation10_spill] sm:$0xff] %v2252_v45  ;;  %v2254_v46 = vld [vmem:[#allocation5 + $0x1a0] sm:$0xff]  ;;  %v2256_v47 = vld [vmem:[#allocation5 + $0x1c8] sm:$0xff] }
  0x1f   :  { %268 = vmatpush.msra.mxu1 %v161_v21  ;;  %1842 = vmatpush.msra.mxu3 %v161_v21  ;;  %v167_v38 = vld [vmem:[#allocation3 + $0x98] sm:$0xff]  ;;  %3372 = vst [vmem:[#allocation11_spill] sm:$0xff] %v2256_v47  ;;  %v2260_v48 = vld [vmem:[#allocation5 + $0x180] sm:$0xff]  ;;  %v2262_v49 = vld [vmem:[#allocation5 + $0x1a8] sm:$0xff] }
  0x20   :  { %309 = vmatpush.msra.mxu2 %v162_v22  ;;  %228 = vmatpush.msra.mxu0 %v156_v23  ;;  %v163_v39 = vld [vmem:[#allocation3 + $0x78] sm:$0xff]  ;;  %3373 = vst [vmem:[#allocation12_spill] sm:$0xff] %v2262_v49  ;;  %v2266_v50 = vld [vmem:[#allocation5 + $0x188] sm:$0xff]  ;;  %v2272_v53 = vld [vmem:[#allocation5 + $0x1f0] sm:$0xff] }
  0x21   :  { %269 = vmatpush.msra.mxu1 %v157_v24  ;;  %1843 = vmatpush.msra.mxu3 %v157_v24  ;;  %v159_v40 = vld [vmem:[#allocation3 + $0x58] sm:$0xff]  ;;  %3374 = vst [vmem:[#allocation13_spill] sm:$0xff] %v2266_v50  ;;  %v2270_v52 = vld [vmem:[#allocation5 + $0x168] sm:$0xff]  ;;  %v2274_v54 = vld [vmem:[#allocation5 + $0x160] sm:$0xff] }
  0x22   :  { %310 = vmatpush.msra.mxu2 %v158_v27  ;;  %229 = vmatpush.msra.mxu0 %v152_v28  ;;  %v155_v42 = vld [vmem:[#allocation3 + $0x38] sm:$0xff]  ;;  %v2280_v56 = vld [vmem:[#allocation5 + $0x148] sm:$0xff]  ;;  %v2285_v58 = vld [vmem:[#allocation5 + $0x1d0] sm:$0xff] }
  0x23   :  { %113 = vperm.xlu0 %1855, %v96_v25   ;;  %270 = vmatpush.msra.mxu1 %v153_v30  ;;  %v151_v43 = vld [vmem:[#allocation3 + $0x18] sm:$0xff]  ;;  %v2283_v57 = vld [vmem:[#allocation5 + $0x128] sm:$0xff]  ;;  %v2287_v59 = vld [vmem:[#allocation5 + $0x140] sm:$0xff] }
  0x24   :  { %116 = vperm.xlu1 %1856, %v97_v26   ;;  %1621 = vperm.xlu2 %1857, %v1619_v29   ;;  %v2301_v1 = vld [vmem:[#allocation5 + $0x1f8] sm:$0xff]  ;;  %v2303_v2 = vld [vmem:[#allocation5 + $0x108] sm:$0xff]  ;;  %v2317_v5 = vld [vmem:[#allocation5 + $0x1b0] sm:$0xff] }
  0x25   :  { %1844 = vmatpush.msra.mxu3 %v153_v30  ;;  %311 = vmatpush.msra.mxu2 %v154_v31  ;;  %v2313_v3 = vld [vmem:[#allocation5 + $0x1d8] sm:$0xff]  ;;  %v2315_v4 = vld [vmem:[#allocation5 + $0xe8] sm:$0xff]  ;;  %v2323_v7 = vld [vmem:[#allocation5 + $0x120] sm:$0xff] }
  0x26   :  { %230 = vmatpush.msra.mxu0 %v148_v32  ;;  %271 = vmatpush.msra.mxu1 %v149_v33  ;;  %v2320_v6 = vld [vmem:[#allocation5 + $0x1b8] sm:$0xff]  ;;  %v2327_v8 = vld [vmem:[#allocation5 + $0xc8] sm:$0xff]  ;;  %v2329_v9 = vld [vmem:[#allocation5 + $0x190] sm:$0xff] }
  0x27   :  { %1845 = vmatpush.msra.mxu3 %v149_v33  ;;  %312 = vmatpush.msra.mxu2 %v150_v34  ;;  %v2331_v10 = vld [vmem:[#allocation5 + $0x100] sm:$0xff]  ;;  %v2347_v16 = vld [vmem:[#allocation5 + $0x198] sm:$0xff]  ;;  %v2349_v17 = vld [vmem:[#allocation5 + $0xa8] sm:$0xff] }
  0x28   :  { %443 = vmatpush.msrb.mxu0 %v2246_v41  ;;  %463 = vmatpush.msrb.mxu1 %v2252_v45  ;;  %3376 = vst [vmem:[#allocation15_spill] sm:$0xff] %v2349_v17  ;;  %v2359_v18 = vld [vmem:[#allocation5 + $0x178] sm:$0xff]  ;;  %v2361_v19 = vld [vmem:[#allocation5 + $0x88] sm:$0xff]  ;;  %v2363_v20 = vld [vmem:[#allocation5 + $0x170] sm:$0xff] }
  0x29   :  { %346 = vmatpush.msrb.mxu3 %v179_v35  ;;  %483 = vmatpush.msrb.mxu2 %v2272_v53  ;;  %3377 = vst [vmem:[#allocation16_spill] sm:$0xff] %v2361_v19  ;;  %v2368_v21 = vld [vmem:[#allocation5 + $0xe0] sm:$0xff]  ;;  %v2370_v22 = vld [vmem:[#allocation5 + $0x150] sm:$0xff]  ;;  %v2372_v23 = vld [vmem:[#allocation5 + $0x158] sm:$0xff] }
  0x2a   :  { %444 = vmatpush.msrb.mxu0 %v2249_v44  ;;  %464 = vmatpush.msrb.mxu1 %v2256_v47  ;;  %v2374_v24 = vld [vmem:[#allocation5 + $0x68] sm:$0xff]  ;;  %v2380_v25 = vld [vmem:[#allocation5 + $0x130] sm:$0xff]  ;;  %v2382_v26 = vld [vmem:[#allocation5 + $0xc0] sm:$0xff] }
  0x2b   :  { %347 = vmatpush.msrb.mxu3 %v175_v36  ;;  %484 = vmatpush.msrb.mxu2 %v2285_v58  ;;  %3378 = vst [vmem:[#allocation17_spill] sm:$0xff] %v2374_v24  ;;  %v2391_v28 = vld [vmem:[#allocation5 + $0x138] sm:$0xff]  ;;  %v2393_v29 = vld [vmem:[#allocation5 + $0x48] sm:$0xff]  ;;  %v2400_v30 = vld [vmem:[#allocation5 + $0x110] sm:$0xff] }
  0x2c   :  { %445 = vmatpush.msrb.mxu0 %v2254_v46  ;;  %465 = vmatpush.msrb.mxu1 %v2262_v49  ;;  %3379 = vst [vmem:[#allocation18_spill] sm:$0xff] %v2393_v29  ;;  %v2406_v32 = vld [vmem:[#allocation5 + $0x118] sm:$0xff]  ;;  %v2408_v33 = vld [vmem:[#allocation5 + $0x28] sm:$0xff]  ;;  %v2410_v34 = vld [vmem:[#allocation5 + $0xa0] sm:$0xff] }
  0x2d   :  { %348 = vmatpush.msrb.mxu3 %v171_v37  ;;  %485 = vmatpush.msrb.mxu2 %v2317_v5  ;;  %3380 = vst [vmem:[#allocation19_spill] sm:$0xff] %v2408_v33  ;;  %v2415_v35 = vld [vmem:[#allocation5 + $0xf0] sm:$0xff]  ;;  %v2417_v36 = vld [vmem:[#allocation5 + $0x8] sm:$0xff]  ;;  %v2420_v37 = vld [vmem:[#allocation5 + $0xf8] sm:$0xff] }
  0x2e   :  { %446 = vmatpush.msrb.mxu0 %v2260_v48  ;;  %466 = vmatpush.msrb.mxu1 %v2266_v50  ;;  %3381 = vst [vmem:[#allocation20_spill] sm:$0xff] %v2410_v34 }
  0x2f   :  { %349 = vmatpush.msrb.mxu3 %v167_v38  ;;  %486 = vmatpush.msrb.mxu2 %v2329_v9  ;;  %3382 = vst [vmem:[#allocation21_spill] sm:$0xff] %v2417_v36  ;;  %v2423_v38 = vld [vmem:[#allocation5 + $0x80] sm:$0xff] }
  0x30   :  { %467 = vmatpush.msrb.mxu1 %v2270_v52  ;;  %447 = vmatpush.msrb.mxu0 %v2274_v54  ;;  %3383 = vst [vmem:[#allocation22_spill] sm:$0xff] %v2423_v38 }
  0x31   :  { %350 = vmatpush.msrb.mxu3 %v163_v39  ;;  %487 = vmatpush.msrb.mxu2 %v2363_v20  ;;  %v2427_v39 = vld [vmem:[#allocation5 + $0xd0] sm:$0xff] }
  0x32   :  { %468 = vmatpush.msrb.mxu1 %v2280_v56  ;;  %448 = vmatpush.msrb.mxu0 %v2287_v59 }
  0x33   :  { %351 = vmatpush.msrb.mxu3 %v159_v40  ;;  %488 = vmatpush.msrb.mxu2 %v2370_v22 }
  0x34   :  { %469 = vmatpush.msrb.mxu1 %v2283_v57  ;;  %449 = vmatpush.msrb.mxu0 %v2323_v7 }
  0x35   :  { %352 = vmatpush.msrb.mxu3 %v155_v42  ;;  %489 = vmatpush.msrb.mxu2 %v2380_v25  ;;  %v2437_v42 = vld [vmem:[#allocation5 + $0xd8] sm:$0xff] }
  0x36   :  { %470 = vmatpush.msrb.mxu1 %v2303_v2  ;;  %450 = vmatpush.msrb.mxu0 %v2331_v10 }
  0x37   :  { %353 = vmatpush.msrb.mxu3 %v151_v43  ;;  %490 = vmatpush.msrb.mxu2 %v2400_v30  ;;  %v2439_v43 = vld [vmem:[#allocation5 + $0xb0] sm:$0xff] }
  0x38   :  { %471 = vmatpush.msrb.mxu1 %v2315_v4  ;;  %451 = vmatpush.msrb.mxu0 %v2368_v21  ;;  %3384 = vst [vmem:[#allocation23_spill] sm:$0xff] %v2439_v43 }
  0x39   :  { %491 = vmatpush.msrb.mxu2 %v2415_v35 }
  0x3a   :  { %472 = vmatpush.msrb.mxu1 %v2327_v8  ;;  %452 = vmatpush.msrb.mxu0 %v2382_v26 }
  0x3b   :  { %492 = vmatpush.msrb.mxu2 %v2427_v39 }
  0x3c   :  { %473 = vmatpush.msrb.mxu1 %v2349_v17  ;;  %453 = vmatpush.msrb.mxu0 %v2410_v34 }
  0x3d   :  { %493 = vmatpush.msrb.mxu2 %v2439_v43 }
  0x3e   :  { %474 = vmatpush.msrb.mxu1 %v2361_v19  ;;  %454 = vmatpush.msrb.mxu0 %v2423_v38 }
  0x40   :  { %475 = vmatpush.msrb.mxu1 %v2374_v24 }
  0x42   :  { %476 = vmatpush.msrb.mxu1 %v2393_v29 }
  0x44   :  { %477 = vmatpush.msrb.mxu1 %v2408_v33 }
  0x46   :  { %478 = vmatpush.msrb.mxu1 %v2417_v36 }
  0x6e   :  { %v108_v15 = vpop.permute.xlu2 %107 }
  0x6f   :  { %vm126_vm5 = vcmp.eq.s32.totalorder %v2276_v55, %v108_v15  ;;  %v2463_v15 = vld [vmem:[#allocation5 + $0x98] sm:$0xff] }
  0x70   :  { %v2385_v27 = vsel %vm126_vm5, 1.0, %v3277_v62  ;;  %3390 = vst [vmem:[#allocation29_spill] sm:$0xff] %v2463_v15 }
  0x76   :  { %v111_v31 = vpop.permute.xlu2 %110 }
  0x77   :  { %vm127_vm6 = vcmp.eq.s32.totalorder %v2276_v55, %v111_v31 }
  0x78   :  { %v2430_v40 = vsel %vm127_vm6, 1.0, %v3277_v62 }
  0x85   :  { %v120_v60 = vpop.permute.xlu0 %119 }
  0x86   :  { %v102_v61 = vpop.permute.xlu1 %101  ;;  %vm130_vm1 = vcmp.eq.s32.totalorder %v2276_v55, %v120_v60  ;;  %v2450_v60 = vld [vmem:[#allocation5 + $0x90] sm:$0xff] }
  0x87   :  { %vm124_vm2 = vcmp.eq.s32.totalorder %v2276_v55, %v102_v61  ;;  %v2296_v63 = vsel %vm130_vm1, 1.0, %v3277_v62  ;;  %3385 = vst [vmem:[#allocation24_spill] sm:$0xff] %v2450_v60  ;;  %v2452_v61 = vld [vmem:[#allocation5 + $0xb8] sm:$0xff]  ;;  %494 = vmatpush.msrb.mxu2 %v2450_v60 }
  0x88   :  { %v2299_v0 = vsel %vm124_vm2, 1.0, %v3277_v62  ;;  %1790 = vmatmul.msk.f32.vlgmr.msra.gmra.mxu3 %vm190_vm0, %v2296_v63  ;;  %3386 = vst [vmem:[#allocation25_spill] sm:$0xff] %v2452_v61 }
  0x89   :  { %1776 = vmatmul.msk.f32.vlgmr.msra.gmra.mxu0 %vm190_vm0, %v2299_v0  ;;  %1784 = vmatmul.msk.f32.vlgmr.msra.gmra.mxu1 %vm190_vm0, %v2299_v0 }
  0x8a   :  { %1792 = vmatmul.msk.f32.vlgmr.msra.gmra.mxu2 %vm190_vm0, %v2299_v0  ;;  %503 = vmatpush.msra.mxu3 %v2301_v1 }
  0x8b   :  { %610 = vmatpush.msra.mxu1 %v2252_v45  ;;  %v2476_v45 = vld [vmem:[#allocation5 + $0x50] sm:$0xff] }
  0x8c   :  { %504 = vmatpush.msra.mxu3 %v2313_v3  ;;  %3392 = vst [vmem:[#allocation31_spill] sm:$0xff] %v2476_v45 }
  0x8d   :  { %v123_v11 = vpop.permute.xlu0 %122  ;;  %611 = vmatpush.msra.mxu1 %v2256_v47 }
  0x8e   :  { %v105_v12 = vpop.permute.xlu1 %104  ;;  %vm131_vm3 = vcmp.eq.s32.totalorder %v2276_v55, %v123_v11  ;;  %505 = vmatpush.msra.mxu3 %v2320_v6  ;;  %v2458_v11 = vld [vmem:[#allocation5 + $0x40] sm:$0xff] }
  0x8f   :  { %vm125_vm4 = vcmp.eq.s32.totalorder %v2276_v55, %v105_v12  ;;  %v2342_v13 = vsel %vm131_vm3, 1.0, %v3277_v62  ;;  %3388 = vst [vmem:[#allocation27_spill] sm:$0xff] %v2458_v11  ;;  %v2461_v12 = vld [vmem:[#allocation5 + $0x70] sm:$0xff]  ;;  %612 = vmatpush.msra.mxu1 %v2262_v49 }
  0x90   :  { %v2345_v14 = vsel %vm125_vm4, 1.0, %v3277_v62  ;;  %1791 = vmatmul.msk.f32.gmra.mxu3 %vm190_vm0, %v2342_v13  ;;  %3389 = vst [vmem:[#allocation28_spill] sm:$0xff] %v2461_v12  ;;  %495 = vmatpush.msrb.mxu2 %v2461_v12  ;;  %v2487_v49 = vld [vmem:[#allocation5 + $0x30] sm:$0xff] }
  0x91   :  { %1777 = vmatmul.msk.f32.gmra.mxu0 %vm190_vm0, %v2345_v14  ;;  %1785 = vmatmul.msk.f32.gmra.mxu1 %vm190_vm0, %v2345_v14  ;;  %3394 = vst [vmem:[#allocation33_spill] sm:$0xff] %v2487_v49 }
  0x92   :  { %1793 = vmatmul.msk.f32.gmra.mxu2 %vm190_vm0, %v2345_v14  ;;  %506 = vmatpush.msra.mxu3 %v2347_v16 }
  0x93   :  { %613 = vmatpush.msra.mxu1 %v2266_v50  ;;  %496 = vmatpush.msrb.mxu2 %v2476_v45  ;;  %v2495_v50 = vld [vmem:[#allocation5 + $0x10] sm:$0xff] }
  0x94   :  { %507 = vmatpush.msra.mxu3 %v2359_v18  ;;  %3397 = vst [vmem:[#allocation36_spill] sm:$0xff] %v2495_v50 }
  0x95   :  { %v114_v51 = vpop.permute.xlu0 %113  ;;  %497 = vmatpush.msrb.mxu2 %v2487_v49  ;;  %614 = vmatpush.msra.mxu1 %v2270_v52 }
  0x96   :  { %508 = vmatpush.msra.mxu3 %v2372_v23  ;;  %vm128_vm7 = vcmp.eq.s32.totalorder %v2276_v55, %v114_v51  ;;  %v2479_v51 = vld [vmem:[#allocation5] sm:$0xff]  ;;  %v117_v47 = vpop.permute.xlu1 %116 }
  0x97   :  { %v1772_v31 = vsel %vm128_vm7, 1.0, %v3277_v62  ;;  %3393 = vst [vmem:[#allocation32_spill] sm:$0xff] %v2479_v51  ;;  %v2489_v62 = vld [vmem:[#allocation5 + $0x78] sm:$0xff]  ;;  %vm129_vm8 = vcmp.eq.s32.totalorder %v2276_v55, %v117_v47  ;;  %498 = vmatpush.msrb.mxu2 %v2495_v50  ;;  %615 = vmatpush.msra.mxu1 %v2280_v56 }
  0x98   :  { %1800 = vmatmul.msk.f32.vlgmr.msrb.gmra.mxu3 %vm190_vm0, %v2299_v0  ;;  %v2454_v0 = vld [vmem:[#allocation5 + $0x60] sm:$0xff]  ;;  %3395 = vst [vmem:[#allocation34_spill] sm:$0xff] %v2489_v62  ;;  %v2514_v47 = vld [vmem:[#allocation5 + $0x38] sm:$0xff] }
  0x99   :  { %1778 = vmatmul.msk.f32.gmra.mxu0 %vm190_vm0, %v2385_v27  ;;  %1786 = vmatmul.msk.f32.gmra.mxu1 %vm190_vm0, %v2385_v27  ;;  %3387 = vst [vmem:[#allocation26_spill] sm:$0xff] %v2454_v0  ;;  %v2516_v55 = vld [vmem:[#allocation5 + $0x18] sm:$0xff] }
  0x9a   :  { %1794 = vmatmul.msk.f32.gmra.mxu2 %vm190_vm0, %v2385_v27  ;;  %509 = vmatpush.msra.mxu3 %v2391_v28  ;;  %3399 = vst [vmem:[#allocation37_spill] sm:$0xff] %v2514_v47 }
  0x9b   :  { %455 = vmatpush.msrb.mxu0 %v2454_v0  ;;  %630 = vmatpush.msra.mxu2 %v2272_v53  ;;  %3400 = vst [vmem:[#allocation38_spill] sm:$0xff] %v2516_v55 }
  0x9c   :  { %510 = vmatpush.msra.mxu3 %v2406_v32  ;;  %616 = vmatpush.msra.mxu1 %v2283_v57 }
  0x9d   :  { %456 = vmatpush.msrb.mxu0 %v2458_v11  ;;  %631 = vmatpush.msra.mxu2 %v2285_v58 }
  0x9e   :  { %511 = vmatpush.msra.mxu3 %v2420_v37  ;;  %617 = vmatpush.msra.mxu1 %v2303_v2 }
  0x9f   :  { %632 = vmatpush.msra.mxu2 %v2317_v5 }
  0xa0   :  { %1801 = vmatmul.msk.f32.gmra.mxu3 %vm190_vm0, %v2345_v14  ;;  %v2469_v14 = vld [vmem:[#allocation5 + $0x20] sm:$0xff]  ;;  %618 = vmatpush.msra.mxu1 %v2315_v4 }
  0xa1   :  { %1779 = vmatmul.msk.f32.gmra.mxu0 %vm190_vm0, %v2430_v40  ;;  %1787 = vmatmul.msk.f32.gmra.mxu1 %vm190_vm0, %v2430_v40  ;;  %3391 = vst [vmem:[#allocation30_spill] sm:$0xff] %v2469_v14 }
  0xa2   :  { %1795 = vmatmul.msk.f32.gmra.mxu2 %vm190_vm0, %v2430_v40  ;;  %512 = vmatpush.msra.mxu3 %v2437_v42 }
  0xa3   :  { %457 = vmatpush.msrb.mxu0 %v2469_v14  ;;  %v2493_v14 = vld [vmem:[#allocation5 + $0x58] sm:$0xff]  ;;  %633 = vmatpush.msra.mxu2 %v2329_v9 }
  0xa4   :  { %513 = vmatpush.msra.mxu3 %v2452_v61  ;;  %3396 = vst [vmem:[#allocation35_spill] sm:$0xff] %v2493_v14  ;;  %619 = vmatpush.msra.mxu1 %v2327_v8 }
  0xa5   :  { %458 = vmatpush.msrb.mxu0 %v2479_v51  ;;  %634 = vmatpush.msra.mxu2 %v2363_v20 }
  0xa6   :  { %514 = vmatpush.msra.mxu3 %v2463_v15  ;;  %620 = vmatpush.msra.mxu1 %v2349_v17 }
  0xa7   :  { %590 = vmatpush.msra.mxu0 %v2246_v41  ;;  %635 = vmatpush.msra.mxu2 %v2370_v22 }
  0xa8   :  { %1802 = vmatmul.msk.f32.gmra.mxu3 %vm190_vm0, %v2385_v27  ;;  %v3398_v27 = vmov 0.0   ;;  %621 = vmatpush.msra.mxu1 %v2361_v19 }
  0xa9   :  { %1780 = vmatmul.msk.f32.gmra.mxu0 %vm190_vm0, %v1772_v31  ;;  %1788 = vmatmul.msk.f32.gmra.mxu1 %vm190_vm0, %v1772_v31  ;;  %v1773_v51 = vsel %vm129_vm8, 1.0, %v3398_v27 }
  0xaa   :  { %1796 = vmatmul.msk.f32.gmra.mxu2 %vm190_vm0, %v1772_v31  ;;  %515 = vmatpush.msra.mxu3 %v2489_v62 }
  0xab   :  { %591 = vmatpush.msra.mxu0 %v2249_v44  ;;  %636 = vmatpush.msra.mxu2 %v2380_v25 }
  0xac   :  { %516 = vmatpush.msra.mxu3 %v2493_v14  ;;  %622 = vmatpush.msra.mxu1 %v2374_v24 }
  0xad   :  { %592 = vmatpush.msra.mxu0 %v2254_v46  ;;  %637 = vmatpush.msra.mxu2 %v2400_v30 }
  0xae   :  { %517 = vmatpush.msra.mxu3 %v2514_v47  ;;  %623 = vmatpush.msra.mxu1 %v2393_v29 }
  0xaf   :  { %593 = vmatpush.msra.mxu0 %v2260_v48  ;;  %638 = vmatpush.msra.mxu2 %v2415_v35 }
  0xb0   :  { %1803 = vmatmul.msk.f32.gmra.mxu3 %vm190_vm0, %v2430_v40  ;;  %624 = vmatpush.msra.mxu1 %v2408_v33  ;;  %v3402_v40 = vld [vmem:[#allocation10_spill] sm:$0xff] }
  0xb1   :  { %1781 = vmatmul.msk.f32.gmra.mxu0 %vm190_vm0, %v1773_v51  ;;  %1789 = vmatmul.msk.f32.gmra.mxu1 %vm190_vm0, %v1773_v51 }
  0xb2   :  { %1797 = vmatmul.msk.f32.gmra.mxu2 %vm190_vm0, %v1773_v51  ;;  %518 = vmatpush.msra.mxu3 %v2516_v55 }
  0xb3   :  { %594 = vmatpush.msra.mxu0 %v2274_v54  ;;  %639 = vmatpush.msra.mxu2 %v2427_v39 }
  0xb4   :  { %650 = vmatpush.msrb.mxu3 %v2301_v1  ;;  %625 = vmatpush.msra.mxu1 %v2417_v36 }
  0xb5   :  { %595 = vmatpush.msra.mxu0 %v2287_v59  ;;  %640 = vmatpush.msra.mxu2 %v2439_v43 }
  0xb6   :  { %651 = vmatpush.msrb.mxu3 %v2313_v3 }
  0xb7   :  { %596 = vmatpush.msra.mxu0 %v2323_v7  ;;  %641 = vmatpush.msra.mxu2 %v2450_v60 }
  0xb8   :  { %1804 = vmatmul.msk.f32.gmra.mxu3 %vm190_vm0, %v1772_v31  ;;  %v3403_v31 = vld [vmem:[#allocation32_spill] sm:$0xff] }
  0xb9   :  { %1782 = vmatmul.msk.f32.gmra.mxu0 %vm190_vm0, %v2296_v63  ;;  %479 = vmatmul.f32.vlgmr.msrb.gmra.mxu1 %v3398_v27 }
  0xba   :  { %1798 = vmatmul.msk.f32.gmra.mxu2 %vm190_vm0, %v2296_v63  ;;  %652 = vmatpush.msrb.mxu3 %v2320_v6 }
  0xbb   :  { %597 = vmatpush.msra.mxu0 %v2331_v10  ;;  %642 = vmatpush.msra.mxu2 %v2461_v12 }
  0xbc   :  { %653 = vmatpush.msrb.mxu3 %v2347_v16  ;;  %757 = vmatpush.msrb.mxu1 %v3402_v40  ;;  %v3405_v40 = vld [vmem:[#allocation12_spill] sm:$0xff] }
  0xbd   :  { %598 = vmatpush.msra.mxu0 %v2368_v21  ;;  %643 = vmatpush.msra.mxu2 %v2476_v45 }
  0xbe   :  { %654 = vmatpush.msrb.mxu3 %v2359_v18 }
  0xbf   :  { %599 = vmatpush.msra.mxu0 %v2382_v26  ;;  %644 = vmatpush.msra.mxu2 %v2487_v49 }
  0xc0   :  { %655 = vmatpush.msrb.mxu3 %v2372_v23 }
  0xc1   :  { %1783 = vmatmul.msk.f32.gmra.mxu0 %vm190_vm0, %v2342_v13  ;;  %1805 = vmatmul.msk.f32.gmra.mxu3 %vm190_vm0, %v1773_v51  ;;  %v3404_v51 = vld [vmem:[#allocation11_spill] sm:$0xff] }
  0xc2   :  { %1799 = vmatmul.msk.f32.gmra.mxu2 %vm190_vm0, %v2342_v13  ;;  %656 = vmatpush.msrb.mxu3 %v2391_v28 }
  0xc3   :  { %600 = vmatpush.msra.mxu0 %v2410_v34  ;;  %758 = vmatpush.msrb.mxu1 %v3404_v51 }
  0xc4   :  { %657 = vmatpush.msrb.mxu3 %v2406_v32  ;;  %645 = vmatpush.msra.mxu2 %v2495_v50 }
  0xc5   :  { %601 = vmatpush.msra.mxu0 %v2423_v38  ;;  %759 = vmatpush.msrb.mxu1 %v3405_v40 }
  0xc6   :  { %658 = vmatpush.msrb.mxu3 %v2420_v37 }
  0xc7   :  { %602 = vmatpush.msra.mxu0 %v2454_v0 }
  0xc8   :  { %659 = vmatpush.msrb.mxu3 %v2437_v42 }
  0xc9   :  { %459 = vmatmul.f32.vlgmr.msrb.gmra.mxu0 %v3398_v27  ;;  %1806 = vmatmul.msk.f32.gmra.mxu3 %vm190_vm0, %v2296_v63  ;;  %v3401_v63 = vld [vmem:[#allocation30_spill] sm:$0xff] }
  0xca   :  { %499 = vmatmul.f32.vlgmr.msrb.gmra.mxu2 %v3398_v27  ;;  %660 = vmatpush.msrb.mxu3 %v2452_v61 }
  0xcb   :  { %603 = vmatpush.msra.mxu0 %v2458_v11  ;;  %777 = vmatpush.msrb.mxu2 %v2272_v53 }
  0xcc   :  { %661 = vmatpush.msrb.mxu3 %v2463_v15 }
  0xcd   :  { %604 = vmatpush.msra.mxu0 %v3401_v63  ;;  %778 = vmatpush.msrb.mxu2 %v2285_v58 }
  0xce   :  { %662 = vmatpush.msrb.mxu3 %v2489_v62 }
  0xcf   :  { %605 = vmatpush.msra.mxu0 %v3403_v31  ;;  %779 = vmatpush.msrb.mxu2 %v2317_v5 }
  0xd0   :  { %663 = vmatpush.msrb.mxu3 %v2493_v14 }
  0xd1   :  { %1807 = vmatmul.msk.f32.gmra.mxu3 %vm190_vm0, %v2342_v13  ;;  %737 = vmatpush.msrb.mxu0 %v2246_v41  ;;  %v3406_v13 = vld [vmem:[#allocation13_spill] sm:$0xff] }
  0xd2   :  { %664 = vmatpush.msrb.mxu3 %v2514_v47  ;;  %760 = vmatpush.msrb.mxu1 %v3406_v13 }
  0xd3   :  { %738 = vmatpush.msrb.mxu0 %v2249_v44  ;;  %780 = vmatpush.msrb.mxu2 %v2329_v9 }
  0xd4   :  { %665 = vmatpush.msrb.mxu3 %v2516_v55  ;;  %761 = vmatpush.msrb.mxu1 %v2270_v52 }
  0xd5   :  { %739 = vmatpush.msrb.mxu0 %v2254_v46  ;;  %781 = vmatpush.msrb.mxu2 %v2363_v20 }
  0xd6   :  { %762 = vmatpush.msrb.mxu1 %v2280_v56 }
  0xd7   :  { %740 = vmatpush.msrb.mxu0 %v2260_v48  ;;  %782 = vmatpush.msrb.mxu2 %v2370_v22 }
  0xd8   :  { %763 = vmatpush.msrb.mxu1 %v2283_v57 }
  0xd9   :  { %519 = vmatmul.f32.vlgmr.msra.gmra.mxu3 %v3398_v27  ;;  %741 = vmatpush.msrb.mxu0 %v2274_v54 }
  0xda   :  { %797 = vmatpush.msra.mxu3 %v2301_v1  ;;  %783 = vmatpush.msrb.mxu2 %v2380_v25 }
  0xdb   :  { %742 = vmatpush.msrb.mxu0 %v2287_v59  ;;  %764 = vmatpush.msrb.mxu1 %v2303_v2 }
  0xdc   :  { %798 = vmatpush.msra.mxu3 %v2313_v3  ;;  %784 = vmatpush.msrb.mxu2 %v2400_v30 }
  0xdd   :  { %743 = vmatpush.msrb.mxu0 %v2323_v7  ;;  %765 = vmatpush.msrb.mxu1 %v2315_v4 }
  0xde   :  { %799 = vmatpush.msra.mxu3 %v2320_v6  ;;  %785 = vmatpush.msrb.mxu2 %v2415_v35 }
  0xdf   :  { %744 = vmatpush.msrb.mxu0 %v2331_v10  ;;  %766 = vmatpush.msrb.mxu1 %v2327_v8 }
  0xe0   :  { %800 = vmatpush.msra.mxu3 %v2347_v16  ;;  %786 = vmatpush.msrb.mxu2 %v2427_v39 }
  0xe1   :  { %745 = vmatpush.msrb.mxu0 %v2368_v21  ;;  %767 = vmatpush.msrb.mxu1 %v2349_v17 }
  0xe2   :  { %801 = vmatpush.msra.mxu3 %v2359_v18  ;;  %787 = vmatpush.msrb.mxu2 %v2439_v43 }
  0xe3   :  { %746 = vmatpush.msrb.mxu0 %v2382_v26  ;;  %768 = vmatpush.msrb.mxu1 %v2361_v19 }
  0xe4   :  { %802 = vmatpush.msra.mxu3 %v2372_v23  ;;  %788 = vmatpush.msrb.mxu2 %v2450_v60 }
  0xe5   :  { %747 = vmatpush.msrb.mxu0 %v2410_v34  ;;  %769 = vmatpush.msrb.mxu1 %v2374_v24 }
  0xe6   :  { %803 = vmatpush.msra.mxu3 %v2391_v28  ;;  %789 = vmatpush.msrb.mxu2 %v2461_v12 }
  0xe7   :  { %748 = vmatpush.msrb.mxu0 %v2423_v38  ;;  %770 = vmatpush.msrb.mxu1 %v2393_v29 }
  0xe8   :  { %804 = vmatpush.msra.mxu3 %v2406_v32  ;;  %790 = vmatpush.msrb.mxu2 %v2476_v45 }
  0xe9   :  { %749 = vmatpush.msrb.mxu0 %v2454_v0  ;;  %771 = vmatpush.msrb.mxu1 %v2408_v33 }
  0xea   :  { %805 = vmatpush.msra.mxu3 %v2420_v37  ;;  %791 = vmatpush.msrb.mxu2 %v2487_v49  ;;  %v180_v49 = vld [vmem:[%s3263_s5] sm:$0xf] }
  0xeb   :  { %750 = vmatpush.msrb.mxu0 %v2458_v11  ;;  %772 = vmatpush.msrb.mxu1 %v2417_v36  ;;  %v182_v36 = vperm.slane %v180_v49, 0 }
  0xec   :  { %806 = vmatpush.msra.mxu3 %v2437_v42  ;;  %792 = vmatpush.msrb.mxu2 %v2495_v50 }
  0xed   :  { %751 = vmatpush.msrb.mxu0 %v3401_v63  ;;  %v183_v63 = vperm.slane %v180_v49, 1 }
  0xee   :  { %807 = vmatpush.msra.mxu3 %v2452_v61 }
  0xef   :  { %752 = vmatpush.msrb.mxu0 %v3403_v31 }
  0xf0   :  { %808 = vmatpush.msra.mxu3 %v2463_v15 }
  0xf2   :  { %809 = vmatpush.msra.mxu3 %v2489_v62 }
  0xf4   :  { %810 = vmatpush.msra.mxu3 %v2493_v14 }
  0xf6   :  { %811 = vmatpush.msra.mxu3 %v2514_v47 }
  0xf8   :  { %812 = vmatpush.msra.mxu3 %v2516_v55  ;;  %v2667_v55 = vperm.slane %v180_v49, 2 }
 0x106   :  { %v232_v27 = vpop.f32.mrf.mxu0  ;;  %v273_v33 = vpop.f32.mrf.mxu1 }
 0x10b   :  { %v291_v45 = vpop.f32.mrf.mxu3 }
 0x10c   :  { %v2661_v31 = vadd.f32 %v291_v45, %v183_v63 }
 0x10d   :  { %v2659_v29 = vpop.f32.mrf.mxu2 }
 0x10e   :  { %3407 = vst [vmem:[#allocation11_spill] sm:$0xff] %v2661_v31  ;;  %v235_v50 = vpop.f32.mrf.mxu0  ;;  %v276_v11 = vpop.f32.mrf.mxu1 }
 0x10f   :  { %v2663_v14 = vadd.f32 %v235_v50, %v182_v36  ;;  %v2665_v47 = vadd.f32 %v276_v11, %v183_v63 }
 0x111   :  { %3408 = vst [vmem:[#allocation12_spill] sm:$0xff] %v2663_v14 }
 0x112   :  { %3409 = vst [vmem:[#allocation13_spill] sm:$0xff] %v2665_v47 }
 0x113   :  { %v294_v62 = vpop.f32.mrf.mxu3 }
 0x114   :  { %v2669_v24 = vadd.f32 %v294_v62, %v183_v63 }
 0x115   :  { %v317_v12 = vpop.f32.mrf.mxu2 }
 0x116   :  { %3410 = vst [vmem:[#allocation39_spill] sm:$0xff] %v2669_v24  ;;  %v2672_v0 = vadd.f32 %v317_v12, %v2667_v55  ;;  %v238_v15 = vpop.f32.mrf.mxu0  ;;  %v279_v60 = vpop.f32.mrf.mxu1  ;;  %v185_v12 = vperm.slane %v180_v49, 3 }
 0x117   :  { %v2674_v19 = vadd.f32 %v238_v15, %v182_v36  ;;  %v2676_v45 = vadd.f32 %v279_v60, %v183_v63 }
 0x118   :  { %3411 = vst [vmem:[#allocation40_spill] sm:$0xff] %v2672_v0 }
 0x119   :  { %3412 = vst [vmem:[#allocation41_spill] sm:$0xff] %v2674_v19 }
 0x11a   :  { %3413 = vst [vmem:[#allocation42_spill] sm:$0xff] %v2676_v45 }
 0x11b   :  { %v2678_v50 = vpop.f32.mrf.mxu3 }
 0x11d   :  { %v320_v31 = vpop.f32.mrf.mxu2 }
 0x11e   :  { %v2681_v11 = vadd.f32 %v320_v31, %v2667_v55  ;;  %v241_v47 = vpop.f32.mrf.mxu0  ;;  %v282_v14 = vpop.f32.mrf.mxu1 }
 0x11f   :  { %v2683_v38 = vadd.f32 %v241_v47, %v182_v36  ;;  %v2685_v62 = vadd.f32 %v282_v14, %v183_v63 }
 0x120   :  { %3414 = vst [vmem:[#allocation43_spill] sm:$0xff] %v2681_v11 }
 0x121   :  { %3415 = vst [vmem:[#allocation44_spill] sm:$0xff] %v2683_v38 }
 0x122   :  { %3416 = vst [vmem:[#allocation45_spill] sm:$0xff] %v2685_v62 }
 0x123   :  { %v358_v0 = vpop.f32.mrf.mxu3 }
 0x124   :  { %v2690_v60 = vadd.f32 %v358_v0, %v185_v12 }
 0x125   :  { %v323_v24 = vpop.f32.mrf.mxu2 }
 0x126   :  { %v2688_v15 = vadd.f32 %v323_v24, %v2667_v55  ;;  %3418 = vst [vmem:[#allocation47_spill] sm:$0xff] %v2690_v60  ;;  %v244_v45 = vpop.f32.mrf.mxu0  ;;  %v285_v19 = vpop.f32.mrf.mxu1 }
 0x127   :  { %v2692_v61 = vadd.f32 %v244_v45, %v182_v36  ;;  %v2694_v31 = vadd.f32 %v285_v19, %v183_v63 }
 0x128   :  { %3417 = vst [vmem:[#allocation46_spill] sm:$0xff] %v2688_v15 }
 0x129   :  { %3419 = vst [vmem:[#allocation48_spill] sm:$0xff] %v2692_v61 }
 0x12a   :  { %3420 = vst [vmem:[#allocation49_spill] sm:$0xff] %v2694_v31 }
 0x12b   :  { %v361_v43 = vpop.f32.mrf.mxu3 }
 0x12c   :  { %v2699_v14 = vadd.f32 %v361_v43, %v185_v12 }
 0x12d   :  { %v326_v11 = vpop.f32.mrf.mxu2 }
 0x12e   :  { %v2697_v47 = vadd.f32 %v326_v11, %v2667_v55  ;;  %3422 = vst [vmem:[#allocation51_spill] sm:$0xff] %v2699_v14  ;;  %v247_v49 = vpop.f32.mrf.mxu0  ;;  %v288_v62 = vpop.f32.mrf.mxu1 }
 0x12f   :  { %v2701_v38 = vadd.f32 %v247_v49, %v182_v36  ;;  %v2703_v24 = vadd.f32 %v288_v62, %v183_v63 }
 0x130   :  { %3421 = vst [vmem:[#allocation50_spill] sm:$0xff] %v2697_v47  ;;  %v274_v47 = vadd.f32 %v273_v33, %v183_v63 }
 0x131   :  { %3423 = vst [vmem:[#allocation52_spill] sm:$0xff] %v2701_v38 }
 0x132   :  { %3424 = vst [vmem:[#allocation53_spill] sm:$0xff] %v2703_v24 }
 0x133   :  { %v364_v15 = vpop.f32.mrf.mxu3 }
 0x134   :  { %v2708_v19 = vadd.f32 %v364_v15, %v185_v12  ;;  %v233_v15 = vadd.f32 %v232_v27, %v182_v36 }
 0x135   :  { %v329_v0 = vpop.f32.mrf.mxu2 }
 0x136   :  { %v2706_v45 = vadd.f32 %v329_v0, %v2667_v55  ;;  %3426 = vst [vmem:[#allocation55_spill] sm:$0xff] %v2708_v19  ;;  %v250_v31 = vpop.f32.mrf.mxu0  ;;  %v480_v11 = vpop.f32.mrf.mxu1 }
 0x137   :  { %v2710_v61 = vadd.f32 %v250_v31, %v182_v36  ;;  %v524_v43 = vadd.f32 %v480_v11, %v274_v47 }
 0x138   :  { %3425 = vst [vmem:[#allocation54_spill] sm:$0xff] %v2706_v45 }
 0x139   :  { %3427 = vst [vmem:[#allocation56_spill] sm:$0xff] %v2710_v61  ;;  %v1809_v38 = vmul.f32 -1.442695, %v524_v43 }
 0x13b   :  { %v367_v60 = vpop.f32.mrf.mxu3  ;;  %1861 = vpow2.f32 %v1809_v38 }
 0x13c   :  { %v2715_v62 = vadd.f32 %v367_v60, %v185_v12 }
 0x13d   :  { %v332_v14 = vpop.f32.mrf.mxu2 }
 0x13e   :  { %v2713_v49 = vadd.f32 %v332_v14, %v2667_v55  ;;  %3429 = vst [vmem:[#allocation58_spill] sm:$0xff] %v2715_v62  ;;  %v253_v24 = vpop.f32.mrf.mxu0 }
 0x13f   :  { %v2717_v17 = vadd.f32 %v253_v24, %v182_v36 }
 0x140   :  { %3428 = vst [vmem:[#allocation57_spill] sm:$0xff] %v2713_v49 }
 0x141   :  { %3430 = vst [vmem:[#allocation59_spill] sm:$0xff] %v2717_v17  ;;  %v1862_v11 = vpop.eup %1861 }
 0x142   :  { %v549_v60 = vadd.f32 1.0, %v1862_v11 }
 0x144   :  { %v370_v45 = vpop.f32.mrf.mxu3  ;;  %vm555_vm13 = vweird.f32 %v549_v60 }
 0x145   :  { %v335_v0 = vpop.f32.mrf.mxu2  ;;  %v2722_v33 = vadd.f32 %v370_v45, %v185_v12 }
 0x146   :  { %v2720_v31 = vadd.f32 %v335_v0, %v2667_v55  ;;  %v460_v63 = vpop.f32.mrf.mxu0 }
 0x147   :  { %3432 = vst [vmem:[#allocation61_spill] sm:$0xff] %v2722_v33  ;;  %v523_v47 = vadd.f32 %v460_v63, %v233_v15  ;;  %v356_v15 = vadd.f32 %v2678_v50, %v185_v12  ;;  %v561_v50 = vand.u32 2147483648, %v549_v60 }
 0x148   :  { %3431 = vst [vmem:[#allocation60_spill] sm:$0xff] %v2720_v31 }
 0x149   :  { %v1808_v14 = vmul.f32 -1.442695, %v523_v47 }
 0x14b   :  { %1863 = vpow2.f32 %v1808_v14 }
 0x14c   :  { %v373_v49 = vpop.f32.mrf.mxu3  ;;  %1865 = vrcp.f32 %v549_v60 }
 0x14d   :  { %v2724_v61 = vadd.f32 %v373_v49, %v185_v12  ;;  %v500_v17 = vpop.f32.mrf.mxu2 }
 0x14f   :  { %3433 = vst [vmem:[#allocation62_spill] sm:$0xff] %v2724_v61  ;;  %v315_v61 = vadd.f32 %v2659_v29, %v2667_v55  ;;  %v562_v29 = vor.u32 1.1754944e-38, %v561_v50 }
 0x151   :  { %v1864_v24 = vpop.eup %1863  ;;  %v525_v62 = vadd.f32 %v500_v17, %v315_v61 }
 0x152   :  { %v530_v38 = vadd.f32 1.0, %v1864_v24  ;;  %v1866_v27 = vpop.eup %1865 }
 0x153   :  { %v551_v0 = vmul.f32 %v1866_v27, %v549_v60  ;;  %vm556_vm11 = vweird.f32 %v1866_v27 }
 0x154   :  { %1867 = vrcp.f32 %v530_v38  ;;  %v376_v36 = vpop.f32.mrf.mxu3  ;;  %vm536_vm10 = vweird.f32 %v530_v38  ;;  %v540_v19 = vand.u32 2147483647, %v530_v38  ;;  %vm557_vm14 = vmor %vm555_vm13, %vm556_vm11 }
 0x155   :  { %v2726_v43 = vadd.f32 %v376_v36, %v185_v12  ;;  %v552_v63 = vsub.f32 1.0, %v551_v0 }
 0x156   :  { %vm541_vm15 = vcmp.eq.f32.partialorder %v540_v19, 8.507059e+37 }
 0x157   :  { %3434 = vst [vmem:[#allocation63_spill] sm:$0xff] %v2726_v43  ;;  %v553_v33 = vmul.f32 %v1866_v27, %v552_v63  ;;  %v542_v43 = vand.u32 2147483648, %v530_v38 }
 0x159   :  { %v554_v34 = vadd.f32 %v1866_v27, %v553_v33 }
 0x15a   :  { %v1868_v45 = vpop.eup %1867 }
 0x15b   :  { %v532_v31 = vmul.f32 %v1868_v45, %v530_v38  ;;  %vm537_vm9 = vweird.f32 %v1868_v45  ;;  %v558_v55 = vsel %vm557_vm14, %v1866_v27, %v554_v34 }
 0x15c   :  { %v520_v14 = vpop.f32.mrf.mxu3  ;;  %vm538_vm12 = vmor %vm536_vm10, %vm537_vm9 }
 0x15d   :  { %v533_v47 = vsub.f32 1.0, %v532_v31  ;;  %v526_v11 = vadd.f32 %v520_v14, %v356_v15  ;;  %v559_v31 = vand.u32 2147483647, %v549_v60  ;;  %v543_v15 = vor.u32 1.1754944e-38, %v542_v43 }
 0x15f   :  { %v534_v49 = vmul.f32 %v1868_v45, %v533_v47  ;;  %v1810_v24 = vmul.f32 -1.442695, %v526_v11  ;;  %vm560_vm0 = vcmp.eq.f32.partialorder %v559_v31, 8.507059e+37 }
 0x160   :  { %v563_v38 = vsel %vm560_vm0, %v562_v29, %v558_v55  ;;  %v3463_v29 = vld [vmem:[#allocation40_spill] sm:$0xff] }
 0x161   :  { %1869 = vpow2.f32 %v1810_v24  ;;  %v535_v36 = vadd.f32 %v1868_v45, %v534_v49  ;;  %v585_v47 = vmul.f32 0.0, %v563_v38 }
 0x162   :  { %1871 = vtanh.f32 %v525_v62 }
 0x163   :  { %v539_v12 = vsel %vm538_vm12, %v1868_v45, %v535_v36 }
 0x164   :  { %v544_v61 = vsel %vm541_vm15, %v543_v15, %v539_v12  ;;  %v3435_v12 = vld [vmem:[#allocation10_spill] sm:$0xff] }
 0x167   :  { %v1870_v0 = vpop.eup %1869 }
 0x168   :  { %v569_v17 = vadd.f32 1.0, %v1870_v0  ;;  %v1872_v63 = vpop.eup %1871 }
 0x169   :  { %v586_v33 = vmul.f32 %v1872_v63, %v544_v61 }
 0x16a   :  { %1873 = vrcp.f32 %v569_v17  ;;  %v581_v60 = vand.u32 2147483648, %v569_v17  ;;  %v579_v34 = vand.u32 2147483647, %v569_v17  ;;  %vm575_vm2 = vweird.f32 %v569_v17 }
 0x16b   :  { %v2731_v11 = vadd.f32 %v586_v33, %v585_v47 }
 0x16c   :  { %v582_v27 = vor.u32 1.1754944e-38, %v581_v60  ;;  %vm580_vm4 = vcmp.eq.f32.partialorder %v579_v34, 8.507059e+37 }
 0x16d   :  { %1875 = vtanh.f32 %v2731_v11 }
 0x170   :  { %v1874_v14 = vpop.eup %1873 }
 0x171   :  { %v571_v62 = vmul.f32 %v1874_v14, %v569_v17  ;;  %vm576_vm1 = vweird.f32 %v1874_v14 }
 0x172   :  { %vm577_vm3 = vmor %vm575_vm2, %vm576_vm1 }
 0x173   :  { %v572_v45 = vsub.f32 1.0, %v571_v62  ;;  %v1876_v24 = vpop.eup %1875 }
 0x175   :  { %v573_v43 = vmul.f32 %v1874_v14, %v572_v45 }
 0x177   :  { %v574_v19 = vadd.f32 %v1874_v14, %v573_v43 }
 0x179   :  { %v578_v49 = vsel %vm577_vm3, %v1874_v14, %v574_v19 }
 0x17a   :  { %v583_v36 = vsel %vm580_vm4, %v582_v27, %v578_v49 }
 0x17b   :  { %v589_v50 = vmul.f32 %v1876_v24, %v583_v36 }
 0x17d   :  { %606 = vmatmul.f32.vlgmr.msra.gmra.mxu0 %v589_v50  ;;  %626 = vmatmul.f32.vlgmr.msra.gmra.mxu1 %v589_v50 }
 0x17e   :  { %646 = vmatmul.f32.vlgmr.msra.gmra.mxu2 %v589_v50  ;;  %666 = vmatmul.f32.vlgmr.msrb.gmra.mxu3 %v589_v50 }
 0x17f   :  { %884 = vmatpush.msra.mxu0 %v2246_v41  ;;  %904 = vmatpush.msra.mxu1 %v3435_v12  ;;  %v3436_v41 = vld [vmem:[#allocation20_spill] sm:$0xff] }
 0x180   :  { %924 = vmatpush.msra.mxu2 %v2272_v53  ;;  %944 = vmatpush.msrb.mxu3 %v2301_v1  ;;  %v3441_v53 = vld [vmem:[#allocation16_spill] sm:$0xff]  ;;  %v3447_v1 = vld [vmem:[#allocation34_spill] sm:$0xff] }
 0x181   :  { %885 = vmatpush.msra.mxu0 %v2249_v44  ;;  %905 = vmatpush.msra.mxu1 %v3404_v51  ;;  %v3437_v44 = vld [vmem:[#allocation15_spill] sm:$0xff] }
 0x182   :  { %925 = vmatpush.msra.mxu2 %v2285_v58  ;;  %945 = vmatpush.msrb.mxu3 %v2313_v3  ;;  %v3445_v58 = vld [vmem:[#allocation17_spill] sm:$0xff]  ;;  %v3449_v3 = vld [vmem:[#allocation18_spill] sm:$0xff] }
 0x183   :  { %886 = vmatpush.msra.mxu0 %v2254_v46  ;;  %906 = vmatpush.msra.mxu1 %v3405_v40  ;;  %v3438_v46 = vld [vmem:[#allocation23_spill] sm:$0xff] }
 0x184   :  { %926 = vmatpush.msra.mxu2 %v2317_v5  ;;  %946 = vmatpush.msrb.mxu3 %v2320_v6  ;;  %v3451_v5 = vld [vmem:[#allocation35_spill] sm:$0xff]  ;;  %v3452_v6 = vld [vmem:[#allocation30_spill] sm:$0xff] }
 0x185   :  { %887 = vmatpush.msra.mxu0 %v2260_v48  ;;  %907 = vmatpush.msra.mxu1 %v3406_v13  ;;  %v3439_v48 = vld [vmem:[#allocation25_spill] sm:$0xff] }
 0x186   :  { %927 = vmatpush.msra.mxu2 %v2329_v9  ;;  %947 = vmatpush.msrb.mxu3 %v2347_v16  ;;  %v3455_v9 = vld [vmem:[#allocation37_spill] sm:$0xff] }
 0x187   :  { %888 = vmatpush.msra.mxu0 %v2274_v54  ;;  %908 = vmatpush.msra.mxu1 %v2270_v52  ;;  %v3440_v52 = vld [vmem:[#allocation22_spill] sm:$0xff]  ;;  %v3442_v54 = vld [vmem:[#allocation24_spill] sm:$0xff]  ;;  %v3457_v16 = vld [vmem:[#allocation21_spill] sm:$0xff] }
 0x188   :  { %928 = vmatpush.msra.mxu2 %v2363_v20  ;;  %948 = vmatpush.msrb.mxu3 %v2359_v18  ;;  %v3458_v18 = vld [vmem:[#allocation36_spill] sm:$0xff]  ;;  %v3459_v20 = vld [vmem:[#allocation38_spill] sm:$0xff] }
 0x189   :  { %889 = vmatpush.msra.mxu0 %v2287_v59  ;;  %909 = vmatpush.msra.mxu1 %v2280_v56  ;;  %v3443_v56 = vld [vmem:[#allocation29_spill] sm:$0xff]  ;;  %v3446_v59 = vld [vmem:[#allocation28_spill] sm:$0xff] }
 0x18a   :  { %929 = vmatpush.msra.mxu2 %v2370_v22  ;;  %949 = vmatpush.msrb.mxu3 %v2372_v23  ;;  %v3460_v23 = vld [vmem:[#allocation12_spill] sm:$0xff] }
 0x18b   :  { %890 = vmatpush.msra.mxu0 %v2323_v7  ;;  %910 = vmatpush.msra.mxu1 %v2283_v57  ;;  %v3444_v57 = vld [vmem:[#allocation26_spill] sm:$0xff]  ;;  %v3453_v7 = vld [vmem:[#allocation19_spill] sm:$0xff] }
 0x18c   :  { %930 = vmatpush.msra.mxu2 %v2380_v25  ;;  %950 = vmatpush.msrb.mxu3 %v2391_v28 }
 0x18d   :  { %891 = vmatpush.msra.mxu0 %v2331_v10  ;;  %911 = vmatpush.msra.mxu1 %v2303_v2  ;;  %v3448_v2 = vld [vmem:[#allocation27_spill] sm:$0xff]  ;;  %v3456_v10 = vld [vmem:[#allocation32_spill] sm:$0xff] }
 0x18e   :  { %931 = vmatpush.msra.mxu2 %v2400_v30  ;;  %951 = vmatpush.msrb.mxu3 %v2406_v32 }
 0x18f   :  { %892 = vmatpush.msra.mxu0 %v2368_v21  ;;  %912 = vmatpush.msra.mxu1 %v2315_v4  ;;  %v3450_v4 = vld [vmem:[#allocation31_spill] sm:$0xff] }
 0x190   :  { %932 = vmatpush.msra.mxu2 %v2415_v35  ;;  %952 = vmatpush.msrb.mxu3 %v2420_v37  ;;  %v3462_v37 = vld [vmem:[#allocation47_spill] sm:$0xff] }
 0x191   :  { %893 = vmatpush.msra.mxu0 %v2382_v26  ;;  %913 = vmatpush.msra.mxu1 %v2327_v8  ;;  %v3454_v8 = vld [vmem:[#allocation33_spill] sm:$0xff] }
 0x192   :  { %933 = vmatpush.msra.mxu2 %v2427_v39  ;;  %953 = vmatpush.msrb.mxu3 %v2437_v42  ;;  %v3461_v26 = vld [vmem:[#allocation13_spill] sm:$0xff] }
 0x193   :  { %894 = vmatpush.msra.mxu0 %v3436_v41  ;;  %914 = vmatpush.msra.mxu1 %v3437_v44 }
 0x194   :  { %934 = vmatpush.msra.mxu2 %v3438_v46  ;;  %954 = vmatpush.msrb.mxu3 %v3439_v48 }
 0x195   :  { %895 = vmatpush.msra.mxu0 %v3440_v52  ;;  %915 = vmatpush.msra.mxu1 %v3441_v53 }
 0x196   :  { %935 = vmatpush.msra.mxu2 %v3442_v54  ;;  %955 = vmatpush.msrb.mxu3 %v3443_v56 }
 0x197   :  { %896 = vmatpush.msra.mxu0 %v3444_v57  ;;  %916 = vmatpush.msra.mxu1 %v3445_v58 }
 0x198   :  { %936 = vmatpush.msra.mxu2 %v3446_v59  ;;  %956 = vmatpush.msrb.mxu3 %v3447_v1 }
 0x199   :  { %897 = vmatpush.msra.mxu0 %v3448_v2  ;;  %917 = vmatpush.msra.mxu1 %v3449_v3 }
 0x19a   :  { %937 = vmatpush.msra.mxu2 %v3450_v4  ;;  %957 = vmatpush.msrb.mxu3 %v3451_v5 }
 0x19b   :  { %898 = vmatpush.msra.mxu0 %v3452_v6  ;;  %918 = vmatpush.msra.mxu1 %v3453_v7 }
 0x19c   :  { %938 = vmatpush.msra.mxu2 %v3454_v8  ;;  %958 = vmatpush.msrb.mxu3 %v3455_v9 }
 0x19d   :  { %899 = vmatpush.msra.mxu0 %v3456_v10  ;;  %919 = vmatpush.msra.mxu1 %v3457_v16 }
 0x19e   :  { %939 = vmatpush.msra.mxu2 %v3458_v18  ;;  %959 = vmatpush.msrb.mxu3 %v3459_v20 }
 0x1fa   :  { %v607_v21 = vpop.f32.mrf.mxu0  ;;  %v627_v22 = vpop.f32.mrf.mxu1 }
 0x1fb   :  { %v670_v25 = vadd.f32 %v607_v21, %v3460_v23  ;;  %v671_v28 = vadd.f32 %v627_v22, %v3461_v26  ;;  %v2812_v26 = vld [vmem:[#allocation5 + $0x1f0] sm:$0xff] }
 0x1fd   :  { %v1811_v30 = vmul.f32 -1.442695, %v670_v25  ;;  %v1812_v32 = vmul.f32 -1.442695, %v671_v28  ;;  %v2809_v25 = vld [vmem:[#allocation5 + $0x1e8] sm:$0xff]  ;;  %v2815_v28 = vld [vmem:[#allocation5 + $0x1f8] sm:$0xff] }
 0x1ff   :  { %1877 = vpow2.f32 %v1811_v30  ;;  %v2818_v30 = vld [vmem:[#allocation5 + $0x1c0] sm:$0xff] }
 0x200   :  { %1879 = vpow2.f32 %v1812_v32  ;;  %v2821_v32 = vld [vmem:[#allocation5 + $0x1c8] sm:$0xff] }
 0x201   :  { %v667_v35 = vpop.f32.mrf.mxu3  ;;  %v647_v0 = vpop.f32.mrf.mxu2 }
 0x202   :  { %v673_v39 = vadd.f32 %v667_v35, %v3462_v37  ;;  %v672_v61 = vadd.f32 %v647_v0, %v3463_v29  ;;  %v2824_v35 = vld [vmem:[#allocation5 + $0x1d0] sm:$0xff]  ;;  %v2827_v37 = vld [vmem:[#allocation5 + $0x1d8] sm:$0xff] }
 0x203   :  { %v2848_v0 = vld [vmem:[#allocation5 + $0x190] sm:$0xff] }
 0x204   :  { %v1813_v42 = vmul.f32 -1.442695, %v673_v39  ;;  %v2830_v39 = vld [vmem:[#allocation5 + $0x1a0] sm:$0xff]  ;;  %v2860_v29 = vld [vmem:[#allocation5 + $0x170] sm:$0xff] }
 0x205   :  { %v1878_v40 = vpop.eup %1877 }
 0x206   :  { %v1880_v51 = vpop.eup %1879  ;;  %v677_v13 = vadd.f32 1.0, %v1878_v40  ;;  %1881 = vpow2.f32 %v1813_v42  ;;  %v2833_v42 = vld [vmem:[#allocation5 + $0x1a8] sm:$0xff]  ;;  %v2836_v40 = vld [vmem:[#allocation5 + $0x1b0] sm:$0xff] }
 0x207   :  { %v696_v31 = vadd.f32 1.0, %v1880_v51  ;;  %v2839_v51 = vld [vmem:[#allocation5 + $0x1b8] sm:$0xff] }
 0x208   :  { %1883 = vrcp.f32 %v677_v13  ;;  %v689_v62 = vand.u32 2147483648, %v677_v13  ;;  %v687_v43 = vand.u32 2147483647, %v677_v13  ;;  %vm683_vm7 = vweird.f32 %v677_v13 }
 0x209   :  { %1885 = vrcp.f32 %v696_v31  ;;  %v708_v45 = vand.u32 2147483648, %v696_v31  ;;  %v706_v19 = vand.u32 2147483647, %v696_v31  ;;  %vm702_vm8 = vweird.f32 %v696_v31 }
 0x20a   :  { %v690_v24 = vor.u32 1.1754944e-38, %v689_v62  ;;  %vm688_vm11 = vcmp.eq.f32.partialorder %v687_v43, 8.507059e+37  ;;  %v2881_v62 = vld [vmem:[#allocation5 + $0x128] sm:$0xff]  ;;  %v2890_v43 = vld [vmem:[#allocation5 + $0x100] sm:$0xff] }
 0x20b   :  { %v709_v12 = vor.u32 1.1754944e-38, %v708_v45  ;;  %vm707_vm12 = vcmp.eq.f32.partialorder %v706_v19, 8.507059e+37  ;;  %v2884_v45 = vld [vmem:[#allocation5 + $0x130] sm:$0xff] }
 0x20c   :  { %v1882_v15 = vpop.eup %1881  ;;  %v2896_v19 = vld [vmem:[#allocation5 + $0x110] sm:$0xff] }
 0x20d   :  { %v716_v55 = vadd.f32 1.0, %v1882_v15  ;;  %v2851_v15 = vld [vmem:[#allocation5 + $0x198] sm:$0xff] }
 0x20e   :  { %v1884_v17 = vpop.eup %1883 }
 0x20f   :  { %v1886_v63 = vpop.eup %1885  ;;  %v679_v38 = vmul.f32 %v1884_v17, %v677_v13  ;;  %1887 = vrcp.f32 %v716_v55  ;;  %vm684_vm5 = vweird.f32 %v1884_v17  ;;  %v728_v3 = vand.u32 2147483648, %v716_v55  ;;  %v2842_v13 = vld [vmem:[#allocation5 + $0x180] sm:$0xff] }
 0x210   :  { %v698_v33 = vmul.f32 %v1886_v63, %v696_v31  ;;  %1889 = vtanh.f32 %v672_v61  ;;  %vm703_vm6 = vweird.f32 %v1886_v63  ;;  %vm685_vm9 = vmor %vm683_vm7, %vm684_vm5  ;;  %vm722_vm14 = vweird.f32 %v716_v55  ;;  %v2845_v31 = vld [vmem:[#allocation5 + $0x188] sm:$0xff]  ;;  %v2863_v61 = vld [vmem:[#allocation5 + $0x178] sm:$0xff] }
 0x211   :  { %v680_v47 = vsub.f32 1.0, %v679_v38  ;;  %vm704_vm10 = vmor %vm702_vm8, %vm703_vm6  ;;  %v726_v6 = vand.u32 2147483647, %v716_v55  ;;  %v729_v16 = vor.u32 1.1754944e-38, %v728_v3  ;;  %v2869_v38 = vld [vmem:[#allocation5 + $0x148] sm:$0xff]  ;;  %v2948_v3 = vld [vmem:[#allocation5 + $0x60] sm:$0xff] }
 0x212   :  { %v699_v14 = vsub.f32 1.0, %v698_v33  ;;  %v2872_v33 = vld [vmem:[#allocation5 + $0x150] sm:$0xff]  ;;  %3473 = vst [vmem:[#allocation26_spill] sm:$0xff] %v2948_v3 }
 0x213   :  { %v681_v60 = vmul.f32 %v1884_v17, %v680_v47  ;;  %vm727_vm0 = vcmp.eq.f32.partialorder %v726_v6, 8.507059e+37  ;;  %v2875_v47 = vld [vmem:[#allocation5 + $0x158] sm:$0xff]  ;;  %v2951_v6 = vld [vmem:[#allocation5 + $0x68] sm:$0xff] }
 0x214   :  { %v700_v34 = vmul.f32 %v1886_v63, %v699_v14  ;;  %v2878_v14 = vld [vmem:[#allocation5 + $0x120] sm:$0xff]  ;;  %3474 = vst [vmem:[#allocation17_spill] sm:$0xff] %v2951_v6 }
 0x215   :  { %v1888_v27 = vpop.eup %1887  ;;  %v682_v49 = vadd.f32 %v1884_v17, %v681_v60  ;;  %v2887_v60 = vld [vmem:[#allocation5 + $0x138] sm:$0xff] }
 0x216   :  { %v701_v36 = vadd.f32 %v1886_v63, %v700_v34  ;;  %v718_v50 = vmul.f32 %v1888_v27, %v716_v55  ;;  %v1890_v44 = vpop.eup %1889  ;;  %vm723_vm13 = vweird.f32 %v1888_v27  ;;  %v2854_v55 = vld [vmem:[#allocation5 + $0x160] sm:$0xff]  ;;  %v2893_v34 = vld [vmem:[#allocation5 + $0x108] sm:$0xff] }
 0x217   :  { %v686_v41 = vsel %vm685_vm9, %v1884_v17, %v682_v49  ;;  %vm724_vm15 = vmor %vm722_vm14, %vm723_vm13  ;;  %v2857_v17 = vld [vmem:[#allocation5 + $0x168] sm:$0xff]  ;;  %v2902_v49 = vld [vmem:[#allocation5 + $0xe0] sm:$0xff] }
 0x218   :  { %v691_v46 = vsel %vm688_vm11, %v690_v24, %v686_v41  ;;  %v705_v48 = vsel %vm704_vm10, %v1886_v63, %v701_v36  ;;  %v719_v52 = vsub.f32 1.0, %v718_v50  ;;  %v2866_v63 = vld [vmem:[#allocation5 + $0x140] sm:$0xff]  ;;  %v2905_v24 = vld [vmem:[#allocation5 + $0xe8] sm:$0xff]  ;;  %v2908_v36 = vld [vmem:[#allocation5 + $0xf0] sm:$0xff] }
 0x219   :  { %v710_v53 = vsel %vm707_vm12, %v709_v12, %v705_v48  ;;  %v733_v54 = vmul.f32 %v1890_v44, %v691_v46  ;;  %v2911_v50 = vld [vmem:[#allocation5 + $0xf8] sm:$0xff]  ;;  %v2914_v12 = vld [vmem:[#allocation5 + $0xc0] sm:$0xff]  ;;  %v2917_v41 = vld [vmem:[#allocation5 + $0xc8] sm:$0xff] }
 0x21a   :  { %v732_v57 = vmul.f32 %v710_v53, %v2731_v11  ;;  %v720_v58 = vmul.f32 %v1888_v27, %v719_v52  ;;  %v2806_v11 = vld [vmem:[#allocation5 + $0x1e0] sm:$0xff]  ;;  %v2920_v44 = vld [vmem:[#allocation5 + $0xd0] sm:$0xff]  ;;  %v2923_v46 = vld [vmem:[#allocation5 + $0xd8] sm:$0xff] }
 0x21b   :  { %3464 = vst [vmem:[#allocation10_spill] sm:$0xff] %v2920_v44  ;;  %v2926_v48 = vld [vmem:[#allocation5 + $0xa0] sm:$0xff]  ;;  %v2929_v52 = vld [vmem:[#allocation5 + $0xa8] sm:$0xff]  ;;  %v2932_v53 = vld [vmem:[#allocation5 + $0xb0] sm:$0xff] }
 0x21c   :  { %v2803_v59 = vadd.f32 %v733_v54, %v732_v57  ;;  %v721_v2 = vadd.f32 %v1888_v27, %v720_v58  ;;  %3465 = vst [vmem:[#allocation20_spill] sm:$0xff] %v2923_v46  ;;  %v2935_v54 = vld [vmem:[#allocation5 + $0xb8] sm:$0xff]  ;;  %v2938_v57 = vld [vmem:[#allocation5 + $0x80] sm:$0xff]  ;;  %v2941_v58 = vld [vmem:[#allocation5 + $0x88] sm:$0xff] }
 0x21d   :  { %3466 = vst [vmem:[#allocation15_spill] sm:$0xff] %v2926_v48 }
 0x21e   :  { %1891 = vtanh.f32 %v2803_v59  ;;  %v725_v7 = vsel %vm724_vm15, %v1888_v27, %v721_v2  ;;  %v2899_v27 = vld [vmem:[#allocation5 + $0x118] sm:$0xff]  ;;  %3467 = vst [vmem:[#allocation23_spill] sm:$0xff] %v2929_v52  ;;  %v2944_v2 = vld [vmem:[#allocation5 + $0x90] sm:$0xff] }
 0x21f   :  { %v730_v22 = vsel %vm727_vm0, %v729_v16, %v725_v7  ;;  %3468 = vst [vmem:[#allocation25_spill] sm:$0xff] %v2932_v53  ;;  %v2954_v7 = vld [vmem:[#allocation5 + $0x70] sm:$0xff]  ;;  %v2958_v16 = vld [vmem:[#allocation5 + $0x40] sm:$0xff] }
 0x220   :  { %3469 = vst [vmem:[#allocation22_spill] sm:$0xff] %v2935_v54 }
 0x221   :  { %3470 = vst [vmem:[#allocation16_spill] sm:$0xff] %v2938_v57 }
 0x222   :  { %3471 = vst [vmem:[#allocation24_spill] sm:$0xff] %v2941_v58 }
 0x223   :  { %3472 = vst [vmem:[#allocation29_spill] sm:$0xff] %v2944_v2 }
 0x224   :  { %v1892_v21 = vpop.eup %1891  ;;  %3475 = vst [vmem:[#allocation28_spill] sm:$0xff] %v2954_v7 }
 0x225   :  { %v736_v23 = vmul.f32 %v1892_v21, %v730_v22  ;;  %3476 = vst [vmem:[#allocation34_spill] sm:$0xff] %v2958_v16  ;;  %v2961_v21 = vld [vmem:[#allocation5 + $0x48] sm:$0xff] }
 0x226   :  { %3477 = vst [vmem:[#allocation27_spill] sm:$0xff] %v2961_v21  ;;  %v2969_v22 = vld [vmem:[#allocation5 + $0x28] sm:$0xff] }
 0x227   :  { %753 = vmatmul.f32.vlgmr.msrb.gmra.mxu0 %v736_v23  ;;  %773 = vmatmul.f32.vlgmr.msrb.gmra.mxu1 %v736_v23  ;;  %3479 = vst [vmem:[#allocation31_spill] sm:$0xff] %v2969_v22 }
 0x228   :  { %793 = vmatmul.f32.vlgmr.msrb.gmra.mxu2 %v736_v23  ;;  %813 = vmatmul.f32.vlgmr.msra.gmra.mxu3 %v736_v23  ;;  %v3481_v23 = vld [vmem:[#allocation41_spill] sm:$0xff] }
 0x229   :  { %1031 = vmatpush.msrb.mxu0 %v2806_v11  ;;  %1051 = vmatpush.msrb.mxu1 %v2809_v25 }
 0x22a   :  { %1071 = vmatpush.msrb.mxu2 %v2812_v26  ;;  %1091 = vmatpush.msra.mxu3 %v2815_v28 }
 0x22b   :  { %1032 = vmatpush.msrb.mxu0 %v2818_v30  ;;  %1052 = vmatpush.msrb.mxu1 %v2821_v32 }
 0x22c   :  { %1072 = vmatpush.msrb.mxu2 %v2824_v35  ;;  %1092 = vmatpush.msra.mxu3 %v2827_v37 }
 0x22d   :  { %1033 = vmatpush.msrb.mxu0 %v2830_v39  ;;  %1053 = vmatpush.msrb.mxu1 %v2833_v42 }
 0x22e   :  { %1073 = vmatpush.msrb.mxu2 %v2836_v40  ;;  %1093 = vmatpush.msra.mxu3 %v2839_v51 }
 0x22f   :  { %1034 = vmatpush.msrb.mxu0 %v2842_v13  ;;  %1054 = vmatpush.msrb.mxu1 %v2845_v31 }
 0x230   :  { %1074 = vmatpush.msrb.mxu2 %v2848_v0  ;;  %1094 = vmatpush.msra.mxu3 %v2851_v15 }
 0x231   :  { %1035 = vmatpush.msrb.mxu0 %v2854_v55  ;;  %1055 = vmatpush.msrb.mxu1 %v2857_v17 }
 0x232   :  { %1075 = vmatpush.msrb.mxu2 %v2860_v29  ;;  %1095 = vmatpush.msra.mxu3 %v2863_v61 }
 0x233   :  { %1036 = vmatpush.msrb.mxu0 %v2866_v63  ;;  %1056 = vmatpush.msrb.mxu1 %v2869_v38 }
 0x234   :  { %1076 = vmatpush.msrb.mxu2 %v2872_v33  ;;  %1096 = vmatpush.msra.mxu3 %v2875_v47 }
 0x235   :  { %1037 = vmatpush.msrb.mxu0 %v2878_v14  ;;  %1057 = vmatpush.msrb.mxu1 %v2881_v62 }
 0x236   :  { %1077 = vmatpush.msrb.mxu2 %v2884_v45  ;;  %1097 = vmatpush.msra.mxu3 %v2887_v60 }
 0x237   :  { %1038 = vmatpush.msrb.mxu0 %v2890_v43  ;;  %1058 = vmatpush.msrb.mxu1 %v2893_v34 }
 0x238   :  { %1078 = vmatpush.msrb.mxu2 %v2896_v19  ;;  %1098 = vmatpush.msra.mxu3 %v2899_v27 }
 0x239   :  { %1039 = vmatpush.msrb.mxu0 %v2902_v49  ;;  %1059 = vmatpush.msrb.mxu1 %v2905_v24 }
 0x23a   :  { %1079 = vmatpush.msrb.mxu2 %v2908_v36  ;;  %1099 = vmatpush.msra.mxu3 %v2911_v50 }
 0x23b   :  { %1040 = vmatpush.msrb.mxu0 %v2914_v12  ;;  %1060 = vmatpush.msrb.mxu1 %v2917_v41 }
 0x23c   :  { %1080 = vmatpush.msrb.mxu2 %v2920_v44  ;;  %1100 = vmatpush.msra.mxu3 %v2923_v46 }
 0x23d   :  { %1041 = vmatpush.msrb.mxu0 %v2926_v48  ;;  %1061 = vmatpush.msrb.mxu1 %v2929_v52 }
 0x23e   :  { %1081 = vmatpush.msrb.mxu2 %v2932_v53  ;;  %1101 = vmatpush.msra.mxu3 %v2935_v54 }
 0x23f   :  { %1042 = vmatpush.msrb.mxu0 %v2938_v57  ;;  %1062 = vmatpush.msrb.mxu1 %v2941_v58 }
 0x240   :  { %1082 = vmatpush.msrb.mxu2 %v2944_v2  ;;  %1102 = vmatpush.msra.mxu3 %v3443_v56  ;;  %v2966_v56 = vld [vmem:[#allocation5 + $0x20] sm:$0xff] }
 0x241   :  { %1043 = vmatpush.msrb.mxu0 %v2948_v3  ;;  %1063 = vmatpush.msrb.mxu1 %v2951_v6  ;;  %3478 = vst [vmem:[#allocation18_spill] sm:$0xff] %v2966_v56 }
 0x242   :  { %1083 = vmatpush.msrb.mxu2 %v2954_v7  ;;  %1103 = vmatpush.msra.mxu3 %v3447_v1  ;;  %v2975_v1 = vld [vmem:[#allocation5 + $0x8] sm:$0xff] }
 0x243   :  { %1044 = vmatpush.msrb.mxu0 %v2958_v16  ;;  %1064 = vmatpush.msrb.mxu1 %v2961_v21  ;;  %3480 = vst [vmem:[#allocation35_spill] sm:$0xff] %v2975_v1  ;;  %v3482_v21 = vld [vmem:[#allocation42_spill] sm:$0xff] }
 0x244   :  { %1084 = vmatpush.msrb.mxu2 %v3450_v4  ;;  %1104 = vmatpush.msra.mxu3 %v3451_v5 }
 0x245   :  { %1045 = vmatpush.msrb.mxu0 %v2966_v56  ;;  %1065 = vmatpush.msrb.mxu1 %v2969_v22 }
 0x246   :  { %1085 = vmatpush.msrb.mxu2 %v3454_v8  ;;  %1105 = vmatpush.msra.mxu3 %v3455_v9 }
 0x247   :  { %1046 = vmatpush.msrb.mxu0 %v3456_v10  ;;  %1066 = vmatpush.msrb.mxu1 %v2975_v1  ;;  %v3483_v10 = vld [vmem:[#allocation51_spill] sm:$0xff] }
 0x248   :  { %1086 = vmatpush.msrb.mxu2 %v3458_v18  ;;  %1106 = vmatpush.msra.mxu3 %v3459_v20 }
 0x2a4   :  { %v754_v4 = vpop.f32.mrf.mxu0  ;;  %v774_v5 = vpop.f32.mrf.mxu1 }
 0x2a5   :  { %v817_v56 = vadd.f32 %v754_v4, %v3481_v23  ;;  %v818_v22 = vadd.f32 %v774_v5, %v3482_v21  ;;  %v3484_v21 = vld [vmem:[#allocation43_spill] sm:$0xff] }
 0x2a7   :  { %v1814_v16 = vmul.f32 -1.442695, %v817_v56  ;;  %v1815_v8 = vmul.f32 -1.442695, %v818_v22 }
 0x2a9   :  { %1893 = vpow2.f32 %v1814_v16 }
 0x2aa   :  { %1895 = vpow2.f32 %v1815_v8 }
 0x2ab   :  { %v814_v9 = vpop.f32.mrf.mxu3  ;;  %v794_v20 = vpop.f32.mrf.mxu2 }
 0x2ac   :  { %v820_v7 = vadd.f32 %v814_v9, %v3483_v10  ;;  %v819_v56 = vadd.f32 %v794_v20, %v3484_v21 }
 0x2ae   :  { %v1816_v6 = vmul.f32 -1.442695, %v820_v7 }
 0x2af   :  { %v1894_v3 = vpop.eup %1893 }
 0x2b0   :  { %v1896_v1 = vpop.eup %1895  ;;  %v824_v2 = vadd.f32 1.0, %v1894_v3  ;;  %1897 = vpow2.f32 %v1816_v6 }
 0x2b1   :  { %v843_v18 = vadd.f32 1.0, %v1896_v1 }
 0x2b2   :  { %1899 = vrcp.f32 %v824_v2  ;;  %v836_v7 = vand.u32 2147483648, %v824_v2  ;;  %v834_v6 = vand.u32 2147483647, %v824_v2  ;;  %vm830_vm3 = vweird.f32 %v824_v2 }
 0x2b3   :  { %1901 = vrcp.f32 %v843_v18  ;;  %v855_v10 = vand.u32 2147483648, %v843_v18  ;;  %v853_v57 = vand.u32 2147483647, %v843_v18  ;;  %vm849_vm4 = vweird.f32 %v843_v18 }
 0x2b4   :  { %v837_v20 = vor.u32 1.1754944e-38, %v836_v7  ;;  %vm835_vm7 = vcmp.eq.f32.partialorder %v834_v6, 8.507059e+37 }
 0x2b5   :  { %vm854_vm8 = vcmp.eq.f32.partialorder %v853_v57, 8.507059e+37 }
 0x2b6   :  { %v1898_v58 = vpop.eup %1897 }
 0x2b7   :  { %v863_v4 = vadd.f32 1.0, %v1898_v58 }
 0x2b8   :  { %v1900_v23 = vpop.eup %1899 }
 0x2b9   :  { %v1902_v22 = vpop.eup %1901  ;;  %v826_v16 = vmul.f32 %v1900_v23, %v824_v2  ;;  %1903 = vrcp.f32 %v863_v4  ;;  %vm831_vm1 = vweird.f32 %v1900_v23  ;;  %v875_v7 = vand.u32 2147483648, %v863_v4 }
 0x2ba   :  { %v845_v5 = vmul.f32 %v1902_v22, %v843_v18  ;;  %1905 = vtanh.f32 %v819_v56  ;;  %vm850_vm2 = vweird.f32 %v1902_v22  ;;  %vm832_vm5 = vmor %vm830_vm3, %vm831_vm1  ;;  %vm869_vm10 = vweird.f32 %v863_v4 }
 0x2bb   :  { %v827_v8 = vsub.f32 1.0, %v826_v16  ;;  %vm851_vm6 = vmor %vm849_vm4, %vm850_vm2  ;;  %v856_v16 = vor.u32 1.1754944e-38, %v855_v10  ;;  %v876_v6 = vor.u32 1.1754944e-38, %v875_v7  ;;  %v3503_v7 = vld [vmem:[#allocation18_spill] sm:$0xff] }
 0x2bc   :  { %v846_v9 = vsub.f32 1.0, %v845_v5 }
 0x2bd   :  { %v828_v3 = vmul.f32 %v1900_v23, %v827_v8 }
 0x2be   :  { %v847_v1 = vmul.f32 %v1902_v22, %v846_v9 }
 0x2bf   :  { %v1904_v54 = vpop.eup %1903  ;;  %v829_v58 = vadd.f32 %v1900_v23, %v828_v3 }
 0x2c0   :  { %v848_v21 = vadd.f32 %v1902_v22, %v847_v1  ;;  %v865_v53 = vmul.f32 %v1904_v54, %v863_v4  ;;  %v1906_v56 = vpop.eup %1905  ;;  %vm870_vm9 = vweird.f32 %v1904_v54  ;;  %v3492_v1 = vld [vmem:[#allocation24_spill] sm:$0xff] }
 0x2c1   :  { %v833_v5 = vsel %vm832_vm5, %v1900_v23, %v829_v58  ;;  %v873_v23 = vand.u32 2147483647, %v863_v4  ;;  %vm871_vm11 = vmor %vm869_vm10, %vm870_vm9  ;;  %v3491_v4 = vld [vmem:[#allocation16_spill] sm:$0xff]  ;;  %v3493_v58 = vld [vmem:[#allocation29_spill] sm:$0xff] }
 0x2c2   :  { %v838_v52 = vsel %vm835_vm7, %v837_v20, %v833_v5  ;;  %v852_v8 = vsel %vm851_vm6, %v1902_v22, %v848_v21  ;;  %v866_v48 = vsub.f32 1.0, %v865_v53  ;;  %v3035_v20 = vld [vmem:[#allocation5 + $0x98] sm:$0xff]  ;;  %v3495_v21 = vld [vmem:[#allocation26_spill] sm:$0xff]  ;;  %v3497_v5 = vld [vmem:[#allocation28_spill] sm:$0xff] }
 0x2c3   :  { %v857_v9 = vsel %vm854_vm8, %v856_v16, %v852_v8  ;;  %v880_v46 = vmul.f32 %v1906_v56, %v838_v52  ;;  %vm874_vm12 = vcmp.eq.f32.partialorder %v873_v23, 8.507059e+37  ;;  %v3489_v52 = vld [vmem:[#allocation25_spill] sm:$0xff]  ;;  %3494 = vst [vmem:[#allocation30_spill] sm:$0xff] %v3035_v20  ;;  %v3499_v8 = vld [vmem:[#allocation34_spill] sm:$0xff]  ;;  %v3504_v23 = vld [vmem:[#allocation31_spill] sm:$0xff] }
 0x2c4   :  { %v879_v44 = vmul.f32 %v857_v9, %v2803_v59  ;;  %v867_v3 = vmul.f32 %v1904_v54, %v866_v48  ;;  %v3485_v59 = vld [vmem:[#allocation10_spill] sm:$0xff]  ;;  %v3488_v48 = vld [vmem:[#allocation23_spill] sm:$0xff]  ;;  %v3496_v16 = vld [vmem:[#allocation17_spill] sm:$0xff] }
 0x2c5   :  { %v3041_v56 = vld [vmem:[#allocation5 + $0x78] sm:$0xff]  ;;  %v3500_v9 = vld [vmem:[#allocation27_spill] sm:$0xff] }
 0x2c6   :  { %v2985_v2 = vadd.f32 %v880_v46, %v879_v44  ;;  %v868_v18 = vadd.f32 %v1904_v54, %v867_v3  ;;  %v3486_v44 = vld [vmem:[#allocation20_spill] sm:$0xff]  ;;  %v3487_v46 = vld [vmem:[#allocation15_spill] sm:$0xff]  ;;  %3498 = vst [vmem:[#allocation19_spill] sm:$0xff] %v3041_v56 }
 0x2c7   :  { %v3046_v3 = vld [vmem:[#allocation5 + $0x50] sm:$0xff] }
 0x2c8   :  { %1907 = vtanh.f32 %v2985_v2  ;;  %v872_v10 = vsel %vm871_vm11, %v1904_v54, %v868_v18  ;;  %v3490_v54 = vld [vmem:[#allocation22_spill] sm:$0xff]  ;;  %3501 = vst [vmem:[#allocation33_spill] sm:$0xff] %v3046_v3  ;;  %v3049_v18 = vld [vmem:[#allocation5 + $0x58] sm:$0xff] }
 0x2c9   :  { %v877_v53 = vsel %vm874_vm12, %v876_v6, %v872_v10  ;;  %3502 = vst [vmem:[#allocation37_spill] sm:$0xff] %v3049_v18  ;;  %v3054_v10 = vld [vmem:[#allocation5 + $0x30] sm:$0xff]  ;;  %v3057_v6 = vld [vmem:[#allocation5 + $0x38] sm:$0xff] }
 0x2ca   :  { %3505 = vst [vmem:[#allocation32_spill] sm:$0xff] %v3054_v10 }
 0x2cb   :  { %3506 = vst [vmem:[#allocation21_spill] sm:$0xff] %v3057_v6 }
 0x2ce   :  { %v1908_v57 = vpop.eup %1907 }
 0x2cf   :  { %v883_v22 = vmul.f32 %v1908_v57, %v877_v53  ;;  %v3060_v57 = vld [vmem:[#allocation5] sm:$0xff]  ;;  %v3508_v53 = vld [vmem:[#allocation35_spill] sm:$0xff] }
 0x2d0   :  { %3507 = vst [vmem:[#allocation36_spill] sm:$0xff] %v3060_v57 }
 0x2d1   :  { %900 = vmatmul.f32.vlgmr.msra.gmra.mxu0 %v883_v22  ;;  %920 = vmatmul.f32.vlgmr.msra.gmra.mxu1 %v883_v22 }
 0x2d2   :  { %940 = vmatmul.f32.vlgmr.msra.gmra.mxu2 %v883_v22  ;;  %960 = vmatmul.f32.vlgmr.msrb.gmra.mxu3 %v883_v22  ;;  %v3064_v22 = vld [vmem:[#allocation5 + $0x10] sm:$0xff] }
 0x2d3   :  { %1178 = vmatpush.msra.mxu0 %v2806_v11  ;;  %1198 = vmatpush.msra.mxu1 %v2809_v25  ;;  %3509 = vst [vmem:[#allocation38_spill] sm:$0xff] %v3064_v22 }
 0x2d4   :  { %1218 = vmatpush.msra.mxu2 %v2812_v26  ;;  %1238 = vmatpush.msrb.mxu3 %v2815_v28 }
 0x2d5   :  { %1179 = vmatpush.msra.mxu0 %v2818_v30  ;;  %1199 = vmatpush.msra.mxu1 %v2821_v32 }
 0x2d6   :  { %1219 = vmatpush.msra.mxu2 %v2824_v35  ;;  %1239 = vmatpush.msrb.mxu3 %v2827_v37 }
 0x2d7   :  { %1180 = vmatpush.msra.mxu0 %v2830_v39  ;;  %1200 = vmatpush.msra.mxu1 %v2833_v42 }
 0x2d8   :  { %1220 = vmatpush.msra.mxu2 %v2836_v40  ;;  %1240 = vmatpush.msrb.mxu3 %v2839_v51 }
 0x2d9   :  { %1181 = vmatpush.msra.mxu0 %v2842_v13  ;;  %1201 = vmatpush.msra.mxu1 %v2845_v31 }
 0x2da   :  { %1221 = vmatpush.msra.mxu2 %v2848_v0  ;;  %1241 = vmatpush.msrb.mxu3 %v2851_v15 }
 0x2db   :  { %1182 = vmatpush.msra.mxu0 %v2854_v55  ;;  %1202 = vmatpush.msra.mxu1 %v2857_v17 }
 0x2dc   :  { %1222 = vmatpush.msra.mxu2 %v2860_v29  ;;  %1242 = vmatpush.msrb.mxu3 %v2863_v61 }
 0x2dd   :  { %1183 = vmatpush.msra.mxu0 %v2866_v63  ;;  %1203 = vmatpush.msra.mxu1 %v2869_v38 }
 0x2de   :  { %1223 = vmatpush.msra.mxu2 %v2872_v33  ;;  %1243 = vmatpush.msrb.mxu3 %v2875_v47 }
 0x2df   :  { %1184 = vmatpush.msra.mxu0 %v2878_v14  ;;  %1204 = vmatpush.msra.mxu1 %v2881_v62 }
 0x2e0   :  { %1224 = vmatpush.msra.mxu2 %v2884_v45  ;;  %1244 = vmatpush.msrb.mxu3 %v2887_v60 }
 0x2e1   :  { %1185 = vmatpush.msra.mxu0 %v2890_v43  ;;  %1205 = vmatpush.msra.mxu1 %v2893_v34 }
 0x2e2   :  { %1225 = vmatpush.msra.mxu2 %v2896_v19  ;;  %1245 = vmatpush.msrb.mxu3 %v2899_v27 }
 0x2e3   :  { %1186 = vmatpush.msra.mxu0 %v2902_v49  ;;  %1206 = vmatpush.msra.mxu1 %v2905_v24 }
 0x2e4   :  { %1226 = vmatpush.msra.mxu2 %v2908_v36  ;;  %1246 = vmatpush.msrb.mxu3 %v2911_v50 }
 0x2e5   :  { %1187 = vmatpush.msra.mxu0 %v2914_v12  ;;  %1207 = vmatpush.msra.mxu1 %v2917_v41 }
 0x2e6   :  { %1227 = vmatpush.msra.mxu2 %v3485_v59  ;;  %1247 = vmatpush.msrb.mxu3 %v3486_v44 }
 0x2e7   :  { %1188 = vmatpush.msra.mxu0 %v3487_v46  ;;  %1208 = vmatpush.msra.mxu1 %v3488_v48 }
 0x2e8   :  { %1228 = vmatpush.msra.mxu2 %v3489_v52  ;;  %1248 = vmatpush.msrb.mxu3 %v3490_v54 }
 0x2e9   :  { %1189 = vmatpush.msra.mxu0 %v3491_v4  ;;  %1209 = vmatpush.msra.mxu1 %v3492_v1 }
 0x2ea   :  { %1229 = vmatpush.msra.mxu2 %v3493_v58  ;;  %1249 = vmatpush.msrb.mxu3 %v3035_v20 }
 0x2eb   :  { %1190 = vmatpush.msra.mxu0 %v3495_v21  ;;  %1210 = vmatpush.msra.mxu1 %v3496_v16 }
 0x2ec   :  { %1230 = vmatpush.msra.mxu2 %v3497_v5  ;;  %1250 = vmatpush.msrb.mxu3 %v3041_v56 }
 0x2ed   :  { %1191 = vmatpush.msra.mxu0 %v3499_v8  ;;  %1211 = vmatpush.msra.mxu1 %v3500_v9  ;;  %v3512_v9 = vld [vmem:[#allocation45_spill] sm:$0xff] }
 0x2ee   :  { %1231 = vmatpush.msra.mxu2 %v3046_v3  ;;  %1251 = vmatpush.msrb.mxu3 %v3049_v18  ;;  %v3511_v18 = vld [vmem:[#allocation44_spill] sm:$0xff] }
 0x2ef   :  { %1192 = vmatpush.msra.mxu0 %v3503_v7  ;;  %1212 = vmatpush.msra.mxu1 %v3504_v23  ;;  %v3067_v7 = vld [vmem:[#allocation5 + $0x18] sm:$0xff] }
 0x2f0   :  { %1232 = vmatpush.msra.mxu2 %v3054_v10  ;;  %1252 = vmatpush.msrb.mxu3 %v3057_v6  ;;  %3510 = vst [vmem:[#allocation12_spill] sm:$0xff] %v3067_v7 }
 0x2f1   :  { %1193 = vmatpush.msra.mxu0 %v3060_v57  ;;  %1213 = vmatpush.msra.mxu1 %v3508_v53  ;;  %v3513_v53 = vld [vmem:[#allocation55_spill] sm:$0xff] }
 0x2f2   :  { %1233 = vmatpush.msra.mxu2 %v3064_v22  ;;  %1253 = vmatpush.msrb.mxu3 %v3067_v7 }
 0x34e   :  { %v901_v23 = vpop.f32.mrf.mxu0  ;;  %v921_v10 = vpop.f32.mrf.mxu1 }
 0x34f   :  { %v964_v3 = vadd.f32 %v901_v23, %v3511_v18  ;;  %v965_v6 = vadd.f32 %v921_v10, %v3512_v9  ;;  %v3514_v9 = vld [vmem:[#allocation46_spill] sm:$0xff] }
 0x351   :  { %v1817_v8 = vmul.f32 -1.442695, %v964_v3  ;;  %v1818_v56 = vmul.f32 -1.442695, %v965_v6 }
 0x353   :  { %1909 = vpow2.f32 %v1817_v8 }
 0x354   :  { %1911 = vpow2.f32 %v1818_v56 }
 0x355   :  { %v961_v57 = vpop.f32.mrf.mxu3  ;;  %v941_v7 = vpop.f32.mrf.mxu2 }
 0x356   :  { %v967_v5 = vadd.f32 %v961_v57, %v3513_v53  ;;  %v966_v3 = vadd.f32 %v941_v7, %v3514_v9 }
 0x358   :  { %v1819_v16 = vmul.f32 -1.442695, %v967_v5 }
 0x359   :  { %v1910_v21 = vpop.eup %1909 }
 0x35a   :  { %v1912_v22 = vpop.eup %1911  ;;  %v971_v20 = vadd.f32 1.0, %v1910_v21  ;;  %1913 = vpow2.f32 %v1819_v16 }
 0x35b   :  { %v990_v58 = vadd.f32 1.0, %v1912_v22 }
 0x35c   :  { %1915 = vrcp.f32 %v971_v20  ;;  %v983_v5 = vand.u32 2147483648, %v971_v20  ;;  %v981_v16 = vand.u32 2147483647, %v971_v20  ;;  %vm977_vm15 = vweird.f32 %v971_v20 }
 0x35d   :  { %1917 = vrcp.f32 %v990_v58  ;;  %v1002_v53 = vand.u32 2147483648, %v990_v58  ;;  %v1000_v4 = vand.u32 2147483647, %v990_v58  ;;  %vm996_vm0 = vweird.f32 %v990_v58 }
 0x35e   :  { %v984_v7 = vor.u32 1.1754944e-38, %v983_v5  ;;  %vm982_vm3 = vcmp.eq.f32.partialorder %v981_v16, 8.507059e+37 }
 0x35f   :  { %vm1001_vm4 = vcmp.eq.f32.partialorder %v1000_v4, 8.507059e+37 }
 0x360   :  { %v1914_v1 = vpop.eup %1913 }
 0x361   :  { %v1010_v18 = vadd.f32 1.0, %v1914_v1 }
 0x362   :  { %v1916_v23 = vpop.eup %1915 }
 0x363   :  { %v1918_v10 = vpop.eup %1917  ;;  %v973_v8 = vmul.f32 %v1916_v23, %v971_v20  ;;  %1919 = vrcp.f32 %v1010_v18  ;;  %vm978_vm13 = vweird.f32 %v1916_v23  ;;  %v1022_v5 = vand.u32 2147483648, %v1010_v18 }
 0x364   :  { %v992_v56 = vmul.f32 %v1918_v10, %v990_v58  ;;  %1921 = vtanh.f32 %v966_v3  ;;  %vm997_vm14 = vweird.f32 %v1918_v10  ;;  %vm979_vm1 = vmor %vm977_vm15, %vm978_vm13  ;;  %vm1016_vm6 = vweird.f32 %v1010_v18 }
 0x365   :  { %v974_v6 = vsub.f32 1.0, %v973_v8  ;;  %vm998_vm2 = vmor %vm996_vm0, %vm997_vm14  ;;  %v1003_v8 = vor.u32 1.1754944e-38, %v1002_v53  ;;  %v1023_v16 = vor.u32 1.1754944e-38, %v1022_v5  ;;  %v3533_v5 = vld [vmem:[#allocation18_spill] sm:$0xff] }
 0x366   :  { %v993_v57 = vsub.f32 1.0, %v992_v56 }
 0x367   :  { %v975_v21 = vmul.f32 %v1916_v23, %v974_v6 }
 0x368   :  { %v994_v22 = vmul.f32 %v1918_v10, %v993_v57 }
 0x369   :  { %v1920_v54 = vpop.eup %1919  ;;  %v976_v1 = vadd.f32 %v1916_v23, %v975_v21 }
 0x36a   :  { %v995_v9 = vadd.f32 %v1918_v10, %v994_v22  ;;  %v1012_v52 = vmul.f32 %v1920_v54, %v1010_v18  ;;  %v1922_v3 = vpop.eup %1921  ;;  %vm1017_vm5 = vweird.f32 %v1920_v54  ;;  %v3522_v22 = vld [vmem:[#allocation24_spill] sm:$0xff] }
 0x36b   :  { %v980_v56 = vsel %vm979_vm1, %v1916_v23, %v976_v1  ;;  %v1020_v23 = vand.u32 2147483647, %v1010_v18  ;;  %vm1018_vm7 = vmor %vm1016_vm6, %vm1017_vm5  ;;  %v3521_v18 = vld [vmem:[#allocation16_spill] sm:$0xff]  ;;  %v3523_v1 = vld [vmem:[#allocation29_spill] sm:$0xff] }
 0x36c   :  { %v985_v48 = vsel %vm982_vm3, %v984_v7, %v980_v56  ;;  %v999_v6 = vsel %vm998_vm2, %v1918_v10, %v995_v9  ;;  %v1013_v46 = vsub.f32 1.0, %v1012_v52  ;;  %v3524_v7 = vld [vmem:[#allocation30_spill] sm:$0xff]  ;;  %v3527_v56 = vld [vmem:[#allocation28_spill] sm:$0xff] }
 0x36d   :  { %v1004_v57 = vsel %vm1001_vm4, %v1003_v8, %v999_v6  ;;  %v1027_v44 = vmul.f32 %v1922_v3, %v985_v48  ;;  %vm1021_vm8 = vcmp.eq.f32.partialorder %v1020_v23, 8.507059e+37  ;;  %v3519_v48 = vld [vmem:[#allocation25_spill] sm:$0xff]  ;;  %v3525_v9 = vld [vmem:[#allocation26_spill] sm:$0xff]  ;;  %v3528_v3 = vld [vmem:[#allocation19_spill] sm:$0xff] }
 0x36e   :  { %v1026_v59 = vmul.f32 %v1004_v57, %v2985_v2  ;;  %v1014_v21 = vmul.f32 %v1920_v54, %v1013_v46  ;;  %v3515_v2 = vld [vmem:[#allocation10_spill] sm:$0xff]  ;;  %v3518_v46 = vld [vmem:[#allocation23_spill] sm:$0xff]  ;;  %v3526_v8 = vld [vmem:[#allocation17_spill] sm:$0xff] }
 0x36f   :  { %v3529_v6 = vld [vmem:[#allocation34_spill] sm:$0xff]  ;;  %v3530_v57 = vld [vmem:[#allocation27_spill] sm:$0xff] }
 0x370   :  { %v3075_v20 = vadd.f32 %v1027_v44, %v1026_v59  ;;  %v1015_v58 = vadd.f32 %v1920_v54, %v1014_v21  ;;  %v3516_v59 = vld [vmem:[#allocation20_spill] sm:$0xff]  ;;  %v3517_v44 = vld [vmem:[#allocation15_spill] sm:$0xff]  ;;  %v3531_v21 = vld [vmem:[#allocation33_spill] sm:$0xff] }
 0x371   :  { %v3534_v23 = vld [vmem:[#allocation31_spill] sm:$0xff] }
 0x372   :  { %1923 = vtanh.f32 %v3075_v20  ;;  %v1019_v53 = vsel %vm1018_vm7, %v1920_v54, %v1015_v58  ;;  %v3520_v54 = vld [vmem:[#allocation22_spill] sm:$0xff]  ;;  %v3532_v58 = vld [vmem:[#allocation37_spill] sm:$0xff] }
 0x373   :  { %v1024_v52 = vsel %vm1021_vm8, %v1023_v16, %v1019_v53  ;;  %v3535_v53 = vld [vmem:[#allocation32_spill] sm:$0xff]  ;;  %v3536_v16 = vld [vmem:[#allocation21_spill] sm:$0xff] }
 0x378   :  { %v1924_v4 = vpop.eup %1923 }
 0x379   :  { %v1030_v10 = vmul.f32 %v1924_v4, %v1024_v52  ;;  %v3537_v4 = vld [vmem:[#allocation36_spill] sm:$0xff]  ;;  %v3538_v52 = vld [vmem:[#allocation35_spill] sm:$0xff] }
 0x37b   :  { %1047 = vmatmul.f32.vlgmr.msrb.gmra.mxu0 %v1030_v10  ;;  %1067 = vmatmul.f32.vlgmr.msrb.gmra.mxu1 %v1030_v10 }
 0x37c   :  { %1087 = vmatmul.f32.vlgmr.msrb.gmra.mxu2 %v1030_v10  ;;  %1107 = vmatmul.f32.vlgmr.msra.gmra.mxu3 %v1030_v10  ;;  %v3539_v10 = vld [vmem:[#allocation38_spill] sm:$0xff] }
 0x37d   :  { %1325 = vmatpush.msrb.mxu0 %v2806_v11  ;;  %1345 = vmatpush.msrb.mxu1 %v2809_v25 }
 0x37e   :  { %1365 = vmatpush.msrb.mxu2 %v2812_v26  ;;  %1385 = vmatpush.msra.mxu3 %v2815_v28 }
 0x37f   :  { %1326 = vmatpush.msrb.mxu0 %v2818_v30  ;;  %1346 = vmatpush.msrb.mxu1 %v2821_v32 }
 0x380   :  { %1366 = vmatpush.msrb.mxu2 %v2824_v35  ;;  %1386 = vmatpush.msra.mxu3 %v2827_v37 }
 0x381   :  { %1327 = vmatpush.msrb.mxu0 %v2830_v39  ;;  %1347 = vmatpush.msrb.mxu1 %v2833_v42 }
 0x382   :  { %1367 = vmatpush.msrb.mxu2 %v2836_v40  ;;  %1387 = vmatpush.msra.mxu3 %v2839_v51 }
 0x383   :  { %1328 = vmatpush.msrb.mxu0 %v2842_v13  ;;  %1348 = vmatpush.msrb.mxu1 %v2845_v31 }
 0x384   :  { %1368 = vmatpush.msrb.mxu2 %v2848_v0  ;;  %1388 = vmatpush.msra.mxu3 %v2851_v15 }
 0x385   :  { %1329 = vmatpush.msrb.mxu0 %v2854_v55  ;;  %1349 = vmatpush.msrb.mxu1 %v2857_v17 }
 0x386   :  { %1369 = vmatpush.msrb.mxu2 %v2860_v29  ;;  %1389 = vmatpush.msra.mxu3 %v2863_v61 }
 0x387   :  { %1330 = vmatpush.msrb.mxu0 %v2866_v63  ;;  %1350 = vmatpush.msrb.mxu1 %v2869_v38 }
 0x388   :  { %1370 = vmatpush.msrb.mxu2 %v2872_v33  ;;  %1390 = vmatpush.msra.mxu3 %v2875_v47 }
 0x389   :  { %1331 = vmatpush.msrb.mxu0 %v2878_v14  ;;  %1351 = vmatpush.msrb.mxu1 %v2881_v62 }
 0x38a   :  { %1371 = vmatpush.msrb.mxu2 %v2884_v45  ;;  %1391 = vmatpush.msra.mxu3 %v2887_v60 }
 0x38b   :  { %1332 = vmatpush.msrb.mxu0 %v2890_v43  ;;  %1352 = vmatpush.msrb.mxu1 %v2893_v34 }
 0x38c   :  { %1372 = vmatpush.msrb.mxu2 %v2896_v19  ;;  %1392 = vmatpush.msra.mxu3 %v2899_v27 }
 0x38d   :  { %1333 = vmatpush.msrb.mxu0 %v2902_v49  ;;  %1353 = vmatpush.msrb.mxu1 %v2905_v24 }
 0x38e   :  { %1373 = vmatpush.msrb.mxu2 %v2908_v36  ;;  %1393 = vmatpush.msra.mxu3 %v2911_v50 }
 0x38f   :  { %1334 = vmatpush.msrb.mxu0 %v2914_v12  ;;  %1354 = vmatpush.msrb.mxu1 %v2917_v41 }
 0x390   :  { %1374 = vmatpush.msrb.mxu2 %v3515_v2  ;;  %1394 = vmatpush.msra.mxu3 %v3516_v59 }
 0x391   :  { %1335 = vmatpush.msrb.mxu0 %v3517_v44  ;;  %1355 = vmatpush.msrb.mxu1 %v3518_v46 }
 0x392   :  { %1375 = vmatpush.msrb.mxu2 %v3519_v48  ;;  %1395 = vmatpush.msra.mxu3 %v3520_v54 }
 0x393   :  { %1336 = vmatpush.msrb.mxu0 %v3521_v18  ;;  %1356 = vmatpush.msrb.mxu1 %v3522_v22 }
 0x394   :  { %1376 = vmatpush.msrb.mxu2 %v3523_v1  ;;  %1396 = vmatpush.msra.mxu3 %v3524_v7 }
 0x395   :  { %1337 = vmatpush.msrb.mxu0 %v3525_v9  ;;  %1357 = vmatpush.msrb.mxu1 %v3526_v8 }
 0x396   :  { %1377 = vmatpush.msrb.mxu2 %v3527_v56  ;;  %1397 = vmatpush.msra.mxu3 %v3528_v3  ;;  %v3541_v3 = vld [vmem:[#allocation48_spill] sm:$0xff]  ;;  %v3542_v56 = vld [vmem:[#allocation49_spill] sm:$0xff] }
 0x397   :  { %1338 = vmatpush.msrb.mxu0 %v3529_v6  ;;  %1358 = vmatpush.msrb.mxu1 %v3530_v57  ;;  %v3540_v6 = vld [vmem:[#allocation12_spill] sm:$0xff] }
 0x398   :  { %1378 = vmatpush.msrb.mxu2 %v3531_v21  ;;  %1398 = vmatpush.msra.mxu3 %v3532_v58 }
 0x399   :  { %1339 = vmatpush.msrb.mxu0 %v3533_v5  ;;  %1359 = vmatpush.msrb.mxu1 %v3534_v23 }
 0x39a   :  { %1379 = vmatpush.msrb.mxu2 %v3535_v53  ;;  %1399 = vmatpush.msra.mxu3 %v3536_v16  ;;  %v3543_v16 = vld [vmem:[#allocation58_spill] sm:$0xff] }
 0x39b   :  { %1340 = vmatpush.msrb.mxu0 %v3537_v4  ;;  %1360 = vmatpush.msrb.mxu1 %v3538_v52 }
 0x39c   :  { %1380 = vmatpush.msrb.mxu2 %v3539_v10  ;;  %1400 = vmatpush.msra.mxu3 %v3540_v6 }
 0x3f8   :  { %v1048_v57 = vpop.f32.mrf.mxu0  ;;  %v1068_v21 = vpop.f32.mrf.mxu1 }
 0x3f9   :  { %v1111_v58 = vadd.f32 %v1048_v57, %v3541_v3  ;;  %v1112_v5 = vadd.f32 %v1068_v21, %v3542_v56  ;;  %v3544_v56 = vld [vmem:[#allocation50_spill] sm:$0xff] }
 0x3fb   :  { %v1820_v8 = vmul.f32 -1.442695, %v1111_v58  ;;  %v1821_v23 = vmul.f32 -1.442695, %v1112_v5 }
 0x3fd   :  { %1925 = vpow2.f32 %v1820_v8 }
 0x3fe   :  { %1927 = vpow2.f32 %v1821_v23 }
 0x3ff   :  { %v1108_v53 = vpop.f32.mrf.mxu3  ;;  %v1088_v6 = vpop.f32.mrf.mxu2 }
 0x400   :  { %v1114_v9 = vadd.f32 %v1108_v53, %v3543_v16  ;;  %v1113_v21 = vadd.f32 %v1088_v6, %v3544_v56 }
 0x402   :  { %v1822_v4 = vmul.f32 -1.442695, %v1114_v9 }
 0x403   :  { %v1926_v7 = vpop.eup %1925 }
 0x404   :  { %v1928_v52 = vpop.eup %1927  ;;  %v1118_v1 = vadd.f32 1.0, %v1926_v7  ;;  %1929 = vpow2.f32 %v1822_v4 }
 0x405   :  { %v1137_v10 = vadd.f32 1.0, %v1928_v52 }
 0x406   :  { %1931 = vrcp.f32 %v1118_v1  ;;  %v1130_v9 = vand.u32 2147483648, %v1118_v1  ;;  %v1128_v4 = vand.u32 2147483647, %v1118_v1  ;;  %vm1124_vm11 = vweird.f32 %v1118_v1 }
 0x407   :  { %1933 = vrcp.f32 %v1137_v10  ;;  %v1149_v16 = vand.u32 2147483648, %v1137_v10  ;;  %v1147_v18 = vand.u32 2147483647, %v1137_v10  ;;  %vm1143_vm12 = vweird.f32 %v1137_v10 }
 0x408   :  { %v1131_v6 = vor.u32 1.1754944e-38, %v1130_v9  ;;  %vm1129_vm15 = vcmp.eq.f32.partialorder %v1128_v4, 8.507059e+37 }
 0x409   :  { %vm1148_vm0 = vcmp.eq.f32.partialorder %v1147_v18, 8.507059e+37 }
 0x40a   :  { %v1930_v22 = vpop.eup %1929 }
 0x40b   :  { %v1157_v3 = vadd.f32 1.0, %v1930_v22 }
 0x40c   :  { %v1932_v57 = vpop.eup %1931 }
 0x40d   :  { %v1934_v58 = vpop.eup %1933  ;;  %v1120_v8 = vmul.f32 %v1932_v57, %v1118_v1  ;;  %1935 = vrcp.f32 %v1157_v3  ;;  %vm1125_vm9 = vweird.f32 %v1932_v57  ;;  %v1169_v9 = vand.u32 2147483648, %v1157_v3 }
 0x40e   :  { %v1139_v5 = vmul.f32 %v1934_v58, %v1137_v10  ;;  %1937 = vtanh.f32 %v1113_v21  ;;  %vm1144_vm10 = vweird.f32 %v1934_v58  ;;  %vm1126_vm13 = vmor %vm1124_vm11, %vm1125_vm9  ;;  %vm1163_vm2 = vweird.f32 %v1157_v3 }
 0x40f   :  { %v1121_v23 = vsub.f32 1.0, %v1120_v8  ;;  %vm1145_vm14 = vmor %vm1143_vm12, %vm1144_vm10  ;;  %v1150_v8 = vor.u32 1.1754944e-38, %v1149_v16  ;;  %v1170_v4 = vor.u32 1.1754944e-38, %v1169_v9 }
 0x410   :  { %v1140_v53 = vsub.f32 1.0, %v1139_v5 }
 0x411   :  { %v1122_v7 = vmul.f32 %v1932_v57, %v1121_v23 }
 0x412   :  { %v1141_v52 = vmul.f32 %v1934_v58, %v1140_v53 }
 0x413   :  { %v1936_v54 = vpop.eup %1935  ;;  %v1123_v22 = vadd.f32 %v1932_v57, %v1122_v7 }
 0x414   :  { %v1142_v56 = vadd.f32 %v1934_v58, %v1141_v52  ;;  %v1159_v48 = vmul.f32 %v1936_v54, %v1157_v3  ;;  %v1938_v21 = vpop.eup %1937  ;;  %vm1164_vm1 = vweird.f32 %v1936_v54 }
 0x415   :  { %v1127_v5 = vsel %vm1126_vm13, %v1932_v57, %v1123_v22  ;;  %v1167_v57 = vand.u32 2147483647, %v1157_v3  ;;  %vm1165_vm3 = vmor %vm1163_vm2, %vm1164_vm1  ;;  %v3574_v22 = vld [vmem:[#allocation54_spill] sm:$0xff]  ;;  %vm1698_vm1 = vcmask 1041408  }
 0x416   :  { %v1132_v46 = vsel %vm1129_vm15, %v1131_v6, %v1127_v5  ;;  %v1146_v23 = vsel %vm1145_vm14, %v1934_v58, %v1142_v56  ;;  %v1160_v44 = vsub.f32 1.0, %v1159_v48 }
 0x417   :  { %v1151_v53 = vsel %vm1148_vm0, %v1150_v8, %v1146_v23  ;;  %v1174_v59 = vmul.f32 %v1938_v21, %v1132_v46  ;;  %vm1168_vm4 = vcmp.eq.f32.partialorder %v1167_v57, 8.507059e+37 }
 0x418   :  { %v1173_v2 = vmul.f32 %v1151_v53, %v3075_v20  ;;  %v1161_v7 = vmul.f32 %v1936_v54, %v1160_v44 }
 0x41a   :  { %v3147_v1 = vadd.f32 %v1174_v59, %v1173_v2  ;;  %v1162_v10 = vadd.f32 %v1936_v54, %v1161_v7 }
 0x41c   :  { %1939 = vtanh.f32 %v3147_v1  ;;  %v1166_v16 = vsel %vm1165_vm3, %v1936_v54, %v1162_v10 }
 0x41d   :  { %v1171_v48 = vsel %vm1168_vm4, %v1170_v4, %v1166_v16 }
 0x422   :  { %v1940_v18 = vpop.eup %1939 }
 0x423   :  { %v1177_v58 = vmul.f32 %v1940_v18, %v1171_v48 }
 0x425   :  { %1194 = vmatmul.f32.vlgmr.msra.gmra.mxu0 %v1177_v58  ;;  %1214 = vmatmul.f32.vlgmr.msra.gmra.mxu1 %v1177_v58 }
 0x426   :  { %1234 = vmatmul.f32.vlgmr.msra.gmra.mxu2 %v1177_v58  ;;  %1254 = vmatmul.f32.vlgmr.msrb.gmra.mxu3 %v1177_v58 }
 0x427   :  { %1472 = vmatpush.msra.mxu0 %v2806_v11  ;;  %1492 = vmatpush.msra.mxu1 %v2809_v25  ;;  %v3545_v11 = vld [vmem:[#allocation10_spill] sm:$0xff]  ;;  %v3546_v25 = vld [vmem:[#allocation20_spill] sm:$0xff] }
 0x428   :  { %1512 = vmatpush.msra.mxu2 %v2812_v26  ;;  %1532 = vmatpush.msrb.mxu3 %v2815_v28  ;;  %v3547_v26 = vld [vmem:[#allocation15_spill] sm:$0xff] }
 0x429   :  { %1473 = vmatpush.msra.mxu0 %v2818_v30  ;;  %1493 = vmatpush.msra.mxu1 %v2821_v32  ;;  %v3548_v28 = vld [vmem:[#allocation23_spill] sm:$0xff]  ;;  %v3549_v30 = vld [vmem:[#allocation25_spill] sm:$0xff]  ;;  %v3550_v32 = vld [vmem:[#allocation22_spill] sm:$0xff] }
 0x42a   :  { %1513 = vmatpush.msra.mxu2 %v2824_v35  ;;  %1533 = vmatpush.msrb.mxu3 %v2827_v37  ;;  %v3551_v35 = vld [vmem:[#allocation16_spill] sm:$0xff] }
 0x42b   :  { %1474 = vmatpush.msra.mxu0 %v2830_v39  ;;  %1494 = vmatpush.msra.mxu1 %v2833_v42  ;;  %v3552_v37 = vld [vmem:[#allocation24_spill] sm:$0xff]  ;;  %v3553_v39 = vld [vmem:[#allocation29_spill] sm:$0xff]  ;;  %v3554_v42 = vld [vmem:[#allocation30_spill] sm:$0xff] }
 0x42c   :  { %1514 = vmatpush.msra.mxu2 %v2836_v40  ;;  %1534 = vmatpush.msrb.mxu3 %v2839_v51  ;;  %v3555_v40 = vld [vmem:[#allocation26_spill] sm:$0xff]  ;;  %v3556_v51 = vld [vmem:[#allocation17_spill] sm:$0xff] }
 0x42d   :  { %1475 = vmatpush.msra.mxu0 %v2842_v13  ;;  %1495 = vmatpush.msra.mxu1 %v2845_v31  ;;  %v3557_v13 = vld [vmem:[#allocation28_spill] sm:$0xff]  ;;  %v3558_v31 = vld [vmem:[#allocation19_spill] sm:$0xff] }
 0x42e   :  { %1515 = vmatpush.msra.mxu2 %v2848_v0  ;;  %1535 = vmatpush.msrb.mxu3 %v2851_v15  ;;  %v3559_v0 = vld [vmem:[#allocation34_spill] sm:$0xff]  ;;  %v3560_v15 = vld [vmem:[#allocation27_spill] sm:$0xff] }
 0x42f   :  { %1476 = vmatpush.msra.mxu0 %v2854_v55  ;;  %1496 = vmatpush.msra.mxu1 %v2857_v17  ;;  %v3561_v55 = vld [vmem:[#allocation33_spill] sm:$0xff] }
 0x430   :  { %1516 = vmatpush.msra.mxu2 %v2860_v29  ;;  %1536 = vmatpush.msrb.mxu3 %v2863_v61  ;;  %v3562_v17 = vld [vmem:[#allocation37_spill] sm:$0xff]  ;;  %v3563_v29 = vld [vmem:[#allocation18_spill] sm:$0xff]  ;;  %v3564_v61 = vld [vmem:[#allocation31_spill] sm:$0xff] }
 0x431   :  { %1477 = vmatpush.msra.mxu0 %v2866_v63  ;;  %1497 = vmatpush.msra.mxu1 %v2869_v38  ;;  %v3565_v63 = vld [vmem:[#allocation32_spill] sm:$0xff]  ;;  %v3566_v38 = vld [vmem:[#allocation21_spill] sm:$0xff] }
 0x432   :  { %1517 = vmatpush.msra.mxu2 %v2872_v33  ;;  %1537 = vmatpush.msrb.mxu3 %v2875_v47  ;;  %v3567_v33 = vld [vmem:[#allocation36_spill] sm:$0xff]  ;;  %v3568_v47 = vld [vmem:[#allocation35_spill] sm:$0xff] }
 0x433   :  { %1478 = vmatpush.msra.mxu0 %v2878_v14  ;;  %1498 = vmatpush.msra.mxu1 %v2881_v62  ;;  %v3569_v14 = vld [vmem:[#allocation38_spill] sm:$0xff]  ;;  %v3570_v62 = vld [vmem:[#allocation12_spill] sm:$0xff] }
 0x434   :  { %1518 = vmatpush.msra.mxu2 %v2884_v45  ;;  %1538 = vmatpush.msrb.mxu3 %v2887_v60 }
 0x435   :  { %1479 = vmatpush.msra.mxu0 %v2890_v43  ;;  %1499 = vmatpush.msra.mxu1 %v2893_v34  ;;  %v3571_v43 = vld [vmem:[#allocation52_spill] sm:$0xff] }
 0x436   :  { %1519 = vmatpush.msra.mxu2 %v2896_v19  ;;  %1539 = vmatpush.msrb.mxu3 %v2899_v27  ;;  %v3572_v19 = vld [vmem:[#allocation53_spill] sm:$0xff] }
 0x437   :  { %1480 = vmatpush.msra.mxu0 %v2902_v49  ;;  %1500 = vmatpush.msra.mxu1 %v2905_v24 }
 0x438   :  { %1520 = vmatpush.msra.mxu2 %v2908_v36  ;;  %1540 = vmatpush.msrb.mxu3 %v2911_v50  ;;  %v3573_v50 = vld [vmem:[#allocation61_spill] sm:$0xff] }
 0x439   :  { %1481 = vmatpush.msra.mxu0 %v2914_v12  ;;  %1501 = vmatpush.msra.mxu1 %v2917_v41 }
 0x43a   :  { %1521 = vmatpush.msra.mxu2 %v3545_v11  ;;  %1541 = vmatpush.msrb.mxu3 %v3546_v25 }
 0x43b   :  { %1482 = vmatpush.msra.mxu0 %v3547_v26  ;;  %1502 = vmatpush.msra.mxu1 %v3548_v28 }
 0x43c   :  { %1522 = vmatpush.msra.mxu2 %v3549_v30  ;;  %1542 = vmatpush.msrb.mxu3 %v3550_v32 }
 0x43d   :  { %1483 = vmatpush.msra.mxu0 %v3551_v35  ;;  %1503 = vmatpush.msra.mxu1 %v3552_v37 }
 0x43e   :  { %1523 = vmatpush.msra.mxu2 %v3553_v39  ;;  %1543 = vmatpush.msrb.mxu3 %v3554_v42 }
 0x43f   :  { %1484 = vmatpush.msra.mxu0 %v3555_v40  ;;  %1504 = vmatpush.msra.mxu1 %v3556_v51 }
 0x440   :  { %1524 = vmatpush.msra.mxu2 %v3557_v13  ;;  %1544 = vmatpush.msrb.mxu3 %v3558_v31 }
 0x441   :  { %1485 = vmatpush.msra.mxu0 %v3559_v0  ;;  %1505 = vmatpush.msra.mxu1 %v3560_v15 }
 0x442   :  { %1525 = vmatpush.msra.mxu2 %v3561_v55  ;;  %1545 = vmatpush.msrb.mxu3 %v3562_v17 }
 0x443   :  { %1486 = vmatpush.msra.mxu0 %v3563_v29  ;;  %1506 = vmatpush.msra.mxu1 %v3564_v61 }
 0x444   :  { %1526 = vmatpush.msra.mxu2 %v3565_v63  ;;  %1546 = vmatpush.msrb.mxu3 %v3566_v38  ;;  %v3575_v38 = vld [vmem:[#allocation56_spill] sm:$0xff] }
 0x445   :  { %1487 = vmatpush.msra.mxu0 %v3567_v33  ;;  %1507 = vmatpush.msra.mxu1 %v3568_v47  ;;  %v3576_v47 = vld [vmem:[#allocation11_spill] sm:$0xff] }
 0x446   :  { %1527 = vmatpush.msra.mxu2 %v3569_v14  ;;  %1547 = vmatpush.msrb.mxu3 %v3570_v62 }
 0x4a2   :  { %v1195_v45 = vpop.f32.mrf.mxu0  ;;  %v1215_v60 = vpop.f32.mrf.mxu1 }
 0x4a3   :  { %v1258_v34 = vadd.f32 %v1195_v45, %v3571_v43  ;;  %v1259_v27 = vadd.f32 %v1215_v60, %v3572_v19  ;;  %v3577_v43 = vld [vmem:[#allocation62_spill] sm:$0xff] }
 0x4a5   :  { %v1823_v49 = vmul.f32 -1.442695, %v1258_v34  ;;  %v1824_v24 = vmul.f32 -1.442695, %v1259_v27 }
 0x4a7   :  { %1941 = vpow2.f32 %v1823_v49 }
 0x4a8   :  { %1943 = vpow2.f32 %v1824_v24 }
 0x4a9   :  { %v1255_v36 = vpop.f32.mrf.mxu3  ;;  %v1235_v46 = vpop.f32.mrf.mxu2 }
 0x4aa   :  { %v1261_v12 = vadd.f32 %v1255_v36, %v3573_v50  ;;  %v1260_v6 = vadd.f32 %v1235_v46, %v3574_v22  ;;  %v1693_v50 = vld [vmem:[%s3267_s9 + $0x8] sm:$0x3] }
 0x4ac   :  { %v1825_v41 = vmul.f32 -1.442695, %v1261_v12  ;;  %v1692_v12 = vld [vmem:[%s3267_s9] sm:$0xff] }
 0x4ad   :  { %v1942_v20 = vpop.eup %1941 }
 0x4ae   :  { %v1944_v2 = vpop.eup %1943  ;;  %v1265_v59 = vadd.f32 1.0, %v1942_v20  ;;  %1945 = vpow2.f32 %v1825_v41 }
 0x4af   :  { %v1284_v44 = vadd.f32 1.0, %v1944_v2 }
 0x4b0   :  { %1947 = vrcp.f32 %v1265_v59  ;;  %v1277_v53 = vand.u32 2147483648, %v1265_v59  ;;  %v1275_v9 = vand.u32 2147483647, %v1265_v59  ;;  %vm1271_vm7 = vweird.f32 %v1265_v59 }
 0x4b1   :  { %1949 = vrcp.f32 %v1284_v44  ;;  %v1296_v7 = vand.u32 2147483648, %v1284_v44  ;;  %v1294_v16 = vand.u32 2147483647, %v1284_v44  ;;  %vm1290_vm8 = vweird.f32 %v1284_v44 }
 0x4b2   :  { %v1278_v48 = vor.u32 1.1754944e-38, %v1277_v53  ;;  %vm1276_vm11 = vcmp.eq.f32.partialorder %v1275_v9, 8.507059e+37 }
 0x4b3   :  { %v1297_v25 = vor.u32 1.1754944e-38, %v1296_v7  ;;  %vm1295_vm12 = vcmp.eq.f32.partialorder %v1294_v16, 8.507059e+37 }
 0x4b4   :  { %v1946_v54 = vpop.eup %1945 }
 0x4b5   :  { %v1304_v3 = vadd.f32 1.0, %v1946_v54 }
 0x4b6   :  { %v1948_v52 = vpop.eup %1947 }
 0x4b7   :  { %v1950_v56 = vpop.eup %1949  ;;  %v1267_v8 = vmul.f32 %v1948_v52, %v1265_v59  ;;  %1951 = vrcp.f32 %v1304_v3  ;;  %vm1272_vm5 = vweird.f32 %v1948_v52  ;;  %v1316_v31 = vand.u32 2147483648, %v1304_v3 }
 0x4b8   :  { %v1286_v5 = vmul.f32 %v1950_v56, %v1284_v44  ;;  %1953 = vtanh.f32 %v1260_v6  ;;  %vm1291_vm6 = vweird.f32 %v1950_v56  ;;  %vm1273_vm9 = vmor %vm1271_vm7, %vm1272_vm5  ;;  %vm1310_vm14 = vweird.f32 %v1304_v3  ;;  %v3578_v44 = vld [vmem:[#allocation57_spill] sm:$0xff] }
 0x4b9   :  { %v1268_v21 = vsub.f32 1.0, %v1267_v8  ;;  %vm1292_vm10 = vmor %vm1290_vm8, %vm1291_vm6  ;;  %v1314_v0 = vand.u32 2147483647, %v1304_v3  ;;  %v1317_v55 = vor.u32 1.1754944e-38, %v1316_v31 }
 0x4ba   :  { %v1287_v23 = vsub.f32 1.0, %v1286_v5 }
 0x4bb   :  { %v1269_v10 = vmul.f32 %v1948_v52, %v1268_v21  ;;  %vm1315_vm0 = vcmp.eq.f32.partialorder %v1314_v0, 8.507059e+37 }
 0x4bc   :  { %v1288_v57 = vmul.f32 %v1950_v56, %v1287_v23 }
 0x4bd   :  { %v1952_v4 = vpop.eup %1951  ;;  %v1270_v18 = vadd.f32 %v1948_v52, %v1269_v10 }
 0x4be   :  { %v1289_v58 = vadd.f32 %v1950_v56, %v1288_v57  ;;  %v1306_v11 = vmul.f32 %v1952_v4, %v1304_v3  ;;  %v1954_v28 = vpop.eup %1953  ;;  %vm1311_vm13 = vweird.f32 %v1952_v4 }
 0x4bf   :  { %v1274_v26 = vsel %vm1273_vm9, %v1948_v52, %v1270_v18  ;;  %vm1312_vm15 = vmor %vm1310_vm14, %vm1311_vm13 }
 0x4c0   :  { %v1279_v30 = vsel %vm1276_vm11, %v1278_v48, %v1274_v26  ;;  %v1293_v32 = vsel %vm1292_vm10, %v1950_v56, %v1289_v58  ;;  %v1307_v35 = vsub.f32 1.0, %v1306_v11 }
 0x4c1   :  { %v1298_v37 = vsel %vm1295_vm12, %v1297_v25, %v1293_v32  ;;  %v1321_v39 = vmul.f32 %v1954_v28, %v1279_v30 }
 0x4c2   :  { %v1320_v42 = vmul.f32 %v1298_v37, %v3147_v1  ;;  %v1308_v40 = vmul.f32 %v1952_v4, %v1307_v35 }
 0x4c4   :  { %v3219_v51 = vadd.f32 %v1321_v39, %v1320_v42  ;;  %v1309_v13 = vadd.f32 %v1952_v4, %v1308_v40 }
 0x4c6   :  { %1955 = vtanh.f32 %v3219_v51  ;;  %v1313_v15 = vsel %vm1312_vm15, %v1952_v4, %v1309_v13  ;;  %vm1694_vm15 = vcmask 80896  }
 0x4c7   :  { %v1318_v29 = vsel %vm1315_vm0, %v1317_v55, %v1313_v15  ;;  %v3579_v55 = vld [vmem:[#allocation14_spill] sm:$0xff]  ;;  %vm1648_vm0 = vcmask 1043456  }
 0x4cc   :  { %v1956_v17 = vpop.eup %1955 }
 0x4cd   :  { %v1324_v61 = vmul.f32 %v1956_v17, %v1318_v29  ;;  %v3580_v17 = vmov 0.0  }
 0x4cf   :  { %1341 = vmatmul.f32.vlgmr.msrb.gmra.mxu0 %v1324_v61  ;;  %1361 = vmatmul.f32.vlgmr.msrb.gmra.mxu1 %v1324_v61 }
 0x4d0   :  { %1381 = vmatmul.f32.vlgmr.msrb.gmra.mxu2 %v1324_v61  ;;  %1401 = vmatmul.f32.vlgmr.msra.gmra.mxu3 %v1324_v61  ;;  %v1641_v61 = vld [vmem:[#allocation7 + $0x78] sm:$0xff] }
 0x4d1   :  { %1835 = vmatpush.msk.msrb.mxu2 %vm1698_vm1, %v1693_v50  ;;  %1672 = vmatpush.msrb.mxu1 %v1641_v61  ;;  %vm1644_vm1 = vcmask 31744  }
 0x4d3   :  { %1717 = vmatpush.msrb.mxu2 %v1692_v12 }
 0x54c   :  { %v1342_v1 = vpop.f32.mrf.mxu0  ;;  %v1362_v63 = vpop.f32.mrf.mxu1 }
 0x54d   :  { %v1405_v33 = vadd.f32 %v1342_v1, %v3575_v38  ;;  %v1406_v14 = vadd.f32 %v1362_v63, %v3576_v47  ;;  %v1640_v1 = vld [vmem:[#allocation7 + $0x70] sm:$0xff]  ;;  %v1639_v63 = vld [vmem:[#allocation7 + $0x68] sm:$0xff]  ;;  %v1638_v38 = vld [vmem:[#allocation7 + $0x60] sm:$0xff] }
 0x54e   :  { %1673 = vmatpush.msrb.mxu1 %v1640_v1  ;;  %v1636_v47 = vld [vmem:[#allocation7 + $0x50] sm:$0xff] }
 0x54f   :  { %v1826_v62 = vmul.f32 -1.442695, %v1405_v33  ;;  %v1827_v45 = vmul.f32 -1.442695, %v1406_v14  ;;  %v1637_v33 = vld [vmem:[#allocation7 + $0x58] sm:$0xff]  ;;  %v1635_v14 = vld [vmem:[#allocation7 + $0x48] sm:$0xff] }
 0x550   :  { %1674 = vmatpush.msrb.mxu1 %v1639_v63 }
 0x551   :  { %1957 = vpow2.f32 %v1826_v62  ;;  %v1634_v62 = vld [vmem:[#allocation7 + $0x40] sm:$0xff] }
 0x552   :  { %1959 = vpow2.f32 %v1827_v45  ;;  %1675 = vmatpush.msrb.mxu1 %v1638_v38  ;;  %v1633_v45 = vld [vmem:[#allocation7 + $0x38] sm:$0xff] }
 0x553   :  { %v1402_v60 = vpop.f32.mrf.mxu3  ;;  %v1382_v41 = vpop.f32.mrf.mxu2 }
 0x554   :  { %v1408_v34 = vadd.f32 %v1402_v60, %v3577_v43  ;;  %v1407_v46 = vadd.f32 %v1382_v41, %v3578_v44  ;;  %1676 = vmatpush.msrb.mxu1 %v1637_v33  ;;  %v1632_v60 = vld [vmem:[#allocation7 + $0x30] sm:$0xff]  ;;  %v1630_v41 = vld [vmem:[#allocation7 + $0x20] sm:$0xff] }
 0x555   :  { %v1642_v44 = vld [vmem:[%s3260_s2] sm:$0xff] }
 0x556   :  { %v1828_v19 = vmul.f32 -1.442695, %v1408_v34  ;;  %1677 = vmatpush.msrb.mxu1 %v1636_v47 }
 0x557   :  { %v1958_v27 = vpop.eup %1957 }
 0x558   :  { %v1960_v49 = vpop.eup %1959  ;;  %v1412_v24 = vadd.f32 1.0, %v1958_v27  ;;  %1961 = vpow2.f32 %v1828_v19  ;;  %1678 = vmatpush.msrb.mxu1 %v1635_v14  ;;  %v3581_v19 = vld [vmem:[#allocation59_spill] sm:$0xff] }
 0x559   :  { %v1431_v36 = vadd.f32 1.0, %v1960_v49  ;;  %v3582_v49 = vld [vmem:[#allocation39_spill] sm:$0xff] }
 0x55a   :  { %1963 = vrcp.f32 %v1412_v24  ;;  %v1424_v56 = vand.u32 2147483648, %v1412_v24  ;;  %v1422_v21 = vand.u32 2147483647, %v1412_v24  ;;  %vm1418_vm4 = vweird.f32 %v1412_v24  ;;  %1679 = vmatpush.msrb.mxu1 %v1634_v62 }
 0x55b   :  { %1965 = vrcp.f32 %v1431_v36  ;;  %v1443_v8 = vand.u32 2147483648, %v1431_v36  ;;  %v1441_v53 = vand.u32 2147483647, %v1431_v36  ;;  %vm1437_vm5 = vweird.f32 %v1431_v36 }
 0x55c   :  { %v1425_v9 = vor.u32 1.1754944e-38, %v1424_v56  ;;  %vm1423_vm8 = vcmp.eq.f32.partialorder %v1422_v21, 8.507059e+37  ;;  %1680 = vmatpush.msrb.mxu1 %v1633_v45 }
 0x55d   :  { %v1444_v4 = vor.u32 1.1754944e-38, %v1443_v8  ;;  %vm1442_vm9 = vcmp.eq.f32.partialorder %v1441_v53, 8.507059e+37 }
 0x55e   :  { %v1962_v20 = vpop.eup %1961  ;;  %1681 = vmatpush.msrb.mxu1 %v1632_v60 }
 0x55f   :  { %v1451_v2 = vadd.f32 1.0, %v1962_v20  ;;  %v1643_v20 = vld [vmem:[%s3265_s7] sm:$0xf] }
 0x560   :  { %v1964_v59 = vpop.eup %1963  ;;  %1833 = vmatpush.msk.msrb.mxu0 %vm1648_vm0, %v1643_v20  ;;  %vm1760_vm0 = vcmask 7168  }
 0x561   :  { %v1966_v54 = vpop.eup %1965  ;;  %v1414_v3 = vmul.f32 %v1964_v59, %v1412_v24  ;;  %1967 = vrcp.f32 %v1451_v2  ;;  %vm1419_vm2 = vweird.f32 %v1964_v59  ;;  %v1463_v39 = vand.u32 2147483648, %v1451_v2 }
 0x562   :  { %v1433_v52 = vmul.f32 %v1966_v54, %v1431_v36  ;;  %1969 = vtanh.f32 %v1407_v46  ;;  %vm1438_vm3 = vweird.f32 %v1966_v54  ;;  %vm1420_vm6 = vmor %vm1418_vm4, %vm1419_vm2  ;;  %vm1457_vm11 = vweird.f32 %v1451_v2  ;;  %v1631_v36 = vld [vmem:[#allocation7 + $0x28] sm:$0xff] }
 0x563   :  { %v1415_v22 = vsub.f32 1.0, %v1414_v3  ;;  %vm1439_vm7 = vmor %vm1437_vm5, %vm1438_vm3  ;;  %v1461_v42 = vand.u32 2147483647, %v1451_v2  ;;  %v1464_v13 = vor.u32 1.1754944e-38, %v1463_v39  ;;  %1682 = vmatpush.msrb.mxu1 %v1631_v36  ;;  %v3583_v3 = vld [vmem:[#allocation63_spill] sm:$0xff] }
 0x564   :  { %v1434_v6 = vsub.f32 1.0, %v1433_v52 }
 0x565   :  { %v1416_v5 = vmul.f32 %v1964_v59, %v1415_v22  ;;  %vm1462_vm13 = vcmp.eq.f32.partialorder %v1461_v42, 8.507059e+37  ;;  %1683 = vmatpush.msrb.mxu1 %v1630_v41  ;;  %v1626_v22 = vld [vmem:[#allocation7] sm:$0xff] }
 0x566   :  { %v1435_v23 = vmul.f32 %v1966_v54, %v1434_v6 }
 0x567   :  { %v1968_v7 = vpop.eup %1967  ;;  %v1417_v10 = vadd.f32 %v1964_v59, %v1416_v5 }
 0x568   :  { %v1436_v57 = vadd.f32 %v1966_v54, %v1435_v23  ;;  %v1453_v16 = vmul.f32 %v1968_v7, %v1451_v2  ;;  %v1970_v48 = vpop.eup %1969  ;;  %vm1458_vm10 = vweird.f32 %v1968_v7  ;;  %v1629_v2 = vld [vmem:[#allocation7 + $0x18] sm:$0xff] }
 0x569   :  { %v1421_v18 = vsel %vm1420_vm6, %v1964_v59, %v1417_v10  ;;  %vm1459_vm12 = vmor %vm1457_vm11, %vm1458_vm10  ;;  %v1628_v59 = vld [vmem:[#allocation7 + $0x10] sm:$0xff]  ;;  %1684 = vmatpush.msrb.mxu1 %v1629_v2  ;;  %v1860_v2 = vld [vmem:[#allocation2] ss:$0 sm:$0xff] }
 0x56a   :  { %v1426_v58 = vsel %vm1423_vm8, %v1425_v9, %v1421_v18  ;;  %v1440_v11 = vsel %vm1439_vm7, %v1966_v54, %v1436_v57  ;;  %v1454_v25 = vsub.f32 1.0, %v1453_v16  ;;  %v1627_v54 = vld [vmem:[#allocation7 + $0x8] sm:$0xff]  ;;  %v3584_v9 = vld [vmem:[#allocation60_spill] sm:$0xff] }
 0x56b   :  { %v1445_v26 = vsel %vm1442_vm9, %v1444_v4, %v1440_v11  ;;  %v1468_v28 = vmul.f32 %v1970_v48, %v1426_v58  ;;  %1685 = vmatpush.msrb.mxu1 %v1628_v59 }
 0x56c   :  { %v1467_v30 = vmul.f32 %v1445_v26, %v3219_v51  ;;  %v1455_v32 = vmul.f32 %v1968_v7, %v1454_v25  ;;  %v1622_v51 = vpop.permute.xlu2 %1621 }
 0x56d   :  { %vm1623_vm14 = vcmp.eq.s32.totalorder %v3579_v55, %v1622_v51  ;;  %1686 = vmatpush.msrb.mxu1 %v1627_v54 }
 0x56e   :  { %v3233_v35 = vadd.f32 %v1468_v28, %v1467_v30  ;;  %v1456_v37 = vadd.f32 %v1968_v7, %v1455_v32  ;;  %v1832_v29 = vsel %vm1623_vm14, 1.0, %v3580_v17 }
 0x56f   :  { %1687 = vmatpush.msrb.mxu1 %v1626_v22 }
 0x570   :  { %1971 = vtanh.f32 %v3233_v35  ;;  %v1460_v40 = vsel %vm1459_vm12, %v1968_v7, %v1456_v37 }
 0x571   :  { %v1465_v0 = vsel %vm1462_vm13, %v1464_v13, %v1460_v40 }
 0x576   :  { %v1972_v31 = vpop.eup %1971 }
 0x577   :  { %v1471_v15 = vmul.f32 %v1972_v31, %v1465_v0 }
 0x579   :  { %1488 = vmatmul.f32.vlgmr.msra.gmra.mxu0 %v1471_v15  ;;  %1508 = vmatmul.f32.vlgmr.msra.gmra.mxu1 %v1471_v15 }
 0x57a   :  { %1528 = vmatmul.f32.vlgmr.msra.gmra.mxu2 %v1471_v15  ;;  %1548 = vmatmul.f32.vlgmr.msrb.gmra.mxu3 %v1471_v15 }
 0x581   :  { %1834 = vmatmul.msk.f32.vlgmr.msrb.gmra.mxu0 %vm1644_vm1, %v1642_v44 }
 0x582   :  { %1836 = vmatmul.msk.f32.vlgmr.msrb.gmra.mxu2 %vm1694_vm15, %v1832_v29 }
 0x5f6   :  { %v1489_v43 = vpop.f32.mrf.mxu0  ;;  %v1509_v34 = vpop.f32.mrf.mxu1 }
 0x5f7   :  { %v1552_v27 = vadd.f32 %v1489_v43, %v3581_v19  ;;  %v1553_v24 = vadd.f32 %v1509_v34, %v3582_v49 }
 0x5f9   :  { %v1829_v50 = vmul.f32 -1.442695, %v1552_v27  ;;  %v1830_v12 = vmul.f32 -1.442695, %v1553_v24 }
 0x5fb   :  { %1973 = vpow2.f32 %v1829_v50 }
 0x5fc   :  { %1975 = vpow2.f32 %v1830_v12  ;;  %v1859_v12 = vld [vmem:[%s3268_s10] ss:$0 sm:$0xff] }
 0x5fd   :  { %v1549_v46 = vpop.f32.mrf.mxu3  ;;  %v1529_v23 = vpop.f32.mrf.mxu2 }
 0x5fe   :  { %v1555_v52 = vadd.f32 %v1549_v46, %v3583_v3  ;;  %v1554_v57 = vadd.f32 %v1529_v23, %v3584_v9  ;;  %v1669_v19 = vpop.f32.mrf.mxu0 }
 0x600   :  { %v1831_v6 = vmul.f32 -1.442695, %v1555_v52 }
 0x601   :  { %v1974_v56 = vpop.eup %1973 }
 0x602   :  { %v1976_v8 = vpop.eup %1975  ;;  %v1559_v5 = vadd.f32 1.0, %v1974_v56  ;;  %1977 = vpow2.f32 %v1831_v6 }
 0x603   :  { %v1578_v21 = vadd.f32 1.0, %v1976_v8 }
 0x604   :  { %1979 = vrcp.f32 %v1559_v5  ;;  %v1571_v11 = vand.u32 2147483648, %v1559_v5  ;;  %v1569_v28 = vand.u32 2147483647, %v1559_v5  ;;  %vm1565_vm4 = vweird.f32 %v1559_v5 }
 0x605   :  { %1981 = vrcp.f32 %v1578_v21  ;;  %v1590_v25 = vand.u32 2147483648, %v1578_v21  ;;  %v1588_v32 = vand.u32 2147483647, %v1578_v21  ;;  %vm1584_vm5 = vweird.f32 %v1578_v21  ;;  %v1719_v24 = vpop.f32.mrf.mxu2 }
 0x606   :  { %v1572_v42 = vor.u32 1.1754944e-38, %v1571_v11  ;;  %vm1570_vm8 = vcmp.eq.f32.partialorder %v1569_v28, 8.507059e+37 }
 0x607   :  { %v1591_v31 = vor.u32 1.1754944e-38, %v1590_v25  ;;  %vm1589_vm9 = vcmp.eq.f32.partialorder %v1588_v32, 8.507059e+37 }
 0x608   :  { %v1978_v53 = vpop.eup %1977 }
 0x609   :  { %v1598_v7 = vadd.f32 1.0, %v1978_v53 }
 0x60a   :  { %v1980_v10 = vpop.eup %1979 }
 0x60b   :  { %v1982_v16 = vpop.eup %1981  ;;  %v1561_v4 = vmul.f32 %v1980_v10, %v1559_v5  ;;  %1983 = vrcp.f32 %v1598_v7  ;;  %vm1566_vm2 = vweird.f32 %v1980_v10  ;;  %v1610_v47 = vand.u32 2147483648, %v1598_v7 }
 0x60c   :  { %v1580_v18 = vmul.f32 %v1982_v16, %v1578_v21  ;;  %1985 = vtanh.f32 %v1554_v57  ;;  %vm1585_vm3 = vweird.f32 %v1982_v16  ;;  %vm1567_vm6 = vmor %vm1565_vm4, %vm1566_vm2  ;;  %vm1604_vm11 = vweird.f32 %v1598_v7 }
 0x60d   :  { %v1562_v48 = vsub.f32 1.0, %v1561_v4  ;;  %vm1586_vm7 = vmor %vm1584_vm5, %vm1585_vm3  ;;  %v1608_v14 = vand.u32 2147483647, %v1598_v7  ;;  %v1611_v45 = vor.u32 1.1754944e-38, %v1610_v47 }
 0x60e   :  { %v1581_v58 = vsub.f32 1.0, %v1580_v18 }
 0x60f   :  { %v1563_v26 = vmul.f32 %v1980_v10, %v1562_v48  ;;  %vm1609_vm13 = vcmp.eq.f32.partialorder %v1608_v14, 8.507059e+37 }
 0x610   :  { %v1582_v30 = vmul.f32 %v1982_v16, %v1581_v58 }
 0x611   :  { %v1984_v37 = vpop.eup %1983  ;;  %v1564_v39 = vadd.f32 %v1980_v10, %v1563_v26 }
 0x612   :  { %v1583_v40 = vadd.f32 %v1982_v16, %v1582_v30  ;;  %v1600_v13 = vmul.f32 %v1984_v37, %v1598_v7  ;;  %v1986_v15 = vpop.eup %1985  ;;  %vm1605_vm10 = vweird.f32 %v1984_v37 }
 0x613   :  { %v1568_v0 = vsel %vm1567_vm6, %v1980_v10, %v1564_v39  ;;  %vm1606_vm12 = vmor %vm1604_vm11, %vm1605_vm10 }
 0x614   :  { %v1573_v51 = vsel %vm1570_vm8, %v1572_v42, %v1568_v0  ;;  %v1587_v55 = vsel %vm1586_vm7, %v1982_v16, %v1583_v40  ;;  %v1601_v17 = vsub.f32 1.0, %v1600_v13 }
 0x615   :  { %v1592_v29 = vsel %vm1589_vm9, %v1591_v31, %v1587_v55  ;;  %v1615_v61 = vmul.f32 %v1986_v15, %v1573_v51 }
 0x616   :  { %v1614_v1 = vmul.f32 %v1592_v29, %v3233_v35  ;;  %v1602_v63 = vmul.f32 %v1984_v37, %v1601_v17  ;;  %v1858_v35 = vld [vmem:[%s3266_s8] ss:$0 sm:$0xff] }
 0x618   :  { %v1616_v38 = vadd.f32 %v1615_v61, %v1614_v1  ;;  %v1603_v33 = vadd.f32 %v1984_v37, %v1602_v63 }
 0x61a   :  { %1987 = vtanh.f32 %v1616_v38  ;;  %v1607_v62 = vsel %vm1606_vm12, %v1984_v37, %v1603_v33 }
 0x61b   :  { %v1612_v43 = vsel %vm1609_vm13, %v1611_v45, %v1607_v62 }
 0x620   :  { %v1988_v60 = vpop.eup %1987 }
 0x621   :  { %v1618_v34 = vmul.f32 %v1988_v60, %v1612_v43 }
 0x623   :  { %1688 = vmatmul.f32.vlgmr.msrb.gmra.mxu1 %v1618_v34 }
 0x6a0   :  { %v1689_v27 = vpop.f32.mrf.mxu1 }
 0x6a1   :  { %v1690_v49 = vadd.f32 %v1689_v27, %v1669_v19 }
 0x6a3   :  { %v1722_v36 = vadd.f32 %v1719_v24, %v1690_v49 }
 0x6a5   :  { %v1727_v50 = vadd.f32 %v1858_v35, %v1722_v36 }
 0x6a7   :  { %v1728_v41 = vmax.f32 %v1727_v50, 0.0 }
 0x6a9   :  { %v1733_v20 = vmul.f32 %v1859_v12, %v1728_v41 }
 0x6ab   :  { %1734 = vadd.xlane.f32.xlu0 %v1733_v20 }
 0x71e   :  { %v1735_v59 = vpop.xlane.xlu0 %1734 }
 0x71f   :  { %v1740_v44 = vadd.f32 %v1860_v2, %v1735_v59 }
 0x721   :  { %v1837_v46 = vmul.f32 -1.442695, %v1740_v44 }
 0x723   :  { %1989 = vpow2.f32 %v1837_v46 }
 0x729   :  { %v1990_v54 = vpop.eup %1989 }
 0x72a   :  { %v1744_v3 = vadd.f32 1.0, %v1990_v54 }
 0x72c   :  { %1991 = vrcp.f32 %v1744_v3  ;;  %v1756_v56 = vand.u32 2147483648, %v1744_v3  ;;  %v1754_v5 = vand.u32 2147483647, %v1744_v3  ;;  %vm1750_vm15 = vweird.f32 %v1744_v3 }
 0x72e   :  { %v1757_v23 = vor.u32 1.1754944e-38, %v1756_v56  ;;  %vm1755_vm2 = vcmp.eq.f32.partialorder %v1754_v5, 8.507059e+37 }
 0x732   :  { %v1992_v52 = vpop.eup %1991 }
 0x733   :  { %v1746_v22 = vmul.f32 %v1992_v52, %v1744_v3  ;;  %vm1751_vm14 = vweird.f32 %v1992_v52 }
 0x734   :  { %vm1752_vm1 = vmor %vm1750_vm15, %vm1751_vm14 }
 0x735   :  { %v1747_v6 = vsub.f32 1.0, %v1746_v22 }
 0x737   :  { %v1748_v8 = vmul.f32 %v1992_v52, %v1747_v6 }
 0x739   :  { %v1749_v21 = vadd.f32 %v1992_v52, %v1748_v8 }
 0x73b   :  { %v1753_v53 = vsel %vm1752_vm1, %v1992_v52, %v1749_v21 }
 0x73c   :  { %v1758_v7 = vsel %vm1755_vm2, %v1757_v23, %v1753_v53 }
 0x73d   :  { %1761 = vst.msk [vmem:[%s3270_s12] sm:$0xff] %vm1760_vm0, %v1758_v7 }
 0x73e   :  { %1766 = vsyncpa [#allocation4], 1 }
 0x73f   :  { %1767 = vsyncpa [#allocation6], 1 }

</bundles_post_ra>
